<compile_context>
chip_gen: v5e
topology: v5e:2x2
jax: 0.10.0
libtpu: 0.0.40
codegen_flags: <defaults>
</compile_context>

<pallas_src>
import functools
import math

import jax
import jax.numpy as jnp
import numpy as np
from jax import lax
from jax.experimental import pallas as pl
from jax.experimental.pallas import tpu as pltpu

NUM_HEADS = 4


# ---------------------------------------------------------------------------
# Shared cross-attention math in transposed (C, N) layout.
#   x_f32 : (C, N) f32
#   wqkv  : (3C, C) compute_dtype, softmax scale folded into the Q rows
#   wp    : (C, C)  compute_dtype
#   bp    : (C, 1)  f32
# returns the projection output (C, N) f32 (no gate applied).
# ---------------------------------------------------------------------------
def _attention_t(x_f32, wqkv, wp, bp, compute_dtype):
    C = wp.shape[0]
    xc = x_f32.astype(compute_dtype)

    # Fused Q/K/V projection: one (3C, C) @ (C, N) MXU pass, f32 accumulation.
    qkv = jnp.dot(wqkv, xc, preferred_element_type=jnp.float32)        # (3C, N)
    q_t = qkv[:C].astype(compute_dtype)                                # (C, N)
    k_t = qkv[C:2 * C].astype(compute_dtype)                           # (C, N)
    v_t = qkv[2 * C:].astype(compute_dtype)                            # (C, N)

    # attn[i, j] = q_i . k_j  (scale already folded into the Q rows).
    # Contract dim 0 of both (C, N) operands: no (C,N)->(N,C) relayout.
    attn = lax.dot_general(q_t, k_t, (((0,), (0,)), ((), ())),
                           preferred_element_type=jnp.float32)         # (N, N)
    attn = attn - jnp.max(attn, axis=-1, keepdims=True)
    p = jnp.exp(attn)
    s = jnp.sum(p, axis=-1, keepdims=True)                             # (N, 1)
    # EUP reciprocal + one Newton step: keeps the big (N, N) normalization as
    # a multiply, off the VALU divide path, while staying ~f32 accurate.
    r = pl.reciprocal(s, approx=True)
    r = r * (2.0 - s * r)
    p = p * r

    # out^T = V^T @ P^T  (rhs-transposed matmul), shape (C, N), lane-dense.
    out_t = lax.dot_general(v_t, p.astype(compute_dtype),
                            (((1,), (1,)), ((), ())),
                            preferred_element_type=jnp.float32)
    # proj^T = Wp @ out^T + b
    return jnp.dot(wp, out_t.astype(compute_dtype),
                   preferred_element_type=jnp.float32) + bp


# ---------------------------------------------------------------------------
# Fused kernel: one batch element per grid step.
#   channel attention -> sigmoid gate -> spatial attention -> 7x7 (C->1) conv
#   -> sigmoid gate, all in VMEM (x1 never leaves the chip).
#   pad_ref : (C, N + 2*halo) scratch = zero-padded flat buffer; the row (h)
#   halo becomes real zeros, the column (w) wrap is masked once per kw group.
# ---------------------------------------------------------------------------
def _ca_cbam_kernel(x_ref, ca_qkv_ref, ca_wp_ref, ca_bp_ref,
                    sa_qkv_ref, sa_wp_ref, sa_bp_ref, cw_ref, cb_ref,
                    o_ref, pad_ref, *, H, W, halo, compute_dtype):
    _, C, N = x_ref.shape
    x = x_ref[0]                                                       # (C, N)

    # --- ChannelAttention: sigmoid(cross_attn(x, x)) * x -------------------
    ca = _attention_t(x, ca_qkv_ref[...], ca_wp_ref[...], ca_bp_ref[...],
                      compute_dtype)
    x1 = jax.nn.sigmoid(ca) * x                                        # (C, N)

    # --- SpatialAttention: cross_attn(x1, x1) -> 7x7 conv -> gate ----------
    sa = _attention_t(x1, sa_qkv_ref[...], sa_wp_ref[...], sa_bp_ref[...],
                      compute_dtype)

    # Zero only the halo slices (interior fully overwritten each step).  Not
    # gated on program_id == 0: with a "parallel" grid axis the scratch is
    # per-core on megacore parts, so core 1 would never see step 0.
    zeros_halo = jnp.zeros((C, halo), pad_ref.dtype)
    pad_ref[:, :halo] = zeros_halo
    pad_ref[:, halo + N:halo + N + halo] = zeros_halo
    pad_ref[:, halo:halo + N] = sa.astype(pad_ref.dtype)

    n_idx = lax.broadcasted_iota(jnp.int32, (1, N), 1)
    w_pos = n_idx % W
    cw = cw_ref[...]                                                   # (C, 49)

    # 49-tap conv: h-direction padding comes from the real zeros in the halo;
    # w-direction wrap is masked once per kw group (7 selects, not 49).
    acc = None                                                         # f32
    for kw in range(7):
        dw = kw - 3
        inner = None
        for kh in range(7):
            dh = kh - 3
            off = halo + dh * W + dw                                   # static
            shifted = pad_ref[:, off:off + N]                          # (C, N)
            j = kh * 7 + kw
            w_col = cw[:, j:j + 1]                                     # (C, 1)
            term = shifted * w_col
            inner = term if inner is None else inner + term
        col_ok = (w_pos + dw >= 0) & (w_pos + dw < W)                  # (1, N)
        masked = jnp.where(col_ok, inner, 0).astype(jnp.float32)
        acc = masked if acc is None else acc + masked
    conv = jnp.sum(acc, axis=0, keepdims=True) + cb_ref[0]             # (1, N)
    o_ref[0] = x1 * jax.nn.sigmoid(conv)


# ---------------------------------------------------------------------------
# Full CA_CBAM forward (single pallas_call).
# ---------------------------------------------------------------------------
def ca_cbam_pallas(x, params, *, compute_dtype=jnp.bfloat16):
    B, C, H, W = x.shape
    N = H * W
    scale = float((C // NUM_HEADS) ** (-0.5))
    x_t = x.reshape(B, C, N)          # NCHW -> (B, C, N): free, no transpose

    def prep_qkv(wqkv):               # fold softmax scale into the Q rows
        return jnp.concatenate([wqkv[:C] * scale, wqkv[C:]],
                               axis=0).astype(compute_dtype)

    ca_qkv = prep_qkv(params["ca_qkv_w"])
    sa_qkv = prep_qkv(params["sa_qkv_w"])
    ca_wp = params["ca_proj_w"].astype(compute_dtype)
    sa_wp = params["sa_proj_w"].astype(compute_dtype)
    ca_bp = params["ca_proj_b"].reshape(C, 1).astype(jnp.float32)
    sa_bp = params["sa_proj_b"].reshape(C, 1).astype(jnp.float32)
    cw = params["conv_w"][0].reshape(C, 49).astype(compute_dtype)
    cb = params["conv_b"].reshape(1).astype(jnp.float32)

    halo = ((3 * W + 3 + 127) // 128) * 128       # 128-aligned halo offset
    kern = functools.partial(_ca_cbam_kernel, H=H, W=W, halo=halo,
                             compute_dtype=compute_dtype)

    def wspec(r, c):
        return pl.BlockSpec((r, c), lambda b: (0, 0))

    out_t = pl.pallas_call(
        kern,
        out_shape=jax.ShapeDtypeStruct((B, C, N), jnp.float32),
        grid=(B,),
        in_specs=[
            pl.BlockSpec((1, C, N), lambda b: (b, 0, 0)),
            wspec(3 * C, C), wspec(C, C), wspec(C, 1),      # channel-attn
            wspec(3 * C, C), wspec(C, C), wspec(C, 1),      # spatial-attn
            wspec(C, 49),                                   # conv weight
            pl.BlockSpec(memory_space=pltpu.MemorySpace.SMEM),  # conv bias
        ],
        out_specs=pl.BlockSpec((1, C, N), lambda b: (b, 0, 0)),
        scratch_shapes=[pltpu.VMEM((C, N + 2 * halo), compute_dtype)],
        compiler_params=pltpu.CompilerParams(
            dimension_semantics=("parallel",)),
    )(x_t, ca_qkv, ca_wp, ca_bp, sa_qkv, sa_wp, sa_bp, cw, cb)
    return out_t.reshape(B, C, H, W)


# ---------------------------------------------------------------------------
# Pure-JAX reference (mirrors the PyTorch module) for verification.
# ---------------------------------------------------------------------------
def _cross_attention_ref(x, qkv_w, proj_w, proj_b):
    B, C, H, W = x.shape
    scale = (C // NUM_HEADS) ** (-0.5)
    xs = jnp.transpose(x.reshape(B, C, H * W), (0, 2, 1))              # (B,N,C)
    qkv = xs @ qkv_w.T
    q, k, v = jnp.split(qkv, 3, axis=-1)
    attn = (q @ jnp.swapaxes(k, -2, -1)) * scale
    attn = jax.nn.softmax(attn, axis=-1)
    out = attn @ v
    out = out @ proj_w.T + proj_b
    return jnp.transpose(out, (0, 2, 1)).reshape(B, C, H, W)


def ca_cbam_ref(x, params):
    ca = _cross_attention_ref(x, params["ca_qkv_w"],
                              params["ca_proj_w"], params["ca_proj_b"])
    x = jax.nn.sigmoid(ca) * x
    sa = _cross_attention_ref(x, params["sa_qkv_w"],
                              params["sa_proj_w"], params["sa_proj_b"])
    conv = lax.conv_general_dilated(
        sa, params["conv_w"], window_strides=(1, 1),
        padding=((3, 3), (3, 3)),
        dimension_numbers=("NCHW", "OIHW", "NCHW"))
    conv = conv + params["conv_b"].reshape(1, 1, 1, 1)
    return jax.nn.sigmoid(conv) * x


if __name__ == "__main__":
    B, C, H, W = 2, 8, 16, 16        # N = H*W = 256 -> lane-dense tiles

    key = jax.random.PRNGKey(0)
    keys = jax.random.split(key, 9)

    def uni(k, shape, fan_in):
        bound = 1.0 / math.sqrt(fan_in)
        return jax.random.uniform(k, shape, jnp.float32, -bound, bound)

    params = {
        "ca_qkv_w":  uni(keys[0], (3 * C, C), C),
        "ca_proj_w": uni(keys[1], (C, C), C),
        "ca_proj_b": uni(keys[2], (C,), C),
        "sa_qkv_w":  uni(keys[3], (3 * C, C), C),
        "sa_proj_w": uni(keys[4], (C, C), C),
        "sa_proj_b": uni(keys[5], (C,), C),
        "conv_w":    uni(keys[6], (1, C, 7, 7), C * 49),
        "conv_b":    uni(keys[7], (1,), C * 49),
    }
    x = jax.random.normal(keys[8], (B, C, H, W), jnp.float32)

    with jax.default_matmul_precision("highest"):
        ref = np.asarray(jax.block_until_ready(ca_cbam_ref(x, params)))

    # Exact (f32 MXU) path: tight check of the kernel semantics.
    fwd_f32 = jax.jit(functools.partial(ca_cbam_pallas,
                                        compute_dtype=jnp.float32))
    out_f32 = jax.block_until_ready(fwd_f32(x, params))
    np.testing.assert_allclose(np.asarray(out_f32), ref, rtol=5e-3, atol=5e-3)

    # bf16-input / f32-accumulate path (fast MXU / VPU path on v6e/v7x).
    fwd_bf16 = jax.jit(functools.partial(ca_cbam_pallas,
                                         compute_dtype=jnp.bfloat16))
    out_bf16 = jax.block_until_ready(fwd_bf16(x, params))
    np.testing.assert_allclose(np.asarray(out_bf16), ref, rtol=5e-2, atol=5e-2)

    print("KERNEL_OK")
</pallas_src>

<mosaic_0001>
module attributes {stable_mosaic.version = 11 : i64} {
  func.func @_ca_cbam_kernel(%arg0: i32, %arg1: memref<1x8x256xf32, #tpu.memory_space<vmem>>, %arg2: memref<24x8xf32, #tpu.memory_space<vmem>>, %arg3: memref<8x8xf32, #tpu.memory_space<vmem>>, %arg4: memref<8x1xf32, #tpu.memory_space<vmem>>, %arg5: memref<24x8xf32, #tpu.memory_space<vmem>>, %arg6: memref<8x8xf32, #tpu.memory_space<vmem>>, %arg7: memref<8x1xf32, #tpu.memory_space<vmem>>, %arg8: memref<8x49xf32, #tpu.memory_space<vmem>>, %arg9: memref<1xf32, #tpu.memory_space<smem>>, %arg10: memref<1x8x256xf32, #tpu.memory_space<vmem>>, %arg11: memref<8x512xf32, #tpu.memory_space<vmem>>) attributes {dimension_semantics = [#tpu.dimension_semantics<parallel>], iteration_bounds = array<i64: 2>, scalar_prefetch = 0 : i64, scratch_operands = 1 : i64, tpu.core_type = #tpu.core_type<tc>, window_params = [{transform_indices = @transform_0, window_bounds = array<i64: 1, 8, 256>}, {pipeline_mode = #tpu.pipeline_mode<synchronous>, transform_indices = @transform_1, window_bounds = array<i64: 24, 8>}, {pipeline_mode = #tpu.pipeline_mode<synchronous>, transform_indices = @transform_2, window_bounds = array<i64: 8, 8>}, {pipeline_mode = #tpu.pipeline_mode<synchronous>, transform_indices = @transform_3, window_bounds = array<i64: 8, 1>}, {pipeline_mode = #tpu.pipeline_mode<synchronous>, transform_indices = @transform_4, window_bounds = array<i64: 24, 8>}, {pipeline_mode = #tpu.pipeline_mode<synchronous>, transform_indices = @transform_5, window_bounds = array<i64: 8, 8>}, {pipeline_mode = #tpu.pipeline_mode<synchronous>, transform_indices = @transform_6, window_bounds = array<i64: 8, 1>}, {pipeline_mode = #tpu.pipeline_mode<synchronous>, transform_indices = @transform_7, window_bounds = array<i64: 8, 49>}, {transform_indices = @transform_8, window_bounds = array<i64: 1>}, {transform_indices = @transform_9, window_bounds = array<i64: 1, 8, 256>}]} {
    %c0 = arith.constant 0 : index
    %c0_0 = arith.constant 0 : index
    %c0_1 = arith.constant 0 : index
    %0 = vector.load %arg1[%c0, %c0_0, %c0_1] : memref<1x8x256xf32, #tpu.memory_space<vmem>>, vector<1x8x256xf32>
    %1 = vector.shape_cast %0 : vector<1x8x256xf32> to vector<8x256xf32>
    %c0_2 = arith.constant 0 : index
    %c0_3 = arith.constant 0 : index
    %2 = vector.load %arg2[%c0_2, %c0_3] : memref<24x8xf32, #tpu.memory_space<vmem>>, vector<24x8xf32>
    %c0_4 = arith.constant 0 : index
    %c0_5 = arith.constant 0 : index
    %3 = vector.load %arg3[%c0_4, %c0_5] : memref<8x8xf32, #tpu.memory_space<vmem>>, vector<8x8xf32>
    %c0_6 = arith.constant 0 : index
    %c0_7 = arith.constant 0 : index
    %4 = vector.load %arg4[%c0_6, %c0_7] : memref<8x1xf32, #tpu.memory_space<vmem>>, vector<8x1xf32>
    %cst = arith.constant dense<0.000000e+00> : vector<24x256xf32>
    %5 = tpu.matmul %2, %1, %cst {dimension_numbers = #tpu.dot_dimension_numbers<[1], [0], [0], [1], [0, 0, 1, 1], [], []>} : vector<24x8xf32>, vector<8x256xf32>, vector<24x256xf32> -> vector<24x256xf32>
    %6 = vector.extract_strided_slice %5 {offsets = [0, 0], sizes = [8, 256], strides = [1, 1]} : vector<24x256xf32> to vector<8x256xf32>
    %7 = vector.extract_strided_slice %5 {offsets = [8, 0], sizes = [8, 256], strides = [1, 1]} : vector<24x256xf32> to vector<8x256xf32>
    %8 = vector.extract_strided_slice %5 {offsets = [16, 0], sizes = [8, 256], strides = [1, 1]} : vector<24x256xf32> to vector<8x256xf32>
    %cst_8 = arith.constant dense<0.000000e+00> : vector<256x256xf32>
    %9 = tpu.matmul %6, %7, %cst_8 {dimension_numbers = #tpu.dot_dimension_numbers<[0], [0], [1], [1], [0, 1, 1, 1], [], []>} : vector<8x256xf32>, vector<8x256xf32>, vector<256x256xf32> -> vector<256x256xf32>
    %cst_9 = arith.constant dense<0xFF800000> : vector<256xf32>
    %10 = vector.multi_reduction <maximumf>, %9, %cst_9 [1] : vector<256x256xf32> to vector<256xf32>
    %11 = vector.shape_cast %10 : vector<256xf32> to vector<256x1xf32>
    %12 = vector.broadcast %11 : vector<256x1xf32> to vector<256x256xf32>
    %13 = arith.subf %9, %12 : vector<256x256xf32>
    %14 = math.exp %13 : vector<256x256xf32>
    %cst_10 = arith.constant dense<0.000000e+00> : vector<256xf32>
    %15 = vector.multi_reduction <add>, %14, %cst_10 [1] : vector<256x256xf32> to vector<256xf32>
    %16 = vector.shape_cast %15 : vector<256xf32> to vector<256x1xf32>
    %17 = tpu.reciprocal %16 {approx = true} : vector<256x1xf32> -> vector<256x1xf32>
    %18 = arith.mulf %16, %17 : vector<256x1xf32>
    %cst_11 = arith.constant 2.000000e+00 : f32
    %19 = vector.broadcast %cst_11 : f32 to vector<256x1xf32>
    %20 = arith.subf %19, %18 : vector<256x1xf32>
    %21 = arith.mulf %17, %20 : vector<256x1xf32>
    %22 = vector.broadcast %21 : vector<256x1xf32> to vector<256x256xf32>
    %23 = arith.mulf %14, %22 : vector<256x256xf32>
    %cst_12 = arith.constant dense<0.000000e+00> : vector<8x256xf32>
    %24 = tpu.matmul %8, %23, %cst_12 {dimension_numbers = #tpu.dot_dimension_numbers<[1], [1], [0], [0], [0, 0, 1, 0], [], []>} : vector<8x256xf32>, vector<256x256xf32>, vector<8x256xf32> -> vector<8x256xf32>
    %cst_13 = arith.constant dense<0.000000e+00> : vector<8x256xf32>
    %25 = tpu.matmul %3, %24, %cst_13 {dimension_numbers = #tpu.dot_dimension_numbers<[1], [0], [0], [1], [0, 0, 1, 1], [], []>} : vector<8x8xf32>, vector<8x256xf32>, vector<8x256xf32> -> vector<8x256xf32>
    %26 = vector.broadcast %4 : vector<8x1xf32> to vector<8x256xf32>
    %27 = arith.addf %25, %26 : vector<8x256xf32>
    %28 = arith.negf %27 : vector<8x256xf32>
    %29 = math.exp %28 : vector<8x256xf32>
    %cst_14 = arith.constant 1.000000e+00 : f32
    %30 = vector.broadcast %cst_14 : f32 to vector<8x256xf32>
    %31 = arith.addf %30, %29 : vector<8x256xf32>
    %32 = arith.divf %30, %31 : vector<8x256xf32>
    %33 = arith.mulf %32, %1 : vector<8x256xf32>
    %c0_15 = arith.constant 0 : index
    %c0_16 = arith.constant 0 : index
    %34 = vector.load %arg5[%c0_15, %c0_16] : memref<24x8xf32, #tpu.memory_space<vmem>>, vector<24x8xf32>
    %c0_17 = arith.constant 0 : index
    %c0_18 = arith.constant 0 : index
    %35 = vector.load %arg6[%c0_17, %c0_18] : memref<8x8xf32, #tpu.memory_space<vmem>>, vector<8x8xf32>
    %c0_19 = arith.constant 0 : index
    %c0_20 = arith.constant 0 : index
    %36 = vector.load %arg7[%c0_19, %c0_20] : memref<8x1xf32, #tpu.memory_space<vmem>>, vector<8x1xf32>
    %cst_21 = arith.constant dense<0.000000e+00> : vector<24x256xf32>
    %37 = tpu.matmul %34, %33, %cst_21 {dimension_numbers = #tpu.dot_dimension_numbers<[1], [0], [0], [1], [0, 0, 1, 1], [], []>} : vector<24x8xf32>, vector<8x256xf32>, vector<24x256xf32> -> vector<24x256xf32>
    %38 = vector.extract_strided_slice %37 {offsets = [0, 0], sizes = [8, 256], strides = [1, 1]} : vector<24x256xf32> to vector<8x256xf32>
    %39 = vector.extract_strided_slice %37 {offsets = [8, 0], sizes = [8, 256], strides = [1, 1]} : vector<24x256xf32> to vector<8x256xf32>
    %40 = vector.extract_strided_slice %37 {offsets = [16, 0], sizes = [8, 256], strides = [1, 1]} : vector<24x256xf32> to vector<8x256xf32>
    %cst_22 = arith.constant dense<0.000000e+00> : vector<256x256xf32>
    %41 = tpu.matmul %38, %39, %cst_22 {dimension_numbers = #tpu.dot_dimension_numbers<[0], [0], [1], [1], [0, 1, 1, 1], [], []>} : vector<8x256xf32>, vector<8x256xf32>, vector<256x256xf32> -> vector<256x256xf32>
    %cst_23 = arith.constant dense<0xFF800000> : vector<256xf32>
    %42 = vector.multi_reduction <maximumf>, %41, %cst_23 [1] : vector<256x256xf32> to vector<256xf32>
    %43 = vector.shape_cast %42 : vector<256xf32> to vector<256x1xf32>
    %44 = vector.broadcast %43 : vector<256x1xf32> to vector<256x256xf32>
    %45 = arith.subf %41, %44 : vector<256x256xf32>
    %46 = math.exp %45 : vector<256x256xf32>
    %cst_24 = arith.constant dense<0.000000e+00> : vector<256xf32>
    %47 = vector.multi_reduction <add>, %46, %cst_24 [1] : vector<256x256xf32> to vector<256xf32>
    %48 = vector.shape_cast %47 : vector<256xf32> to vector<256x1xf32>
    %49 = tpu.reciprocal %48 {approx = true} : vector<256x1xf32> -> vector<256x1xf32>
    %50 = arith.mulf %48, %49 : vector<256x1xf32>
    %cst_25 = arith.constant 2.000000e+00 : f32
    %51 = vector.broadcast %cst_25 : f32 to vector<256x1xf32>
    %52 = arith.subf %51, %50 : vector<256x1xf32>
    %53 = arith.mulf %49, %52 : vector<256x1xf32>
    %54 = vector.broadcast %53 : vector<256x1xf32> to vector<256x256xf32>
    %55 = arith.mulf %46, %54 : vector<256x256xf32>
    %cst_26 = arith.constant dense<0.000000e+00> : vector<8x256xf32>
    %56 = tpu.matmul %40, %55, %cst_26 {dimension_numbers = #tpu.dot_dimension_numbers<[1], [1], [0], [0], [0, 0, 1, 0], [], []>} : vector<8x256xf32>, vector<256x256xf32>, vector<8x256xf32> -> vector<8x256xf32>
    %cst_27 = arith.constant dense<0.000000e+00> : vector<8x256xf32>
    %57 = tpu.matmul %35, %56, %cst_27 {dimension_numbers = #tpu.dot_dimension_numbers<[1], [0], [0], [1], [0, 0, 1, 1], [], []>} : vector<8x8xf32>, vector<8x256xf32>, vector<8x256xf32> -> vector<8x256xf32>
    %58 = vector.broadcast %36 : vector<8x1xf32> to vector<8x256xf32>
    %59 = arith.addf %57, %58 : vector<8x256xf32>
    %cst_28 = arith.constant 0.000000e+00 : f32
    %60 = vector.broadcast %cst_28 : f32 to vector<8x128xf32>
    %c0_29 = arith.constant 0 : index
    %c0_30 = arith.constant 0 : index
    %61 = vector.load %arg11[%c0_29, %c0_30] : memref<8x512xf32, #tpu.memory_space<vmem>>, vector<8x128xf32>
    tpu.vector_store %arg11[%c0_29, %c0_30], %60 {strides = array<i32>} : memref<8x512xf32, #tpu.memory_space<vmem>>, vector<8x128xf32>,
    %c0_31 = arith.constant 0 : index
    %c384 = arith.constant 384 : index
    %62 = vector.load %arg11[%c0_31, %c384] : memref<8x512xf32, #tpu.memory_space<vmem>>, vector<8x128xf32>
    tpu.vector_store %arg11[%c0_31, %c384], %60 {strides = array<i32>} : memref<8x512xf32, #tpu.memory_space<vmem>>, vector<8x128xf32>,
    %c0_32 = arith.constant 0 : index
    %c128 = arith.constant 128 : index
    %63 = vector.load %arg11[%c0_32, %c128] : memref<8x512xf32, #tpu.memory_space<vmem>>, vector<8x256xf32>
    tpu.vector_store %arg11[%c0_32, %c128], %59 {strides = array<i32>} : memref<8x512xf32, #tpu.memory_space<vmem>>, vector<8x256xf32>,
    %64 = tpu.iota {dimensions = array<i32: 1>} : vector<1x256xi32>
    %c16_i32 = arith.constant 16 : i32
    %c0_i32 = arith.constant 0 : i32
    %65 = arith.cmpi eq, %c16_i32, %c0_i32 : i32
    %c1_i32 = arith.constant 1 : i32
    %66 = arith.select %65, %c1_i32, %c16_i32 : i32
    %67 = vector.broadcast %66 : i32 to vector<1x256xi32>
    %68 = arith.remsi %64, %67 : vector<1x256xi32>
    %c0_i32_33 = arith.constant 0 : i32
    %69 = vector.broadcast %c0_i32_33 : i32 to vector<1x256xi32>
    %70 = arith.cmpi ne, %68, %69 : vector<1x256xi32>
    %c0_i32_34 = arith.constant 0 : i32
    %71 = vector.broadcast %c0_i32_34 : i32 to vector<1x256xi32>
    %72 = arith.cmpi slt, %68, %71 : vector<1x256xi32>
    %c0_i32_35 = arith.constant 0 : i32
    %73 = arith.cmpi slt, %66, %c0_i32_35 : i32
    %74 = vector.broadcast %73 : i1 to vector<1x256xi1>
    %75 = vector.broadcast %74 : vector<1x256xi1> to vector<1x256xi1>
    %76 = arith.xori %72, %75 : vector<1x256xi1>
    %77 = arith.andi %76, %70 : vector<1x256xi1>
    %78 = vector.broadcast %66 : i32 to vector<1x256xi32>
    %79 = arith.addi %68, %78 : vector<1x256xi32>
    %80 = arith.select %77, %79, %68 : vector<1x256xi1>, vector<1x256xi32>
    %c0_36 = arith.constant 0 : index
    %c0_37 = arith.constant 0 : index
    %81 = vector.load %arg8[%c0_36, %c0_37] : memref<8x49xf32, #tpu.memory_space<vmem>>, vector<8x49xf32>
    %c0_38 = arith.constant 0 : index
    %c77 = arith.constant 77 : index
    %82 = vector.load %arg11[%c0_38, %c77] : memref<8x512xf32, #tpu.memory_space<vmem>>, vector<8x256xf32>
    %83 = vector.extract_strided_slice %81 {offsets = [0, 0], sizes = [8, 1], strides = [1, 1]} : vector<8x49xf32> to vector<8x1xf32>
    %84 = vector.broadcast %83 : vector<8x1xf32> to vector<8x256xf32>
    %85 = arith.mulf %82, %84 : vector<8x256xf32>
    %c0_39 = arith.constant 0 : index
    %c93 = arith.constant 93 : index
    %86 = vector.load %arg11[%c0_39, %c93] : memref<8x512xf32, #tpu.memory_space<vmem>>, vector<8x256xf32>
    %87 = vector.extract_strided_slice %81 {offsets = [0, 7], sizes = [8, 1], strides = [1, 1]} : vector<8x49xf32> to vector<8x1xf32>
    %88 = vector.broadcast %87 : vector<8x1xf32> to vector<8x256xf32>
    %89 = arith.mulf %86, %88 : vector<8x256xf32>
    %90 = arith.addf %85, %89 : vector<8x256xf32>
    %c0_40 = arith.constant 0 : index
    %c109 = arith.constant 109 : index
    %91 = vector.load %arg11[%c0_40, %c109] : memref<8x512xf32, #tpu.memory_space<vmem>>, vector<8x256xf32>
    %92 = vector.extract_strided_slice %81 {offsets = [0, 14], sizes = [8, 1], strides = [1, 1]} : vector<8x49xf32> to vector<8x1xf32>
    %93 = vector.broadcast %92 : vector<8x1xf32> to vector<8x256xf32>
    %94 = arith.mulf %91, %93 : vector<8x256xf32>
    %95 = arith.addf %90, %94 : vector<8x256xf32>
    %c0_41 = arith.constant 0 : index
    %c125 = arith.constant 125 : index
    %96 = vector.load %arg11[%c0_41, %c125] : memref<8x512xf32, #tpu.memory_space<vmem>>, vector<8x256xf32>
    %97 = vector.extract_strided_slice %81 {offsets = [0, 21], sizes = [8, 1], strides = [1, 1]} : vector<8x49xf32> to vector<8x1xf32>
    %98 = vector.broadcast %97 : vector<8x1xf32> to vector<8x256xf32>
    %99 = arith.mulf %96, %98 : vector<8x256xf32>
    %100 = arith.addf %95, %99 : vector<8x256xf32>
    %c0_42 = arith.constant 0 : index
    %c141 = arith.constant 141 : index
    %101 = vector.load %arg11[%c0_42, %c141] : memref<8x512xf32, #tpu.memory_space<vmem>>, vector<8x256xf32>
    %102 = vector.extract_strided_slice %81 {offsets = [0, 28], sizes = [8, 1], strides = [1, 1]} : vector<8x49xf32> to vector<8x1xf32>
    %103 = vector.broadcast %102 : vector<8x1xf32> to vector<8x256xf32>
    %104 = arith.mulf %101, %103 : vector<8x256xf32>
    %105 = arith.addf %100, %104 : vector<8x256xf32>
    %c0_43 = arith.constant 0 : index
    %c157 = arith.constant 157 : index
    %106 = vector.load %arg11[%c0_43, %c157] : memref<8x512xf32, #tpu.memory_space<vmem>>, vector<8x256xf32>
    %107 = vector.extract_strided_slice %81 {offsets = [0, 35], sizes = [8, 1], strides = [1, 1]} : vector<8x49xf32> to vector<8x1xf32>
    %108 = vector.broadcast %107 : vector<8x1xf32> to vector<8x256xf32>
    %109 = arith.mulf %106, %108 : vector<8x256xf32>
    %110 = arith.addf %105, %109 : vector<8x256xf32>
    %c0_44 = arith.constant 0 : index
    %c173 = arith.constant 173 : index
    %111 = vector.load %arg11[%c0_44, %c173] : memref<8x512xf32, #tpu.memory_space<vmem>>, vector<8x256xf32>
    %112 = vector.extract_strided_slice %81 {offsets = [0, 42], sizes = [8, 1], strides = [1, 1]} : vector<8x49xf32> to vector<8x1xf32>
    %113 = vector.broadcast %112 : vector<8x1xf32> to vector<8x256xf32>
    %114 = arith.mulf %111, %113 : vector<8x256xf32>
    %115 = arith.addf %110, %114 : vector<8x256xf32>
    %c-3_i32 = arith.constant -3 : i32
    %116 = vector.broadcast %c-3_i32 : i32 to vector<1x256xi32>
    %117 = arith.addi %80, %116 : vector<1x256xi32>
    %c0_i32_45 = arith.constant 0 : i32
    %118 = vector.broadcast %c0_i32_45 : i32 to vector<1x256xi32>
    %119 = arith.cmpi sge, %117, %118 : vector<1x256xi32>
    %c-3_i32_46 = arith.constant -3 : i32
    %120 = vector.broadcast %c-3_i32_46 : i32 to vector<1x256xi32>
    %121 = arith.addi %80, %120 : vector<1x256xi32>
    %c16_i32_47 = arith.constant 16 : i32
    %122 = vector.broadcast %c16_i32_47 : i32 to vector<1x256xi32>
    %123 = arith.cmpi slt, %121, %122 : vector<1x256xi32>
    %124 = arith.andi %119, %123 : vector<1x256xi1>
    %c0_i32_48 = arith.constant 0 : i32
    %125 = arith.sitofp %c0_i32_48 : i32 to f32
    %126 = vector.shape_cast %124 : vector<1x256xi1> to vector<1x256xi1>
    %127 = vector.broadcast %126 : vector<1x256xi1> to vector<8x256xi1>
    %128 = vector.broadcast %125 : f32 to vector<8x256xf32>
    %129 = arith.select %127, %115, %128 : vector<8x256xi1>, vector<8x256xf32>
    %c0_49 = arith.constant 0 : index
    %c78 = arith.constant 78 : index
    %130 = vector.load %arg11[%c0_49, %c78] : memref<8x512xf32, #tpu.memory_space<vmem>>, vector<8x256xf32>
    %131 = vector.extract_strided_slice %81 {offsets = [0, 1], sizes = [8, 1], strides = [1, 1]} : vector<8x49xf32> to vector<8x1xf32>
    %132 = vector.broadcast %131 : vector<8x1xf32> to vector<8x256xf32>
    %133 = arith.mulf %130, %132 : vector<8x256xf32>
    %c0_50 = arith.constant 0 : index
    %c94 = arith.constant 94 : index
    %134 = vector.load %arg11[%c0_50, %c94] : memref<8x512xf32, #tpu.memory_space<vmem>>, vector<8x256xf32>
    %135 = vector.extract_strided_slice %81 {offsets = [0, 8], sizes = [8, 1], strides = [1, 1]} : vector<8x49xf32> to vector<8x1xf32>
    %136 = vector.broadcast %135 : vector<8x1xf32> to vector<8x256xf32>
    %137 = arith.mulf %134, %136 : vector<8x256xf32>
    %138 = arith.addf %133, %137 : vector<8x256xf32>
    %c0_51 = arith.constant 0 : index
    %c110 = arith.constant 110 : index
    %139 = vector.load %arg11[%c0_51, %c110] : memref<8x512xf32, #tpu.memory_space<vmem>>, vector<8x256xf32>
    %140 = vector.extract_strided_slice %81 {offsets = [0, 15], sizes = [8, 1], strides = [1, 1]} : vector<8x49xf32> to vector<8x1xf32>
    %141 = vector.broadcast %140 : vector<8x1xf32> to vector<8x256xf32>
    %142 = arith.mulf %139, %141 : vector<8x256xf32>
    %143 = arith.addf %138, %142 : vector<8x256xf32>
    %c0_52 = arith.constant 0 : index
    %c126 = arith.constant 126 : index
    %144 = vector.load %arg11[%c0_52, %c126] : memref<8x512xf32, #tpu.memory_space<vmem>>, vector<8x256xf32>
    %145 = vector.extract_strided_slice %81 {offsets = [0, 22], sizes = [8, 1], strides = [1, 1]} : vector<8x49xf32> to vector<8x1xf32>
    %146 = vector.broadcast %145 : vector<8x1xf32> to vector<8x256xf32>
    %147 = arith.mulf %144, %146 : vector<8x256xf32>
    %148 = arith.addf %143, %147 : vector<8x256xf32>
    %c0_53 = arith.constant 0 : index
    %c142 = arith.constant 142 : index
    %149 = vector.load %arg11[%c0_53, %c142] : memref<8x512xf32, #tpu.memory_space<vmem>>, vector<8x256xf32>
    %150 = vector.extract_strided_slice %81 {offsets = [0, 29], sizes = [8, 1], strides = [1, 1]} : vector<8x49xf32> to vector<8x1xf32>
    %151 = vector.broadcast %150 : vector<8x1xf32> to vector<8x256xf32>
    %152 = arith.mulf %149, %151 : vector<8x256xf32>
    %153 = arith.addf %148, %152 : vector<8x256xf32>
    %c0_54 = arith.constant 0 : index
    %c158 = arith.constant 158 : index
    %154 = vector.load %arg11[%c0_54, %c158] : memref<8x512xf32, #tpu.memory_space<vmem>>, vector<8x256xf32>
    %155 = vector.extract_strided_slice %81 {offsets = [0, 36], sizes = [8, 1], strides = [1, 1]} : vector<8x49xf32> to vector<8x1xf32>
    %156 = vector.broadcast %155 : vector<8x1xf32> to vector<8x256xf32>
    %157 = arith.mulf %154, %156 : vector<8x256xf32>
    %158 = arith.addf %153, %157 : vector<8x256xf32>
    %c0_55 = arith.constant 0 : index
    %c174 = arith.constant 174 : index
    %159 = vector.load %arg11[%c0_55, %c174] : memref<8x512xf32, #tpu.memory_space<vmem>>, vector<8x256xf32>
    %160 = vector.extract_strided_slice %81 {offsets = [0, 43], sizes = [8, 1], strides = [1, 1]} : vector<8x49xf32> to vector<8x1xf32>
    %161 = vector.broadcast %160 : vector<8x1xf32> to vector<8x256xf32>
    %162 = arith.mulf %159, %161 : vector<8x256xf32>
    %163 = arith.addf %158, %162 : vector<8x256xf32>
    %c-2_i32 = arith.constant -2 : i32
    %164 = vector.broadcast %c-2_i32 : i32 to vector<1x256xi32>
    %165 = arith.addi %80, %164 : vector<1x256xi32>
    %c0_i32_56 = arith.constant 0 : i32
    %166 = vector.broadcast %c0_i32_56 : i32 to vector<1x256xi32>
    %167 = arith.cmpi sge, %165, %166 : vector<1x256xi32>
    %c-2_i32_57 = arith.constant -2 : i32
    %168 = vector.broadcast %c-2_i32_57 : i32 to vector<1x256xi32>
    %169 = arith.addi %80, %168 : vector<1x256xi32>
    %c16_i32_58 = arith.constant 16 : i32
    %170 = vector.broadcast %c16_i32_58 : i32 to vector<1x256xi32>
    %171 = arith.cmpi slt, %169, %170 : vector<1x256xi32>
    %172 = arith.andi %167, %171 : vector<1x256xi1>
    %c0_i32_59 = arith.constant 0 : i32
    %173 = arith.sitofp %c0_i32_59 : i32 to f32
    %174 = vector.shape_cast %172 : vector<1x256xi1> to vector<1x256xi1>
    %175 = vector.broadcast %174 : vector<1x256xi1> to vector<8x256xi1>
    %176 = vector.broadcast %173 : f32 to vector<8x256xf32>
    %177 = arith.select %175, %163, %176 : vector<8x256xi1>, vector<8x256xf32>
    %178 = arith.addf %129, %177 : vector<8x256xf32>
    %c0_60 = arith.constant 0 : index
    %c79 = arith.constant 79 : index
    %179 = vector.load %arg11[%c0_60, %c79] : memref<8x512xf32, #tpu.memory_space<vmem>>, vector<8x256xf32>
    %180 = vector.extract_strided_slice %81 {offsets = [0, 2], sizes = [8, 1], strides = [1, 1]} : vector<8x49xf32> to vector<8x1xf32>
    %181 = vector.broadcast %180 : vector<8x1xf32> to vector<8x256xf32>
    %182 = arith.mulf %179, %181 : vector<8x256xf32>
    %c0_61 = arith.constant 0 : index
    %c95 = arith.constant 95 : index
    %183 = vector.load %arg11[%c0_61, %c95] : memref<8x512xf32, #tpu.memory_space<vmem>>, vector<8x256xf32>
    %184 = vector.extract_strided_slice %81 {offsets = [0, 9], sizes = [8, 1], strides = [1, 1]} : vector<8x49xf32> to vector<8x1xf32>
    %185 = vector.broadcast %184 : vector<8x1xf32> to vector<8x256xf32>
    %186 = arith.mulf %183, %185 : vector<8x256xf32>
    %187 = arith.addf %182, %186 : vector<8x256xf32>
    %c0_62 = arith.constant 0 : index
    %c111 = arith.constant 111 : index
    %188 = vector.load %arg11[%c0_62, %c111] : memref<8x512xf32, #tpu.memory_space<vmem>>, vector<8x256xf32>
    %189 = vector.extract_strided_slice %81 {offsets = [0, 16], sizes = [8, 1], strides = [1, 1]} : vector<8x49xf32> to vector<8x1xf32>
    %190 = vector.broadcast %189 : vector<8x1xf32> to vector<8x256xf32>
    %191 = arith.mulf %188, %190 : vector<8x256xf32>
    %192 = arith.addf %187, %191 : vector<8x256xf32>
    %c0_63 = arith.constant 0 : index
    %c127 = arith.constant 127 : index
    %193 = vector.load %arg11[%c0_63, %c127] : memref<8x512xf32, #tpu.memory_space<vmem>>, vector<8x256xf32>
    %194 = vector.extract_strided_slice %81 {offsets = [0, 23], sizes = [8, 1], strides = [1, 1]} : vector<8x49xf32> to vector<8x1xf32>
    %195 = vector.broadcast %194 : vector<8x1xf32> to vector<8x256xf32>
    %196 = arith.mulf %193, %195 : vector<8x256xf32>
    %197 = arith.addf %192, %196 : vector<8x256xf32>
    %c0_64 = arith.constant 0 : index
    %c143 = arith.constant 143 : index
    %198 = vector.load %arg11[%c0_64, %c143] : memref<8x512xf32, #tpu.memory_space<vmem>>, vector<8x256xf32>
    %199 = vector.extract_strided_slice %81 {offsets = [0, 30], sizes = [8, 1], strides = [1, 1]} : vector<8x49xf32> to vector<8x1xf32>
    %200 = vector.broadcast %199 : vector<8x1xf32> to vector<8x256xf32>
    %201 = arith.mulf %198, %200 : vector<8x256xf32>
    %202 = arith.addf %197, %201 : vector<8x256xf32>
    %c0_65 = arith.constant 0 : index
    %c159 = arith.constant 159 : index
    %203 = vector.load %arg11[%c0_65, %c159] : memref<8x512xf32, #tpu.memory_space<vmem>>, vector<8x256xf32>
    %204 = vector.extract_strided_slice %81 {offsets = [0, 37], sizes = [8, 1], strides = [1, 1]} : vector<8x49xf32> to vector<8x1xf32>
    %205 = vector.broadcast %204 : vector<8x1xf32> to vector<8x256xf32>
    %206 = arith.mulf %203, %205 : vector<8x256xf32>
    %207 = arith.addf %202, %206 : vector<8x256xf32>
    %c0_66 = arith.constant 0 : index
    %c175 = arith.constant 175 : index
    %208 = vector.load %arg11[%c0_66, %c175] : memref<8x512xf32, #tpu.memory_space<vmem>>, vector<8x256xf32>
    %209 = vector.extract_strided_slice %81 {offsets = [0, 44], sizes = [8, 1], strides = [1, 1]} : vector<8x49xf32> to vector<8x1xf32>
    %210 = vector.broadcast %209 : vector<8x1xf32> to vector<8x256xf32>
    %211 = arith.mulf %208, %210 : vector<8x256xf32>
    %212 = arith.addf %207, %211 : vector<8x256xf32>
    %c-1_i32 = arith.constant -1 : i32
    %213 = vector.broadcast %c-1_i32 : i32 to vector<1x256xi32>
    %214 = arith.addi %80, %213 : vector<1x256xi32>
    %c0_i32_67 = arith.constant 0 : i32
    %215 = vector.broadcast %c0_i32_67 : i32 to vector<1x256xi32>
    %216 = arith.cmpi sge, %214, %215 : vector<1x256xi32>
    %c-1_i32_68 = arith.constant -1 : i32
    %217 = vector.broadcast %c-1_i32_68 : i32 to vector<1x256xi32>
    %218 = arith.addi %80, %217 : vector<1x256xi32>
    %c16_i32_69 = arith.constant 16 : i32
    %219 = vector.broadcast %c16_i32_69 : i32 to vector<1x256xi32>
    %220 = arith.cmpi slt, %218, %219 : vector<1x256xi32>
    %221 = arith.andi %216, %220 : vector<1x256xi1>
    %c0_i32_70 = arith.constant 0 : i32
    %222 = arith.sitofp %c0_i32_70 : i32 to f32
    %223 = vector.shape_cast %221 : vector<1x256xi1> to vector<1x256xi1>
    %224 = vector.broadcast %223 : vector<1x256xi1> to vector<8x256xi1>
    %225 = vector.broadcast %222 : f32 to vector<8x256xf32>
    %226 = arith.select %224, %212, %225 : vector<8x256xi1>, vector<8x256xf32>
    %227 = arith.addf %178, %226 : vector<8x256xf32>
    %c0_71 = arith.constant 0 : index
    %c80 = arith.constant 80 : index
    %228 = vector.load %arg11[%c0_71, %c80] : memref<8x512xf32, #tpu.memory_space<vmem>>, vector<8x256xf32>
    %229 = vector.extract_strided_slice %81 {offsets = [0, 3], sizes = [8, 1], strides = [1, 1]} : vector<8x49xf32> to vector<8x1xf32>
    %230 = vector.broadcast %229 : vector<8x1xf32> to vector<8x256xf32>
    %231 = arith.mulf %228, %230 : vector<8x256xf32>
    %c0_72 = arith.constant 0 : index
    %c96 = arith.constant 96 : index
    %232 = vector.load %arg11[%c0_72, %c96] : memref<8x512xf32, #tpu.memory_space<vmem>>, vector<8x256xf32>
    %233 = vector.extract_strided_slice %81 {offsets = [0, 10], sizes = [8, 1], strides = [1, 1]} : vector<8x49xf32> to vector<8x1xf32>
    %234 = vector.broadcast %233 : vector<8x1xf32> to vector<8x256xf32>
    %235 = arith.mulf %232, %234 : vector<8x256xf32>
    %236 = arith.addf %231, %235 : vector<8x256xf32>
    %c0_73 = arith.constant 0 : index
    %c112 = arith.constant 112 : index
    %237 = vector.load %arg11[%c0_73, %c112] : memref<8x512xf32, #tpu.memory_space<vmem>>, vector<8x256xf32>
    %238 = vector.extract_strided_slice %81 {offsets = [0, 17], sizes = [8, 1], strides = [1, 1]} : vector<8x49xf32> to vector<8x1xf32>
    %239 = vector.broadcast %238 : vector<8x1xf32> to vector<8x256xf32>
    %240 = arith.mulf %237, %239 : vector<8x256xf32>
    %241 = arith.addf %236, %240 : vector<8x256xf32>
    %c0_74 = arith.constant 0 : index
    %c128_75 = arith.constant 128 : index
    %242 = vector.load %arg11[%c0_74, %c128_75] : memref<8x512xf32, #tpu.memory_space<vmem>>, vector<8x256xf32>
    %243 = vector.extract_strided_slice %81 {offsets = [0, 24], sizes = [8, 1], strides = [1, 1]} : vector<8x49xf32> to vector<8x1xf32>
    %244 = vector.broadcast %243 : vector<8x1xf32> to vector<8x256xf32>
    %245 = arith.mulf %242, %244 : vector<8x256xf32>
    %246 = arith.addf %241, %245 : vector<8x256xf32>
    %c0_76 = arith.constant 0 : index
    %c144 = arith.constant 144 : index
    %247 = vector.load %arg11[%c0_76, %c144] : memref<8x512xf32, #tpu.memory_space<vmem>>, vector<8x256xf32>
    %248 = vector.extract_strided_slice %81 {offsets = [0, 31], sizes = [8, 1], strides = [1, 1]} : vector<8x49xf32> to vector<8x1xf32>
    %249 = vector.broadcast %248 : vector<8x1xf32> to vector<8x256xf32>
    %250 = arith.mulf %247, %249 : vector<8x256xf32>
    %251 = arith.addf %246, %250 : vector<8x256xf32>
    %c0_77 = arith.constant 0 : index
    %c160 = arith.constant 160 : index
    %252 = vector.load %arg11[%c0_77, %c160] : memref<8x512xf32, #tpu.memory_space<vmem>>, vector<8x256xf32>
    %253 = vector.extract_strided_slice %81 {offsets = [0, 38], sizes = [8, 1], strides = [1, 1]} : vector<8x49xf32> to vector<8x1xf32>
    %254 = vector.broadcast %253 : vector<8x1xf32> to vector<8x256xf32>
    %255 = arith.mulf %252, %254 : vector<8x256xf32>
    %256 = arith.addf %251, %255 : vector<8x256xf32>
    %c0_78 = arith.constant 0 : index
    %c176 = arith.constant 176 : index
    %257 = vector.load %arg11[%c0_78, %c176] : memref<8x512xf32, #tpu.memory_space<vmem>>, vector<8x256xf32>
    %258 = vector.extract_strided_slice %81 {offsets = [0, 45], sizes = [8, 1], strides = [1, 1]} : vector<8x49xf32> to vector<8x1xf32>
    %259 = vector.broadcast %258 : vector<8x1xf32> to vector<8x256xf32>
    %260 = arith.mulf %257, %259 : vector<8x256xf32>
    %261 = arith.addf %256, %260 : vector<8x256xf32>
    %c0_i32_79 = arith.constant 0 : i32
    %262 = vector.broadcast %c0_i32_79 : i32 to vector<1x256xi32>
    %263 = arith.addi %80, %262 : vector<1x256xi32>
    %c0_i32_80 = arith.constant 0 : i32
    %264 = vector.broadcast %c0_i32_80 : i32 to vector<1x256xi32>
    %265 = arith.cmpi sge, %263, %264 : vector<1x256xi32>
    %c0_i32_81 = arith.constant 0 : i32
    %266 = vector.broadcast %c0_i32_81 : i32 to vector<1x256xi32>
    %267 = arith.addi %80, %266 : vector<1x256xi32>
    %c16_i32_82 = arith.constant 16 : i32
    %268 = vector.broadcast %c16_i32_82 : i32 to vector<1x256xi32>
    %269 = arith.cmpi slt, %267, %268 : vector<1x256xi32>
    %270 = arith.andi %265, %269 : vector<1x256xi1>
    %c0_i32_83 = arith.constant 0 : i32
    %271 = arith.sitofp %c0_i32_83 : i32 to f32
    %272 = vector.shape_cast %270 : vector<1x256xi1> to vector<1x256xi1>
    %273 = vector.broadcast %272 : vector<1x256xi1> to vector<8x256xi1>
    %274 = vector.broadcast %271 : f32 to vector<8x256xf32>
    %275 = arith.select %273, %261, %274 : vector<8x256xi1>, vector<8x256xf32>
    %276 = arith.addf %227, %275 : vector<8x256xf32>
    %c0_84 = arith.constant 0 : index
    %c81 = arith.constant 81 : index
    %277 = vector.load %arg11[%c0_84, %c81] : memref<8x512xf32, #tpu.memory_space<vmem>>, vector<8x256xf32>
    %278 = vector.extract_strided_slice %81 {offsets = [0, 4], sizes = [8, 1], strides = [1, 1]} : vector<8x49xf32> to vector<8x1xf32>
    %279 = vector.broadcast %278 : vector<8x1xf32> to vector<8x256xf32>
    %280 = arith.mulf %277, %279 : vector<8x256xf32>
    %c0_85 = arith.constant 0 : index
    %c97 = arith.constant 97 : index
    %281 = vector.load %arg11[%c0_85, %c97] : memref<8x512xf32, #tpu.memory_space<vmem>>, vector<8x256xf32>
    %282 = vector.extract_strided_slice %81 {offsets = [0, 11], sizes = [8, 1], strides = [1, 1]} : vector<8x49xf32> to vector<8x1xf32>
    %283 = vector.broadcast %282 : vector<8x1xf32> to vector<8x256xf32>
    %284 = arith.mulf %281, %283 : vector<8x256xf32>
    %285 = arith.addf %280, %284 : vector<8x256xf32>
    %c0_86 = arith.constant 0 : index
    %c113 = arith.constant 113 : index
    %286 = vector.load %arg11[%c0_86, %c113] : memref<8x512xf32, #tpu.memory_space<vmem>>, vector<8x256xf32>
    %287 = vector.extract_strided_slice %81 {offsets = [0, 18], sizes = [8, 1], strides = [1, 1]} : vector<8x49xf32> to vector<8x1xf32>
    %288 = vector.broadcast %287 : vector<8x1xf32> to vector<8x256xf32>
    %289 = arith.mulf %286, %288 : vector<8x256xf32>
    %290 = arith.addf %285, %289 : vector<8x256xf32>
    %c0_87 = arith.constant 0 : index
    %c129 = arith.constant 129 : index
    %291 = vector.load %arg11[%c0_87, %c129] : memref<8x512xf32, #tpu.memory_space<vmem>>, vector<8x256xf32>
    %292 = vector.extract_strided_slice %81 {offsets = [0, 25], sizes = [8, 1], strides = [1, 1]} : vector<8x49xf32> to vector<8x1xf32>
    %293 = vector.broadcast %292 : vector<8x1xf32> to vector<8x256xf32>
    %294 = arith.mulf %291, %293 : vector<8x256xf32>
    %295 = arith.addf %290, %294 : vector<8x256xf32>
    %c0_88 = arith.constant 0 : index
    %c145 = arith.constant 145 : index
    %296 = vector.load %arg11[%c0_88, %c145] : memref<8x512xf32, #tpu.memory_space<vmem>>, vector<8x256xf32>
    %297 = vector.extract_strided_slice %81 {offsets = [0, 32], sizes = [8, 1], strides = [1, 1]} : vector<8x49xf32> to vector<8x1xf32>
    %298 = vector.broadcast %297 : vector<8x1xf32> to vector<8x256xf32>
    %299 = arith.mulf %296, %298 : vector<8x256xf32>
    %300 = arith.addf %295, %299 : vector<8x256xf32>
    %c0_89 = arith.constant 0 : index
    %c161 = arith.constant 161 : index
    %301 = vector.load %arg11[%c0_89, %c161] : memref<8x512xf32, #tpu.memory_space<vmem>>, vector<8x256xf32>
    %302 = vector.extract_strided_slice %81 {offsets = [0, 39], sizes = [8, 1], strides = [1, 1]} : vector<8x49xf32> to vector<8x1xf32>
    %303 = vector.broadcast %302 : vector<8x1xf32> to vector<8x256xf32>
    %304 = arith.mulf %301, %303 : vector<8x256xf32>
    %305 = arith.addf %300, %304 : vector<8x256xf32>
    %c0_90 = arith.constant 0 : index
    %c177 = arith.constant 177 : index
    %306 = vector.load %arg11[%c0_90, %c177] : memref<8x512xf32, #tpu.memory_space<vmem>>, vector<8x256xf32>
    %307 = vector.extract_strided_slice %81 {offsets = [0, 46], sizes = [8, 1], strides = [1, 1]} : vector<8x49xf32> to vector<8x1xf32>
    %308 = vector.broadcast %307 : vector<8x1xf32> to vector<8x256xf32>
    %309 = arith.mulf %306, %308 : vector<8x256xf32>
    %310 = arith.addf %305, %309 : vector<8x256xf32>
    %c1_i32_91 = arith.constant 1 : i32
    %311 = vector.broadcast %c1_i32_91 : i32 to vector<1x256xi32>
    %312 = arith.addi %80, %311 : vector<1x256xi32>
    %c0_i32_92 = arith.constant 0 : i32
    %313 = vector.broadcast %c0_i32_92 : i32 to vector<1x256xi32>
    %314 = arith.cmpi sge, %312, %313 : vector<1x256xi32>
    %c1_i32_93 = arith.constant 1 : i32
    %315 = vector.broadcast %c1_i32_93 : i32 to vector<1x256xi32>
    %316 = arith.addi %80, %315 : vector<1x256xi32>
    %c16_i32_94 = arith.constant 16 : i32
    %317 = vector.broadcast %c16_i32_94 : i32 to vector<1x256xi32>
    %318 = arith.cmpi slt, %316, %317 : vector<1x256xi32>
    %319 = arith.andi %314, %318 : vector<1x256xi1>
    %c0_i32_95 = arith.constant 0 : i32
    %320 = arith.sitofp %c0_i32_95 : i32 to f32
    %321 = vector.shape_cast %319 : vector<1x256xi1> to vector<1x256xi1>
    %322 = vector.broadcast %321 : vector<1x256xi1> to vector<8x256xi1>
    %323 = vector.broadcast %320 : f32 to vector<8x256xf32>
    %324 = arith.select %322, %310, %323 : vector<8x256xi1>, vector<8x256xf32>
    %325 = arith.addf %276, %324 : vector<8x256xf32>
    %c0_96 = arith.constant 0 : index
    %c82 = arith.constant 82 : index
    %326 = vector.load %arg11[%c0_96, %c82] : memref<8x512xf32, #tpu.memory_space<vmem>>, vector<8x256xf32>
    %327 = vector.extract_strided_slice %81 {offsets = [0, 5], sizes = [8, 1], strides = [1, 1]} : vector<8x49xf32> to vector<8x1xf32>
    %328 = vector.broadcast %327 : vector<8x1xf32> to vector<8x256xf32>
    %329 = arith.mulf %326, %328 : vector<8x256xf32>
    %c0_97 = arith.constant 0 : index
    %c98 = arith.constant 98 : index
    %330 = vector.load %arg11[%c0_97, %c98] : memref<8x512xf32, #tpu.memory_space<vmem>>, vector<8x256xf32>
    %331 = vector.extract_strided_slice %81 {offsets = [0, 12], sizes = [8, 1], strides = [1, 1]} : vector<8x49xf32> to vector<8x1xf32>
    %332 = vector.broadcast %331 : vector<8x1xf32> to vector<8x256xf32>
    %333 = arith.mulf %330, %332 : vector<8x256xf32>
    %334 = arith.addf %329, %333 : vector<8x256xf32>
    %c0_98 = arith.constant 0 : index
    %c114 = arith.constant 114 : index
    %335 = vector.load %arg11[%c0_98, %c114] : memref<8x512xf32, #tpu.memory_space<vmem>>, vector<8x256xf32>
    %336 = vector.extract_strided_slice %81 {offsets = [0, 19], sizes = [8, 1], strides = [1, 1]} : vector<8x49xf32> to vector<8x1xf32>
    %337 = vector.broadcast %336 : vector<8x1xf32> to vector<8x256xf32>
    %338 = arith.mulf %335, %337 : vector<8x256xf32>
    %339 = arith.addf %334, %338 : vector<8x256xf32>
    %c0_99 = arith.constant 0 : index
    %c130 = arith.constant 130 : index
    %340 = vector.load %arg11[%c0_99, %c130] : memref<8x512xf32, #tpu.memory_space<vmem>>, vector<8x256xf32>
    %341 = vector.extract_strided_slice %81 {offsets = [0, 26], sizes = [8, 1], strides = [1, 1]} : vector<8x49xf32> to vector<8x1xf32>
    %342 = vector.broadcast %341 : vector<8x1xf32> to vector<8x256xf32>
    %343 = arith.mulf %340, %342 : vector<8x256xf32>
    %344 = arith.addf %339, %343 : vector<8x256xf32>
    %c0_100 = arith.constant 0 : index
    %c146 = arith.constant 146 : index
    %345 = vector.load %arg11[%c0_100, %c146] : memref<8x512xf32, #tpu.memory_space<vmem>>, vector<8x256xf32>
    %346 = vector.extract_strided_slice %81 {offsets = [0, 33], sizes = [8, 1], strides = [1, 1]} : vector<8x49xf32> to vector<8x1xf32>
    %347 = vector.broadcast %346 : vector<8x1xf32> to vector<8x256xf32>
    %348 = arith.mulf %345, %347 : vector<8x256xf32>
    %349 = arith.addf %344, %348 : vector<8x256xf32>
    %c0_101 = arith.constant 0 : index
    %c162 = arith.constant 162 : index
    %350 = vector.load %arg11[%c0_101, %c162] : memref<8x512xf32, #tpu.memory_space<vmem>>, vector<8x256xf32>
    %351 = vector.extract_strided_slice %81 {offsets = [0, 40], sizes = [8, 1], strides = [1, 1]} : vector<8x49xf32> to vector<8x1xf32>
    %352 = vector.broadcast %351 : vector<8x1xf32> to vector<8x256xf32>
    %353 = arith.mulf %350, %352 : vector<8x256xf32>
    %354 = arith.addf %349, %353 : vector<8x256xf32>
    %c0_102 = arith.constant 0 : index
    %c178 = arith.constant 178 : index
    %355 = vector.load %arg11[%c0_102, %c178] : memref<8x512xf32, #tpu.memory_space<vmem>>, vector<8x256xf32>
    %356 = vector.extract_strided_slice %81 {offsets = [0, 47], sizes = [8, 1], strides = [1, 1]} : vector<8x49xf32> to vector<8x1xf32>
    %357 = vector.broadcast %356 : vector<8x1xf32> to vector<8x256xf32>
    %358 = arith.mulf %355, %357 : vector<8x256xf32>
    %359 = arith.addf %354, %358 : vector<8x256xf32>
    %c2_i32 = arith.constant 2 : i32
    %360 = vector.broadcast %c2_i32 : i32 to vector<1x256xi32>
    %361 = arith.addi %80, %360 : vector<1x256xi32>
    %c0_i32_103 = arith.constant 0 : i32
    %362 = vector.broadcast %c0_i32_103 : i32 to vector<1x256xi32>
    %363 = arith.cmpi sge, %361, %362 : vector<1x256xi32>
    %c2_i32_104 = arith.constant 2 : i32
    %364 = vector.broadcast %c2_i32_104 : i32 to vector<1x256xi32>
    %365 = arith.addi %80, %364 : vector<1x256xi32>
    %c16_i32_105 = arith.constant 16 : i32
    %366 = vector.broadcast %c16_i32_105 : i32 to vector<1x256xi32>
    %367 = arith.cmpi slt, %365, %366 : vector<1x256xi32>
    %368 = arith.andi %363, %367 : vector<1x256xi1>
    %c0_i32_106 = arith.constant 0 : i32
    %369 = arith.sitofp %c0_i32_106 : i32 to f32
    %370 = vector.shape_cast %368 : vector<1x256xi1> to vector<1x256xi1>
    %371 = vector.broadcast %370 : vector<1x256xi1> to vector<8x256xi1>
    %372 = vector.broadcast %369 : f32 to vector<8x256xf32>
    %373 = arith.select %371, %359, %372 : vector<8x256xi1>, vector<8x256xf32>
    %374 = arith.addf %325, %373 : vector<8x256xf32>
    %c0_107 = arith.constant 0 : index
    %c83 = arith.constant 83 : index
    %375 = vector.load %arg11[%c0_107, %c83] : memref<8x512xf32, #tpu.memory_space<vmem>>, vector<8x256xf32>
    %376 = vector.extract_strided_slice %81 {offsets = [0, 6], sizes = [8, 1], strides = [1, 1]} : vector<8x49xf32> to vector<8x1xf32>
    %377 = vector.broadcast %376 : vector<8x1xf32> to vector<8x256xf32>
    %378 = arith.mulf %375, %377 : vector<8x256xf32>
    %c0_108 = arith.constant 0 : index
    %c99 = arith.constant 99 : index
    %379 = vector.load %arg11[%c0_108, %c99] : memref<8x512xf32, #tpu.memory_space<vmem>>, vector<8x256xf32>
    %380 = vector.extract_strided_slice %81 {offsets = [0, 13], sizes = [8, 1], strides = [1, 1]} : vector<8x49xf32> to vector<8x1xf32>
    %381 = vector.broadcast %380 : vector<8x1xf32> to vector<8x256xf32>
    %382 = arith.mulf %379, %381 : vector<8x256xf32>
    %383 = arith.addf %378, %382 : vector<8x256xf32>
    %c0_109 = arith.constant 0 : index
    %c115 = arith.constant 115 : index
    %384 = vector.load %arg11[%c0_109, %c115] : memref<8x512xf32, #tpu.memory_space<vmem>>, vector<8x256xf32>
    %385 = vector.extract_strided_slice %81 {offsets = [0, 20], sizes = [8, 1], strides = [1, 1]} : vector<8x49xf32> to vector<8x1xf32>
    %386 = vector.broadcast %385 : vector<8x1xf32> to vector<8x256xf32>
    %387 = arith.mulf %384, %386 : vector<8x256xf32>
    %388 = arith.addf %383, %387 : vector<8x256xf32>
    %c0_110 = arith.constant 0 : index
    %c131 = arith.constant 131 : index
    %389 = vector.load %arg11[%c0_110, %c131] : memref<8x512xf32, #tpu.memory_space<vmem>>, vector<8x256xf32>
    %390 = vector.extract_strided_slice %81 {offsets = [0, 27], sizes = [8, 1], strides = [1, 1]} : vector<8x49xf32> to vector<8x1xf32>
    %391 = vector.broadcast %390 : vector<8x1xf32> to vector<8x256xf32>
    %392 = arith.mulf %389, %391 : vector<8x256xf32>
    %393 = arith.addf %388, %392 : vector<8x256xf32>
    %c0_111 = arith.constant 0 : index
    %c147 = arith.constant 147 : index
    %394 = vector.load %arg11[%c0_111, %c147] : memref<8x512xf32, #tpu.memory_space<vmem>>, vector<8x256xf32>
    %395 = vector.extract_strided_slice %81 {offsets = [0, 34], sizes = [8, 1], strides = [1, 1]} : vector<8x49xf32> to vector<8x1xf32>
    %396 = vector.broadcast %395 : vector<8x1xf32> to vector<8x256xf32>
    %397 = arith.mulf %394, %396 : vector<8x256xf32>
    %398 = arith.addf %393, %397 : vector<8x256xf32>
    %c0_112 = arith.constant 0 : index
    %c163 = arith.constant 163 : index
    %399 = vector.load %arg11[%c0_112, %c163] : memref<8x512xf32, #tpu.memory_space<vmem>>, vector<8x256xf32>
    %400 = vector.extract_strided_slice %81 {offsets = [0, 41], sizes = [8, 1], strides = [1, 1]} : vector<8x49xf32> to vector<8x1xf32>
    %401 = vector.broadcast %400 : vector<8x1xf32> to vector<8x256xf32>
    %402 = arith.mulf %399, %401 : vector<8x256xf32>
    %403 = arith.addf %398, %402 : vector<8x256xf32>
    %c0_113 = arith.constant 0 : index
    %c179 = arith.constant 179 : index
    %404 = vector.load %arg11[%c0_113, %c179] : memref<8x512xf32, #tpu.memory_space<vmem>>, vector<8x256xf32>
    %405 = vector.extract_strided_slice %81 {offsets = [0, 48], sizes = [8, 1], strides = [1, 1]} : vector<8x49xf32> to vector<8x1xf32>
    %406 = vector.broadcast %405 : vector<8x1xf32> to vector<8x256xf32>
    %407 = arith.mulf %404, %406 : vector<8x256xf32>
    %408 = arith.addf %403, %407 : vector<8x256xf32>
    %c3_i32 = arith.constant 3 : i32
    %409 = vector.broadcast %c3_i32 : i32 to vector<1x256xi32>
    %410 = arith.addi %80, %409 : vector<1x256xi32>
    %c0_i32_114 = arith.constant 0 : i32
    %411 = vector.broadcast %c0_i32_114 : i32 to vector<1x256xi32>
    %412 = arith.cmpi sge, %410, %411 : vector<1x256xi32>
    %c3_i32_115 = arith.constant 3 : i32
    %413 = vector.broadcast %c3_i32_115 : i32 to vector<1x256xi32>
    %414 = arith.addi %80, %413 : vector<1x256xi32>
    %c16_i32_116 = arith.constant 16 : i32
    %415 = vector.broadcast %c16_i32_116 : i32 to vector<1x256xi32>
    %416 = arith.cmpi slt, %414, %415 : vector<1x256xi32>
    %417 = arith.andi %412, %416 : vector<1x256xi1>
    %c0_i32_117 = arith.constant 0 : i32
    %418 = arith.sitofp %c0_i32_117 : i32 to f32
    %419 = vector.shape_cast %417 : vector<1x256xi1> to vector<1x256xi1>
    %420 = vector.broadcast %419 : vector<1x256xi1> to vector<8x256xi1>
    %421 = vector.broadcast %418 : f32 to vector<8x256xf32>
    %422 = arith.select %420, %408, %421 : vector<8x256xi1>, vector<8x256xf32>
    %423 = arith.addf %374, %422 : vector<8x256xf32>
    %cst_118 = arith.constant dense<0.000000e+00> : vector<256xf32>
    %424 = vector.multi_reduction <add>, %423, %cst_118 [0] : vector<8x256xf32> to vector<256xf32>
    %425 = vector.shape_cast %424 : vector<256xf32> to vector<1x256xf32>
    %c0_119 = arith.constant 0 : index
    %426 = memref.load %arg9[%c0_119] : memref<1xf32, #tpu.memory_space<smem>>
    %427 = vector.broadcast %426 : f32 to vector<1x256xf32>
    %428 = arith.addf %425, %427 : vector<1x256xf32>
    %429 = arith.negf %428 : vector<1x256xf32>
    %430 = math.exp %429 : vector<1x256xf32>
    %cst_120 = arith.constant 1.000000e+00 : f32
    %431 = vector.broadcast %cst_120 : f32 to vector<1x256xf32>
    %432 = arith.addf %431, %430 : vector<1x256xf32>
    %433 = arith.divf %431, %432 : vector<1x256xf32>
    %434 = vector.broadcast %433 : vector<1x256xf32> to vector<8x256xf32>
    %435 = arith.mulf %33, %434 : vector<8x256xf32>
    %c0_121 = arith.constant 0 : index
    %c0_122 = arith.constant 0 : index
    %c0_123 = arith.constant 0 : index
    %436 = vector.load %arg10[%c0_121, %c0_122, %c0_123] : memref<1x8x256xf32, #tpu.memory_space<vmem>>, vector<1x8x256xf32>
    %437 = vector.shape_cast %436 : vector<1x8x256xf32> to vector<8x256xf32>
    %438 = vector.shape_cast %435 : vector<8x256xf32> to vector<1x8x256xf32>
    tpu.vector_store %arg10[%c0_121, %c0_122, %c0_123], %438 {strides = array<i32>} : memref<1x8x256xf32, #tpu.memory_space<vmem>>, vector<1x8x256xf32>,
    return
  }
  func.func @transform_0(%arg0: i32) -> (i32, i32, i32) {
    %c0_i32 = arith.constant 0 : i32
    %c0_i32_0 = arith.constant 0 : i32
    %c0_i32_1 = arith.constant 0 : i32
    return %arg0, %c0_i32, %c0_i32_0 : i32, i32, i32
  }
  func.func @transform_1(%arg0: i32) -> (i32, i32) {
    %c0_i32 = arith.constant 0 : i32
    %c0_i32_0 = arith.constant 0 : i32
    %c0_i32_1 = arith.constant 0 : i32
    return %c0_i32, %c0_i32_0 : i32, i32
  }
  func.func @transform_2(%arg0: i32) -> (i32, i32) {
    %c0_i32 = arith.constant 0 : i32
    %c0_i32_0 = arith.constant 0 : i32
    %c0_i32_1 = arith.constant 0 : i32
    return %c0_i32, %c0_i32_0 : i32, i32
  }
  func.func @transform_3(%arg0: i32) -> (i32, i32) {
    %c0_i32 = arith.constant 0 : i32
    %c0_i32_0 = arith.constant 0 : i32
    %c0_i32_1 = arith.constant 0 : i32
    return %c0_i32, %c0_i32_0 : i32, i32
  }
  func.func @transform_4(%arg0: i32) -> (i32, i32) {
    %c0_i32 = arith.constant 0 : i32
    %c0_i32_0 = arith.constant 0 : i32
    %c0_i32_1 = arith.constant 0 : i32
    return %c0_i32, %c0_i32_0 : i32, i32
  }
  func.func @transform_5(%arg0: i32) -> (i32, i32) {
    %c0_i32 = arith.constant 0 : i32
    %c0_i32_0 = arith.constant 0 : i32
    %c0_i32_1 = arith.constant 0 : i32
    return %c0_i32, %c0_i32_0 : i32, i32
  }
  func.func @transform_6(%arg0: i32) -> (i32, i32) {
    %c0_i32 = arith.constant 0 : i32
    %c0_i32_0 = arith.constant 0 : i32
    %c0_i32_1 = arith.constant 0 : i32
    return %c0_i32, %c0_i32_0 : i32, i32
  }
  func.func @transform_7(%arg0: i32) -> (i32, i32) {
    %c0_i32 = arith.constant 0 : i32
    %c0_i32_0 = arith.constant 0 : i32
    %c0_i32_1 = arith.constant 0 : i32
    return %c0_i32, %c0_i32_0 : i32, i32
  }
  func.func @transform_8(%arg0: i32) -> i32 {
    %c0_i32 = arith.constant 0 : i32
    %c0_i32_0 = arith.constant 0 : i32
    return %c0_i32 : i32
  }
  func.func @transform_9(%arg0: i32) -> (i32, i32, i32) {
    %c0_i32 = arith.constant 0 : i32
    %c0_i32_0 = arith.constant 0 : i32
    %c0_i32_1 = arith.constant 0 : i32
    return %arg0, %c0_i32, %c0_i32_0 : i32, i32, i32
  }
}

</mosaic_0001>

<bundles_post_ra>
// kernel: ca_cbam_pallas.1
= control target key start
LH: loop header
LB: loop body
LE: loop exit
PB: predicated region body
PF: predicated region fallthrough
CT: control target
= control target key end

     0   :  { %s4911_s11 = smov 0   ;;  %s7413_s0 = inlined_call_operand.vmem [shape: f32[2,8,256], index: 0, kind: input, shape index: {}]   ;;  %s7414_s1 = inlined_call_operand.vmem [shape: f32[24,8], index: 1, kind: input, shape index: {}]   ;;  %s7415_s2 = inlined_call_operand.vmem [shape: f32[8,8], index: 2, kind: input, shape index: {}]   ;;  %s7416_s3 = inlined_call_operand.vmem [shape: f32[8,1], index: 3, kind: input, shape index: {}]   ;;  %s7417_s4 = inlined_call_operand.vmem [shape: f32[24,8], index: 4, kind: input, shape index: {}]   ;;  %s7418_s5 = inlined_call_operand.vmem [shape: f32[8,8], index: 5, kind: input, shape index: {}]   ;;  %s7419_s6 = inlined_call_operand.vmem [shape: f32[8,1], index: 6, kind: input, shape index: {}]   ;;  %s7420_s7 = inlined_call_operand.vmem [shape: f32[8,49], index: 7, kind: input, shape index: {}]   ;;  %s7421_s8 = inlined_call_operand.<no memory space> [shape: f32[1], index: 8, kind: input, shape index: {}]   ;;  %s7422_s9 = inlined_call_operand.vmem [shape: f32[2,8,256], index: 9, kind: output, shape index: {}]  }
   0x1   :  { %14 = sst [smem:[#allocation3]] %s7421_s8 }
   0x2 LB: > { %s4104_s12 = sadd.s32 4294967295, %s4795_s11   ;;  %p4108_p0 = scmp.ge.s32.totalorder %s4795_s11, 1  ;;  %s4795_s11 = sphi %s4911_s11, %s20_s11  }
   0x3   : > { %p288_p1 = scmp.lt.s32.totalorder %s4795_s11, 3 }
   0x5   : > { %p289_p2 = pnand %p4108_p0, %p288_p1 }
   0x7   : > { %292 = sbr.rel (%p289_p2) target bundleno = 3709 (0xe7d), region = 56 }
   0xc   : > { %p324_p3 = scmp.lt.s32.totalorder %s4104_s12, 1  ;;  %v336_v0 = vld [vmem:[%s7414_s1] sm:$0xff]  ;;  %vm341_vm0 = vcmask 64512   ;;  %v337_v3 = vld [vmem:[%s7414_s1 + $0x8] sm:$0xff]  ;;  %s4800_s28 = smov 112   ;;  %vm2748_vm9 = vcmask 916480  }
   0xd   : > { %s4803_s29 = smov 96   ;;  %s4805_s30 = smov 48   ;;  %vm2773_vm10 = vcmask 785408   ;;  %vm2851_vm11 = vcmask 392192   ;;  %vm2826_vm12 = vcmask 523264   ;;  %vm2798_vm13 = vcmask 654336  }
   0xe   : > { %s7896_s12 = smov (!%p324_p3, %s4104_s12), 1  ;;  %s4806_s10 = smov 80   ;;  %vm2876_vm14 = vcmask 261120   ;;  %vm2906_vm15 = vcmask 416768  }
   0xf   : > { %s4263_s8 = sshll.u32 %s7896_s12, 4  ;;  %s4809_s16 = smov 64  }
  0x10   : > { %s4927_s15 = scalar_lea.vmem %s7413_s0, %s4263_s8  ;;  %s4811_s19 = smov 32  }
  0x11   : > { %v334_v1 = vld [vmem:[%s4927_s15] sm:$0xff]  ;;  %v335_v2 = vld [vmem:[%s4927_s15 + $0x8] sm:$0xff]  ;;  %s4852_s27 = smov 51   ;;  %s4853_s13 = smov 50  }
  0x12   : > { %366 = vmatpush.msra.mxu0 %v334_v1  ;;  %392 = vmatpush.msra.mxu1 %v335_v2  ;;  %s4854_s14 = smov 49   ;;  %s4855_s17 = smov 47  }
  0x13   : > { %4113 = vmatmul.msk.f32.vlgmr.msra.gmra.mxu0 %vm341_vm0, %v336_v0  ;;  %4116 = vmatmul.msk.f32.vlgmr.msra.gmra.mxu1 %vm341_vm0, %v336_v0  ;;  %s333_s18 = scalar_lea.vmem %s7422_s9, %s4263_s8 }
  0x1b   : > { %4114 = vmatmul.msk.f32.gmra.mxu0 %vm341_vm0, %v337_v3  ;;  %4117 = vmatmul.msk.f32.gmra.mxu1 %vm341_vm0, %v337_v3 }
  0x90   : > { %v368_v4 = vpop.f32.mrf.mxu0  ;;  %v394_v5 = vpop.f32.mrf.mxu1 }
  0x91   : > { %403 = vxpose.xlu0.b32.start.end [1/1] (short) %v368_v4, 128 }
  0x98   : > { %v371_v6 = vpop.f32.mrf.mxu0  ;;  %v397_v7 = vpop.f32.mrf.mxu1 }
  0x99   : > { %578 = vmatpush.msra.mxu2 %v371_v6  ;;  %691 = vmatpush.msra.mxu3 %v397_v7 }
 0x111   : > { %435 = vxpose.xlu0.b32.start.end [1/1] (short) %v394_v5, 128 }
 0x135   : > { %v419_v8 = vpop.trf.xlu0 }
 0x136   : > { %4119 = vmatmul.msk.f32.vlgmr.msra.gmra.mxu2 %vm341_vm0, %v419_v8  ;;  %4151 = vmatmul.msk.f32.vlgmr.msra.gmra.mxu3 %vm341_vm0, %v419_v8 }
 0x13d   : > { %v420_v9 = vpop.trf.xlu0 }
 0x13e   : > { %4120 = vmatmul.msk.f32.gmra.mxu2 %vm341_vm0, %v420_v9  ;;  %4152 = vmatmul.msk.f32.gmra.mxu3 %vm341_vm0, %v420_v9 }
 0x145   : > { %v421_v10 = vpop.trf.xlu0 }
 0x146   : > { %4121 = vmatmul.msk.f32.gmra.mxu2 %vm341_vm0, %v421_v10  ;;  %4153 = vmatmul.msk.f32.gmra.mxu3 %vm341_vm0, %v421_v10 }
 0x14d   : > { %v422_v11 = vpop.trf.xlu0 }
 0x14e   : > { %4122 = vmatmul.msk.f32.gmra.mxu2 %vm341_vm0, %v422_v11  ;;  %4154 = vmatmul.msk.f32.gmra.mxu3 %vm341_vm0, %v422_v11 }
 0x155   : > { %v423_v12 = vpop.trf.xlu0 }
 0x156   : > { %4123 = vmatmul.msk.f32.gmra.mxu2 %vm341_vm0, %v423_v12  ;;  %4155 = vmatmul.msk.f32.gmra.mxu3 %vm341_vm0, %v423_v12 }
 0x15d   : > { %v424_v13 = vpop.trf.xlu0 }
 0x15e   : > { %4124 = vmatmul.msk.f32.gmra.mxu2 %vm341_vm0, %v424_v13  ;;  %4156 = vmatmul.msk.f32.gmra.mxu3 %vm341_vm0, %v424_v13 }
 0x165   : > { %v425_v14 = vpop.trf.xlu0 }
 0x166   : > { %4125 = vmatmul.msk.f32.gmra.mxu2 %vm341_vm0, %v425_v14  ;;  %4157 = vmatmul.msk.f32.gmra.mxu3 %vm341_vm0, %v425_v14 }
 0x16d   : > { %v426_v15 = vpop.trf.xlu0 }
 0x16e   : > { %4126 = vmatmul.msk.f32.gmra.mxu2 %vm341_vm0, %v426_v15  ;;  %4158 = vmatmul.msk.f32.gmra.mxu3 %vm341_vm0, %v426_v15 }
 0x175   : > { %v427_v16 = vpop.trf.xlu0 }
 0x176   : > { %4127 = vmatmul.msk.f32.gmra.mxu2 %vm341_vm0, %v427_v16  ;;  %4159 = vmatmul.msk.f32.gmra.mxu3 %vm341_vm0, %v427_v16 }
 0x17d   : > { %v428_v17 = vpop.trf.xlu0 }
 0x17e   : > { %4128 = vmatmul.msk.f32.gmra.mxu2 %vm341_vm0, %v428_v17  ;;  %4160 = vmatmul.msk.f32.gmra.mxu3 %vm341_vm0, %v428_v17 }
 0x185   : > { %v429_v18 = vpop.trf.xlu0 }
 0x186   : > { %4129 = vmatmul.msk.f32.gmra.mxu2 %vm341_vm0, %v429_v18  ;;  %4161 = vmatmul.msk.f32.gmra.mxu3 %vm341_vm0, %v429_v18 }
 0x18d   : > { %v430_v19 = vpop.trf.xlu0 }
 0x18e   : > { %4130 = vmatmul.msk.f32.gmra.mxu2 %vm341_vm0, %v430_v19  ;;  %4162 = vmatmul.msk.f32.gmra.mxu3 %vm341_vm0, %v430_v19 }
 0x195   : > { %v431_v20 = vpop.trf.xlu0 }
 0x196   : > { %4131 = vmatmul.msk.f32.gmra.mxu2 %vm341_vm0, %v431_v20  ;;  %4163 = vmatmul.msk.f32.gmra.mxu3 %vm341_vm0, %v431_v20 }
 0x19d   : > { %v432_v21 = vpop.trf.xlu0 }
 0x19e   : > { %4132 = vmatmul.msk.f32.gmra.mxu2 %vm341_vm0, %v432_v21  ;;  %4164 = vmatmul.msk.f32.gmra.mxu3 %vm341_vm0, %v432_v21 }
 0x1a5   : > { %v433_v22 = vpop.trf.xlu0 }
 0x1a6   : > { %4133 = vmatmul.msk.f32.gmra.mxu2 %vm341_vm0, %v433_v22  ;;  %4165 = vmatmul.msk.f32.gmra.mxu3 %vm341_vm0, %v433_v22 }
 0x1ad   : > { %v434_v23 = vpop.trf.xlu0 }
 0x1ae   : > { %4134 = vmatmul.msk.f32.gmra.mxu2 %vm341_vm0, %v434_v23  ;;  %4166 = vmatmul.msk.f32.gmra.mxu3 %vm341_vm0, %v434_v23 }
 0x1b5   : > { %v451_v24 = vpop.trf.xlu0 }
 0x1b6   : > { %4135 = vmatmul.msk.f32.gmra.mxu2 %vm341_vm0, %v451_v24  ;;  %4167 = vmatmul.msk.f32.gmra.mxu3 %vm341_vm0, %v451_v24 }
 0x1b9   : > { %v4975_v25 = vpop.f32.mrf.mxu2  ;;  %v4977_v26 = vpop.f32.mrf.mxu3 }
 0x1ba   : > { %7567 = vst [vmem:[#allocation4_spill] sm:$0xff] %v4975_v25  ;;  %v789_v27 = vmax.f32 %v4975_v25, %v4977_v26 }
 0x1bb   : > { %7568 = vst [vmem:[#allocation5_spill] sm:$0xff] %v4977_v26 }
 0x1bc   : > { %790 = vmax.xlane.f32.xlu2 %v789_v27 }
 0x1bd   : > { %v452_v28 = vpop.trf.xlu0 }
 0x1be   : > { %4136 = vmatmul.msk.f32.gmra.mxu2 %vm341_vm0, %v452_v28  ;;  %4168 = vmatmul.msk.f32.gmra.mxu3 %vm341_vm0, %v452_v28 }
 0x1c1   : > { %v4983_v29 = vpop.f32.mrf.mxu2  ;;  %v4985_v30 = vpop.f32.mrf.mxu3 }
 0x1c2   : > { %7569 = vst [vmem:[#allocation6_spill] sm:$0xff] %v4983_v29  ;;  %v792_v31 = vmax.f32 %v4983_v29, %v4985_v30 }
 0x1c3   : > { %7570 = vst [vmem:[#allocation7_spill] sm:$0xff] %v4985_v30 }
 0x1c4   : > { %793 = vmax.xlane.f32.xlu1 %v792_v31 }
 0x1c5   : > { %v453_v32 = vpop.trf.xlu0 }
 0x1c6   : > { %4137 = vmatmul.msk.f32.gmra.mxu2 %vm341_vm0, %v453_v32  ;;  %4169 = vmatmul.msk.f32.gmra.mxu3 %vm341_vm0, %v453_v32 }
 0x1c9   : > { %v4991_v33 = vpop.f32.mrf.mxu2  ;;  %v4993_v34 = vpop.f32.mrf.mxu3 }
 0x1ca   : > { %7571 = vst [vmem:[#allocation8_spill] sm:$0xff] %v4991_v33  ;;  %v795_v35 = vmax.f32 %v4991_v33, %v4993_v34 }
 0x1cb   : > { %7572 = vst [vmem:[#allocation9_spill] sm:$0xff] %v4993_v34 }
 0x1cc   : > { %796 = vmax.xlane.f32.xlu2 %v795_v35 }
 0x1cd   : > { %v454_v36 = vpop.trf.xlu0 }
 0x1ce   : > { %4138 = vmatmul.msk.f32.gmra.mxu2 %vm341_vm0, %v454_v36  ;;  %4170 = vmatmul.msk.f32.gmra.mxu3 %vm341_vm0, %v454_v36 }
 0x1d1   : > { %v4999_v37 = vpop.f32.mrf.mxu2  ;;  %v5001_v38 = vpop.f32.mrf.mxu3 }
 0x1d2   : > { %7573 = vst [vmem:[#allocation10_spill] sm:$0xff] %v4999_v37  ;;  %v798_v39 = vmax.f32 %v4999_v37, %v5001_v38 }
 0x1d3   : > { %7574 = vst [vmem:[#allocation11_spill] sm:$0xff] %v5001_v38 }
 0x1d4   : > { %799 = vmax.xlane.f32.xlu2 %v798_v39 }
 0x1d5   : > { %v455_v40 = vpop.trf.xlu0 }
 0x1d6   : > { %4139 = vmatmul.msk.f32.gmra.mxu2 %vm341_vm0, %v455_v40  ;;  %4171 = vmatmul.msk.f32.gmra.mxu3 %vm341_vm0, %v455_v40 }
 0x1d9   : > { %v5007_v41 = vpop.f32.mrf.mxu2  ;;  %v5009_v42 = vpop.f32.mrf.mxu3 }
 0x1da   : > { %7575 = vst [vmem:[#allocation12_spill] sm:$0xff] %v5007_v41  ;;  %v801_v43 = vmax.f32 %v5007_v41, %v5009_v42 }
 0x1db   : > { %7576 = vst [vmem:[#allocation13_spill] sm:$0xff] %v5009_v42 }
 0x1dc   : > { %802 = vmax.xlane.f32.xlu2 %v801_v43 }
 0x1dd   : > { %v456_v44 = vpop.trf.xlu0 }
 0x1de   : > { %4140 = vmatmul.msk.f32.gmra.mxu2 %vm341_vm0, %v456_v44  ;;  %4172 = vmatmul.msk.f32.gmra.mxu3 %vm341_vm0, %v456_v44 }
 0x1e1   : > { %v5015_v45 = vpop.f32.mrf.mxu2  ;;  %v5017_v46 = vpop.f32.mrf.mxu3 }
 0x1e2   : > { %7577 = vst [vmem:[#allocation14_spill] sm:$0xff] %v5017_v46  ;;  %v804_v47 = vmax.f32 %v5015_v45, %v5017_v46 }
 0x1e4   : > { %805 = vmax.xlane.f32.xlu2 %v804_v47 }
 0x1e5   : > { %v457_v48 = vpop.trf.xlu0 }
 0x1e6   : > { %4141 = vmatmul.msk.f32.gmra.mxu2 %vm341_vm0, %v457_v48  ;;  %4173 = vmatmul.msk.f32.gmra.mxu3 %vm341_vm0, %v457_v48 }
 0x1e9   : > { %v5023_v49 = vpop.f32.mrf.mxu2  ;;  %v5025_v50 = vpop.f32.mrf.mxu3 }
 0x1ea   : > { %v807_v51 = vmax.f32 %v5023_v49, %v5025_v50 }
 0x1ec   : > { %808 = vmax.xlane.f32.xlu2 %v807_v51 }
 0x1ed   : > { %v458_v52 = vpop.trf.xlu0 }
 0x1ee   : > { %4142 = vmatmul.msk.f32.gmra.mxu2 %vm341_vm0, %v458_v52  ;;  %4174 = vmatmul.msk.f32.gmra.mxu3 %vm341_vm0, %v458_v52 }
 0x1f1   : > { %v5031_v53 = vpop.f32.mrf.mxu2  ;;  %v5033_v54 = vpop.f32.mrf.mxu3 }
 0x1f2   : > { %v810_v55 = vmax.f32 %v5031_v53, %v5033_v54 }
 0x1f4   : > { %811 = vmax.xlane.f32.xlu2 %v810_v55 }
 0x1f5   : > { %v459_v56 = vpop.trf.xlu0 }
 0x1f6   : > { %4143 = vmatmul.msk.f32.gmra.mxu2 %vm341_vm0, %v459_v56  ;;  %4175 = vmatmul.msk.f32.gmra.mxu3 %vm341_vm0, %v459_v56 }
 0x1f9   : > { %v5039_v57 = vpop.f32.mrf.mxu2  ;;  %v5041_v58 = vpop.f32.mrf.mxu3 }
 0x1fa   : > { %v813_v59 = vmax.f32 %v5039_v57, %v5041_v58 }
 0x1fc   : > { %814 = vmax.xlane.f32.xlu2 %v813_v59 }
 0x1fd   : > { %v460_v60 = vpop.trf.xlu0 }
 0x1fe   : > { %4144 = vmatmul.msk.f32.gmra.mxu2 %vm341_vm0, %v460_v60  ;;  %4176 = vmatmul.msk.f32.gmra.mxu3 %vm341_vm0, %v460_v60 }
 0x201   : > { %v5047_v61 = vpop.f32.mrf.mxu2  ;;  %v5049_v62 = vpop.f32.mrf.mxu3 }
 0x202   : > { %v816_v63 = vmax.f32 %v5047_v61, %v5049_v62 }
 0x204   : > { %817 = vmax.xlane.f32.xlu2 %v816_v63 }
 0x205   : > { %v461_v0 = vpop.trf.xlu0 }
 0x206   : > { %4145 = vmatmul.msk.f32.gmra.mxu2 %vm341_vm0, %v461_v0  ;;  %4177 = vmatmul.msk.f32.gmra.mxu3 %vm341_vm0, %v461_v0 }
 0x209   : > { %v5055_v1 = vpop.f32.mrf.mxu2  ;;  %v5057_v2 = vpop.f32.mrf.mxu3 }
 0x20a   : > { %v819_v3 = vmax.f32 %v5055_v1, %v5057_v2 }
 0x20c   : > { %820 = vmax.xlane.f32.xlu2 %v819_v3 }
 0x20d   : > { %v462_v4 = vpop.trf.xlu0 }
 0x20e   : > { %4146 = vmatmul.msk.f32.gmra.mxu2 %vm341_vm0, %v462_v4  ;;  %4178 = vmatmul.msk.f32.gmra.mxu3 %vm341_vm0, %v462_v4 }
 0x211   : > { %v5063_v5 = vpop.f32.mrf.mxu2  ;;  %v5065_v6 = vpop.f32.mrf.mxu3 }
 0x212   : > { %v822_v7 = vmax.f32 %v5063_v5, %v5065_v6 }
 0x214   : > { %823 = vmax.xlane.f32.xlu2 %v822_v7 }
 0x215   : > { %v463_v8 = vpop.trf.xlu0 }
 0x216   : > { %4147 = vmatmul.msk.f32.gmra.mxu2 %vm341_vm0, %v463_v8  ;;  %4179 = vmatmul.msk.f32.gmra.mxu3 %vm341_vm0, %v463_v8 }
 0x219   : > { %v5071_v9 = vpop.f32.mrf.mxu2  ;;  %v5073_v10 = vpop.f32.mrf.mxu3 }
 0x21a   : > { %v825_v11 = vmax.f32 %v5071_v9, %v5073_v10 }
 0x21c   : > { %826 = vmax.xlane.f32.xlu2 %v825_v11 }
 0x21d   : > { %v464_v12 = vpop.trf.xlu0 }
 0x21e   : > { %4148 = vmatmul.msk.f32.gmra.mxu2 %vm341_vm0, %v464_v12  ;;  %4180 = vmatmul.msk.f32.gmra.mxu3 %vm341_vm0, %v464_v12 }
 0x221   : > { %v5079_v13 = vpop.f32.mrf.mxu2  ;;  %v5081_v14 = vpop.f32.mrf.mxu3 }
 0x222   : > { %v828_v15 = vmax.f32 %v5079_v13, %v5081_v14 }
 0x224   : > { %829 = vmax.xlane.f32.xlu2 %v828_v15 }
 0x225   : > { %v465_v16 = vpop.trf.xlu0 }
 0x226   : > { %4149 = vmatmul.msk.f32.gmra.mxu2 %vm341_vm0, %v465_v16  ;;  %4181 = vmatmul.msk.f32.gmra.mxu3 %vm341_vm0, %v465_v16 }
 0x229   : > { %v5087_v17 = vpop.f32.mrf.mxu2  ;;  %v5089_v18 = vpop.f32.mrf.mxu3 }
 0x22a   : > { %v831_v19 = vmax.f32 %v5087_v17, %v5089_v18 }
 0x22c   : > { %832 = vmax.xlane.f32.xlu1 %v831_v19 }
 0x22d   : > { %v466_v20 = vpop.trf.xlu0 }
 0x22e   : > { %4150 = vmatmul.msk.f32.gmra.mxu2 %vm341_vm0, %v466_v20  ;;  %4182 = vmatmul.msk.f32.gmra.mxu3 %vm341_vm0, %v466_v20 }
 0x22f   : > { %v5101_v24 = vpop.xlane.xlu2 %790 }
 0x230   : > { %7578 = vst [vmem:[#allocation15_spill] sm:$0xff] %v5101_v24 }
 0x231   : > { %v5095_v21 = vpop.f32.mrf.mxu2  ;;  %v5097_v22 = vpop.f32.mrf.mxu3 }
 0x232   : > { %v834_v23 = vmax.f32 %v5095_v21, %v5097_v22 }
 0x234   : > { %835 = vmax.xlane.f32.xlu1 %v834_v23 }
 0x237   : > { %v5193_v33 = vpop.xlane.xlu1 %793 }
 0x238   : > { %7596 = vst [vmem:[#allocation33_spill] sm:$0xff] %v5193_v33 }
 0x239   : > { %v5103_v27 = vpop.f32.mrf.mxu2  ;;  %v5105_v28 = vpop.f32.mrf.mxu3 }
 0x23a   : > { %7579 = vst [vmem:[#allocation16_spill] sm:$0xff] %v5103_v27 }
 0x23b   : > { %7580 = vst [vmem:[#allocation17_spill] sm:$0xff] %v5105_v28 }
 0x23f   : > { %v5107_v31 = vpop.xlane.xlu2 %796 }
 0x240   : > { %7581 = vst [vmem:[#allocation18_spill] sm:$0xff] %v5107_v31 }
 0x241   : > { %v5109_v32 = vpop.f32.mrf.mxu2  ;;  %v5111_v35 = vpop.f32.mrf.mxu3 }
 0x242   : > { %7582 = vst [vmem:[#allocation19_spill] sm:$0xff] %v5109_v32 }
 0x243   : > { %7583 = vst [vmem:[#allocation20_spill] sm:$0xff] %v5111_v35 }
 0x247   : > { %v5113_v36 = vpop.xlane.xlu2 %799 }
 0x248   : > { %7584 = vst [vmem:[#allocation21_spill] sm:$0xff] %v5113_v36 }
 0x249   : > { %v5115_v39 = vpop.f32.mrf.mxu2  ;;  %v5117_v40 = vpop.f32.mrf.mxu3 }
 0x24a   : > { %7585 = vst [vmem:[#allocation22_spill] sm:$0xff] %v5115_v39  ;;  %v843_v43 = vmax.f32 %v5115_v39, %v5117_v40 }
 0x24b   : > { %7586 = vst [vmem:[#allocation23_spill] sm:$0xff] %v5117_v40 }
 0x24c   : > { %844 = vmax.xlane.f32.xlu1 %v843_v43 }
 0x24f   : > { %v5121_v44 = vpop.xlane.xlu2 %802 }
 0x250   : > { %7587 = vst [vmem:[#allocation24_spill] sm:$0xff] %v5121_v44 }
 0x251   : > { %v5123_v47 = vpop.f32.mrf.mxu2  ;;  %v5125_v48 = vpop.f32.mrf.mxu3 }
 0x252   : > { %7588 = vst [vmem:[#allocation25_spill] sm:$0xff] %v5123_v47  ;;  %v846_v51 = vmax.f32 %v5123_v47, %v5125_v48 }
 0x253   : > { %7589 = vst [vmem:[#allocation26_spill] sm:$0xff] %v5125_v48 }
 0x254   : > { %847 = vmax.xlane.f32.xlu1 %v846_v51 }
 0x257   : > { %v5129_v52 = vpop.xlane.xlu2 %805 }
 0x259   : > { %v5131_v55 = vpop.f32.mrf.mxu2  ;;  %v5133_v56 = vpop.f32.mrf.mxu3 }
 0x25a   : > { %7590 = vst [vmem:[#allocation27_spill] sm:$0xff] %v5131_v55  ;;  %v849_v59 = vmax.f32 %v5131_v55, %v5133_v56 }
 0x25b   : > { %7591 = vst [vmem:[#allocation28_spill] sm:$0xff] %v5133_v56 }
 0x25c   : > { %850 = vmax.xlane.f32.xlu2 %v849_v59 }
 0x25f   : > { %v5137_v60 = vpop.xlane.xlu2 %808 }
 0x261   : > { %v5139_v63 = vpop.f32.mrf.mxu2  ;;  %v5141_v0 = vpop.f32.mrf.mxu3 }
 0x262   : > { %7592 = vst [vmem:[#allocation29_spill] sm:$0xff] %v5139_v63  ;;  %v852_v3 = vmax.f32 %v5139_v63, %v5141_v0 }
 0x263   : > { %7593 = vst [vmem:[#allocation30_spill] sm:$0xff] %v5141_v0 }
 0x264   : > { %853 = vmax.xlane.f32.xlu1 %v852_v3 }
 0x267   : > { %v5145_v4 = vpop.xlane.xlu2 %811 }
 0x269   : > { %v5147_v7 = vpop.f32.mrf.mxu2  ;;  %v5149_v8 = vpop.f32.mrf.mxu3 }
 0x26a   : > { %7594 = vst [vmem:[#allocation31_spill] sm:$0xff] %v5147_v7  ;;  %v855_v11 = vmax.f32 %v5147_v7, %v5149_v8 }
 0x26b   : > { %7595 = vst [vmem:[#allocation32_spill] sm:$0xff] %v5149_v8 }
 0x26c   : > { %856 = vmax.xlane.f32.xlu1 %v855_v11 }
 0x26f   : > { %v5153_v12 = vpop.xlane.xlu2 %814 }
 0x271   : > { %v5155_v15 = vpop.f32.mrf.mxu2  ;;  %v5157_v16 = vpop.f32.mrf.mxu3 }
 0x272   : > { %v858_v19 = vmax.f32 %v5155_v15, %v5157_v16 }
 0x274   : > { %859 = vmax.xlane.f32.xlu1 %v858_v19 }
 0x277   : > { %v5161_v20 = vpop.xlane.xlu2 %817 }
 0x279   : > { %v5163_v23 = vpop.f32.mrf.mxu2  ;;  %v5165_v43 = vpop.f32.mrf.mxu3 }
 0x27a   : > { %v861_v51 = vmax.f32 %v5163_v23, %v5165_v43 }
 0x27c   : > { %862 = vmax.xlane.f32.xlu1 %v861_v51 }
 0x27f   : > { %v5169_v59 = vpop.xlane.xlu2 %820 }
 0x281   : > { %v5171_v3 = vpop.f32.mrf.mxu2  ;;  %v5173_v11 = vpop.f32.mrf.mxu3 }
 0x282   : > { %v864_v40 = vmax.f32 %v5171_v3, %v5173_v11 }
 0x284   : > { %865 = vmax.xlane.f32.xlu1 %v864_v40 }
 0x287   : > { %v5177_v19 = vpop.xlane.xlu2 %823 }
 0x289   : > { %v5179_v39 = vpop.f32.mrf.mxu2  ;;  %v5181_v26 = vpop.f32.mrf.mxu3 }
 0x28a   : > { %v867_v25 = vmax.f32 %v5179_v39, %v5181_v26 }
 0x28c   : > { %868 = vmax.xlane.f32.xlu1 %v867_v25 }
 0x28f   : > { %v827_v51 = vpop.xlane.xlu2 %826 }
 0x290   : > { %v909_v24 = vsub.f32 %v5071_v9, %v827_v51  ;;  %v910_v30 = vsub.f32 %v5073_v10, %v827_v51 }
 0x291   : > { %v5187_v29 = vpop.f32.mrf.mxu2  ;;  %v5189_v48 = vpop.f32.mrf.mxu3 }
 0x292   : > { %v997_v40 = vmul.f32 1.442695, %v909_v24  ;;  %v999_v47 = vmul.f32 1.442695, %v910_v30  ;;  %v870_v34 = vmax.f32 %v5187_v29, %v5189_v48 }
 0x294   : > { %4386 = vpow2.f32 %v997_v40  ;;  %871 = vmax.xlane.f32.xlu1 %v870_v34 }
 0x295   : > { %4388 = vpow2.f32 %v999_v47 }
 0x297   : > { %v830_v25 = vpop.xlane.xlu2 %829 }
 0x298   : > { %v911_v31 = vsub.f32 %v5079_v13, %v830_v25  ;;  %v912_v9 = vsub.f32 %v5081_v14, %v830_v25 }
 0x299   : > { %v5197_v10 = vpop.f32.mrf.mxu2  ;;  %v5199_v51 = vpop.f32.mrf.mxu3 }
 0x29a   : > { %v5201_v56 = vpop.eup %4386  ;;  %v1001_v30 = vmul.f32 1.442695, %v911_v31  ;;  %v1003_v24 = vmul.f32 1.442695, %v912_v9  ;;  %v873_v40 = vmax.f32 %v5197_v10, %v5199_v51 }
 0x29b   : > { %v5205_v34 = vpop.eup %4388 }
 0x29c   : > { %4390 = vpow2.f32 %v1001_v30  ;;  %874 = vmax.xlane.f32.xlu1 %v873_v40  ;;  %v1113_v13 = vadd.f32 %v5205_v34, %v5201_v56 }
 0x29d   : > { %4392 = vpow2.f32 %v1003_v24 }
 0x29e   : > { %1114 = vadd.xlane.f32.xlu2 %v1113_v13 }
 0x29f   : > { %v833_v14 = vpop.xlane.xlu1 %832 }
 0x2a0   : > { %v913_v47 = vsub.f32 %v5087_v17, %v833_v14  ;;  %v914_v25 = vsub.f32 %v5089_v18, %v833_v14 }
 0x2a1   : > { %v5211_v33 = vpop.f32.mrf.mxu2  ;;  %v5213_v31 = vpop.f32.mrf.mxu3 }
 0x2a2   : > { %v5215_v9 = vpop.eup %4390  ;;  %v876_v30 = vmax.f32 %v5211_v33, %v5213_v31  ;;  %v1005_v55 = vmul.f32 1.442695, %v913_v47  ;;  %v1007_v13 = vmul.f32 1.442695, %v914_v25  ;;  %v907_v47 = vsub.f32 %v5063_v5, %v5177_v19 }
 0x2a3   : > { %v5219_v40 = vpop.eup %4392 }
 0x2a4   : > { %877 = vmax.xlane.f32.xlu1 %v876_v30  ;;  %v1116_v24 = vadd.f32 %v5219_v40, %v5215_v9  ;;  %4394 = vpow2.f32 %v1005_v55  ;;  %v908_v55 = vsub.f32 %v5065_v6, %v5177_v19 }
 0x2a5   : > { %4396 = vpow2.f32 %v1007_v13 }
 0x2a6   : > { %1117 = vadd.xlane.f32.xlu2 %v1116_v24  ;;  %v995_v13 = vmul.f32 1.442695, %v908_v55  ;;  %v840_v55 = vmax.f32 %v5109_v32, %v5111_v35 }
 0x2a7   : > { %v836_v17 = vpop.xlane.xlu1 %835 }
 0x2a8   : > { %v915_v18 = vsub.f32 %v5095_v21, %v836_v17  ;;  %v916_v14 = vsub.f32 %v5097_v22, %v836_v17  ;;  %v993_v22 = vmul.f32 1.442695, %v907_v47 }
 0x2a9   : > { %v5225_v38 = vpop.f32.mrf.mxu2  ;;  %v5227_v37 = vpop.f32.mrf.mxu3 }
 0x2aa   : > { %v1009_v30 = vmul.f32 1.442695, %v915_v18  ;;  %v1011_v36 = vmul.f32 1.442695, %v916_v14  ;;  %v879_v25 = vmax.f32 %v5225_v38, %v5227_v37  ;;  %v5235_v21 = vpop.eup %4394 }
 0x2ab   : > { %v5237_v24 = vpop.eup %4396 }
 0x2ac   : > { %4398 = vpow2.f32 %v1009_v30  ;;  %880 = vmax.xlane.f32.xlu1 %v879_v25  ;;  %v1119_v5 = vadd.f32 %v5237_v24, %v5235_v21 }
 0x2ad   : > { %4400 = vpow2.f32 %v1011_v36 }
 0x2ae   : > { %4402 = vpow2.f32 %v993_v22  ;;  %v837_v22 = vmax.f32 %v5103_v27, %v5105_v28 }
 0x2af   : > { %4404 = vpow2.f32 %v995_v13 }
 0x2b1   : > { %v5247_v36 = vpop.f32.mrf.mxu2  ;;  %v5249_v19 = vpop.f32.mrf.mxu3 }
 0x2b2   : > { %v5239_v17 = vpop.eup %4398  ;;  %v882_v47 = vmax.f32 %v5247_v36, %v5249_v19 }
 0x2b3   : > { %v5243_v18 = vpop.eup %4400 }
 0x2b4   : > { %1120 = vadd.xlane.f32.xlu1 %v1119_v5  ;;  %v1122_v6 = vadd.f32 %v5243_v18, %v5239_v17  ;;  %v5251_v14 = vpop.eup %4402 }
 0x2b5   : > { %v5255_v30 = vpop.eup %4404 }
 0x2b6   : > { %1123 = vadd.xlane.f32.xlu2 %v1122_v6  ;;  %v1110_v25 = vadd.f32 %v5255_v30, %v5251_v14 }
 0x2bc   : > { %883 = vmax.xlane.f32.xlu1 %v882_v47 }
 0x2be   : > { %1111 = vadd.xlane.f32.xlu2 %v1110_v25 }
 0x2bf   : > { %v5263_v13 = vpop.xlane.xlu1 %844 }
 0x2c0   : > { %7597 = vst [vmem:[#allocation34_spill] sm:$0xff] %v5263_v13 }
 0x2c4   : > { %841 = vmax.xlane.f32.xlu1 %v840_v55 }
 0x2c6   : > { %838 = vmax.xlane.f32.xlu2 %v837_v22 }
 0x2c7   : > { %v5265_v5 = vpop.xlane.xlu1 %847 }
 0x2c8   : > { %7598 = vst [vmem:[#allocation35_spill] sm:$0xff] %v5265_v5 }
 0x2cf   : > { %v5279_v32 = vpop.xlane.xlu2 %850 }
 0x2d0   : > { %7601 = vst [vmem:[#allocation38_spill] sm:$0xff] %v5279_v32  ;;  %v906_v32 = vsub.f32 %v5057_v2, %v5169_v59  ;;  %v903_v2 = vsub.f32 %v5047_v61, %v5161_v20 }
 0x2d7   : > { %v5267_v6 = vpop.xlane.xlu1 %853 }
 0x2d8   : > { %7599 = vst [vmem:[#allocation36_spill] sm:$0xff] %v5267_v6  ;;  %v905_v6 = vsub.f32 %v5055_v1, %v5169_v59 }
 0x2da   : > { %v989_v7 = vmul.f32 1.442695, %v905_v6  ;;  %v985_v6 = vmul.f32 1.442695, %v903_v2 }
 0x2df   : > { %v5269_v0 = vpop.xlane.xlu1 %856 }
 0x2e0   : > { %7600 = vst [vmem:[#allocation37_spill] sm:$0xff] %v5269_v0 }
 0x2e7   : > { %v5271_v47 = vpop.xlane.xlu1 %859 }
 0x2ef   : > { %v5273_v63 = vpop.xlane.xlu1 %862 }
 0x2f7   : > { %v5275_v25 = vpop.xlane.xlu1 %865 }
 0x2ff   : > { %v5277_v35 = vpop.xlane.xlu1 %868 }
 0x307   : > { %v872_v55 = vpop.xlane.xlu1 %871 }
 0x30f   : > { %v875_v28 = vpop.xlane.xlu1 %874 }
 0x310   : > { %v941_v42 = vsub.f32 %v5197_v10, %v875_v28  ;;  %v942_v8 = vsub.f32 %v5199_v51, %v875_v28 }
 0x311   : > { %v5281_v27 = vpop.xlane.xlu2 %1114 }
 0x312   : > { %v1061_v0 = vmul.f32 1.442695, %v941_v42  ;;  %v1063_v46 = vmul.f32 1.442695, %v942_v8  ;;  %v940_v42 = vsub.f32 %v5189_v48, %v872_v55  ;;  %v937_v8 = vsub.f32 %v5179_v39, %v5277_v35 }
 0x317   : > { %v878_v22 = vpop.xlane.xlu1 %877 }
 0x318   : > { %v943_v13 = vsub.f32 %v5211_v33, %v878_v22  ;;  %v944_v5 = vsub.f32 %v5213_v31, %v878_v22  ;;  %v939_v33 = vsub.f32 %v5187_v29, %v872_v55  ;;  %v938_v55 = vsub.f32 %v5181_v26, %v5277_v35 }
 0x319   : > { %v5294_v10 = vpop.xlane.xlu2 %1117 }
 0x31a   : > { %v1065_v41 = vmul.f32 1.442695, %v943_v13  ;;  %v1067_v44 = vmul.f32 1.442695, %v944_v5  ;;  %v1057_v29 = vmul.f32 1.442695, %v939_v33 }
 0x31b   : > { %v1055_v35 = vmul.f32 1.442695, %v938_v55 }
 0x31c   : > { %4406 = vpow2.f32 %v1065_v41  ;;  %v991_v41 = vmul.f32 1.442695, %v906_v32  ;;  %v1059_v32 = vmul.f32 1.442695, %v940_v42 }
 0x31d   : > { %4408 = vpow2.f32 %v1067_v44 }
 0x31e   : > { %4410 = vpow2.f32 %v989_v7 }
 0x31f   : > { %v881_v31 = vpop.xlane.xlu1 %880  ;;  %4412 = vpow2.f32 %v1061_v0 }
 0x320   : > { %v945_v22 = vsub.f32 %v5225_v38, %v881_v31  ;;  %v946_v1 = vsub.f32 %v5227_v37, %v881_v31  ;;  %4414 = vpow2.f32 %v1063_v46  ;;  %v904_v46 = vsub.f32 %v5049_v62, %v5161_v20 }
 0x322   : > { %v5296_v13 = vpop.eup %4406  ;;  %v1069_v28 = vmul.f32 1.442695, %v945_v22  ;;  %v1071_v44 = vmul.f32 1.442695, %v946_v1  ;;  %v987_v20 = vmul.f32 1.442695, %v904_v46  ;;  %v901_v22 = vsub.f32 %v5039_v57, %v5153_v12 }
 0x323   : > { %v5298_v51 = vpop.eup %4408  ;;  %v1053_v1 = vmul.f32 1.442695, %v937_v8  ;;  %v935_v46 = vsub.f32 %v5171_v3, %v5275_v25 }
 0x324   : > { %4416 = vpow2.f32 %v1069_v28  ;;  %v1164_v38 = vadd.f32 %v5298_v51, %v5296_v13  ;;  %v5303_v37 = vpop.eup %4410 }
 0x325   : > { %4418 = vpow2.f32 %v1071_v44  ;;  %v5307_v7 = vpop.eup %4412 }
 0x326   : > { %4420 = vpow2.f32 %v991_v41  ;;  %1165 = vadd.xlane.f32.xlu2 %v1164_v38  ;;  %v5311_v48 = vpop.eup %4414 }
 0x327   : > { %4422 = vpow2.f32 %v1057_v29  ;;  %v1121_v0 = vpop.xlane.xlu1 %1120  ;;  %v1161_v33 = vadd.f32 %v5311_v48, %v5307_v7  ;;  %v902_v29 = vsub.f32 %v5041_v58, %v5153_v12 }
 0x328   : > { %4424 = vrcp.f32 %v1121_v0 }
 0x329   : > { %4426 = vrcp.f32 %v5294_v10  ;;  %v1124_v59 = vpop.xlane.xlu2 %1123 }
 0x32a   : > { %v5316_v5 = vpop.eup %4416  ;;  %4428 = vrcp.f32 %v1124_v59 }
 0x32b   : > { %v5318_v61 = vpop.eup %4418  ;;  %4430 = vpow2.f32 %v1059_v32  ;;  %v981_v32 = vmul.f32 1.442695, %v901_v22 }
 0x32c   : > { %v5322_v62 = vpop.eup %4420  ;;  %v1167_v39 = vadd.f32 %v5318_v61, %v5316_v5  ;;  %4432 = vrcp.f32 %v5281_v27 }
 0x32d   : > { %v5328_v31 = vpop.eup %4422  ;;  %4434 = vpow2.f32 %v985_v6 }
 0x32e   : > { %v4425_v41 = vpop.eup %4424  ;;  %1162 = vadd.xlane.f32.xlu2 %v1161_v33  ;;  %1168 = vadd.xlane.f32.xlu1 %v1167_v39  ;;  %4436 = vpow2.f32 %v987_v20  ;;  %v983_v20 = vmul.f32 1.442695, %v902_v29 }
 0x32f   : > { %v4427_v26 = vpop.eup %4426  ;;  %v1219_v28 = vmul.f32 %v4425_v41, %v1121_v0  ;;  %v884_v44 = vpop.xlane.xlu1 %883  ;;  %4438 = vpow2.f32 %v1053_v1  ;;  %v936_v0 = vsub.f32 %v5173_v11, %v5275_v25  ;;  %v1049_v11 = vmul.f32 1.442695, %v935_v46 }
 0x330   : > { %v4429_v42 = vpop.eup %4428  ;;  %v947_v38 = vsub.f32 %v5247_v36, %v884_v44  ;;  %v948_v57 = vsub.f32 %v5249_v19, %v884_v44  ;;  %v1218_v12 = vmul.f32 %v4427_v26, %v5294_v10 }
 0x331   : > { %v5337_v2 = vpop.eup %4430  ;;  %v1220_v8 = vmul.f32 %v4429_v42, %v1124_v59  ;;  %v1112_v6 = vpop.xlane.xlu2 %1111  ;;  %v1251_v36 = vsub.f32 2.0, %v1219_v28  ;;  %v1107_v59 = vadd.f32 %v5322_v62, %v5303_v37  ;;  %v1051_v1 = vmul.f32 1.442695, %v936_v0 }
 0x332   : > { %v1073_v55 = vmul.f32 1.442695, %v947_v38  ;;  %v1075_v33 = vmul.f32 1.442695, %v948_v57  ;;  %4440 = vrcp.f32 %v1112_v6  ;;  %v4433_v58 = vpop.eup %4432  ;;  %v1158_v3 = vadd.f32 %v5337_v2, %v5328_v31 }
 0x333   : > { %4442 = vpow2.f32 %v1055_v35  ;;  %v1252_v19 = vsub.f32 2.0, %v1220_v8  ;;  %v5348_v39 = vpop.eup %4434  ;;  %v1217_v10 = vmul.f32 %v4433_v58, %v5281_v27  ;;  %v1250_v28 = vsub.f32 2.0, %v1218_v12 }
 0x334   : > { %4444 = vpow2.f32 %v1073_v55  ;;  %v5350_v22 = vpop.eup %4436  ;;  %v1283_v38 = vmul.f32 %v4425_v41, %v1251_v36  ;;  %v900_v27 = vsub.f32 %v5033_v54, %v5145_v4 }
 0x335   : > { %4446 = vpow2.f32 %v1075_v33  ;;  %v1284_v25 = vmul.f32 %v4429_v42, %v1252_v19  ;;  %v5353_v35 = vpop.eup %4438  ;;  %v899_v42 = vsub.f32 %v5031_v53, %v5145_v4  ;;  %v1249_v41 = vsub.f32 2.0, %v1217_v10 }
 0x336   : > { %4448 = vpow2.f32 %v981_v32  ;;  %1159 = vadd.xlane.f32.xlu2 %v1158_v3  ;;  %1108 = vadd.xlane.f32.xlu1 %v1107_v59  ;;  %v1329_v0 = vmul.f32 %v5235_v21, %v1283_v38  ;;  %v1330_v54 = vmul.f32 %v5237_v24, %v1283_v38  ;;  %v1282_v4 = vmul.f32 %v4427_v26, %v1250_v28 }
 0x337   : > { %v1331_v44 = vmul.f32 %v5239_v17, %v1284_v25  ;;  %v1332_v29 = vmul.f32 %v5243_v18, %v1284_v25  ;;  %4450 = vpow2.f32 %v983_v20  ;;  %v933_v17 = vsub.f32 %v5163_v23, %v5273_v63 }
 0x338   : > { %v4441_v57 = vpop.eup %4440  ;;  %4452 = vpow2.f32 %v1049_v11  ;;  %v934_v18 = vsub.f32 %v5165_v43, %v5273_v63  ;;  %v977_v33 = vmul.f32 1.442695, %v899_v42  ;;  %v1104_v23 = vadd.f32 %v5350_v22, %v5348_v39  ;;  %v7602_v42 = vld [vmem:[#allocation14_spill] sm:$0xff] }
 0x339   : > { %v5359_v46 = vpop.eup %4442  ;;  %1365 = vmatpush.xpose.msrb.mxu2 %v1331_v44  ;;  %1385 = vmatpush.xpose.msrb.mxu3 %v1332_v29  ;;  %4454 = vpow2.f32 %v1051_v1  ;;  %v1216_v8 = vmul.f32 %v4441_v57, %v1112_v6  ;;  %v979_v43 = vmul.f32 1.442695, %v900_v27  ;;  %v1045_v21 = vmul.f32 1.442695, %v933_v17  ;;  %v7603_v17 = vld [vmem:[#allocation37_spill] sm:$0xff] }
 0x33a   : > { %v5363_v32 = vpop.eup %4444  ;;  %v1155_v12 = vadd.f32 %v5359_v46, %v5353_v35  ;;  %v1047_v24 = vmul.f32 1.442695, %v934_v18  ;;  %v1327_v19 = vmul.f32 %v5215_v9, %v1282_v4  ;;  %v1328_v20 = vmul.f32 %v5219_v40, %v1282_v4  ;;  %v7604_v18 = vld [vmem:[#allocation31_spill] sm:$0xff] }
 0x33b   : > { %v5369_v53 = vpop.eup %4446  ;;  %v1248_v36 = vsub.f32 2.0, %v1216_v8  ;;  %v1281_v3 = vmul.f32 %v4433_v58, %v1249_v41  ;;  %v897_v11 = vsub.f32 %v5023_v49, %v5137_v60  ;;  %4456 = vpow2.f32 %v977_v33 }
 0x33c   : > { %v5373_v55 = vpop.eup %4448  ;;  %v1170_v63 = vadd.f32 %v5369_v53, %v5363_v32  ;;  %v898_v25 = vsub.f32 %v5025_v50, %v5137_v60  ;;  %4458 = vpow2.f32 %v979_v43  ;;  %v931_v1 = vsub.f32 %v5155_v15, %v5271_v47  ;;  %v7607_v43 = vld [vmem:[#allocation12_spill] sm:$0xff] }
 0x33d   : > { %1366 = vmatpush.xpose.msrb.mxu2 %v1329_v0  ;;  %1386 = vmatpush.xpose.msrb.mxu3 %v1330_v54  ;;  %v5381_v6 = vpop.eup %4450  ;;  %v932_v9 = vsub.f32 %v5157_v16, %v5271_v47  ;;  %4460 = vpow2.f32 %v1045_v21  ;;  %v1325_v40 = vmul.f32 %v5201_v56, %v1281_v3  ;;  %v1326_v58 = vmul.f32 %v5205_v34, %v1281_v3  ;;  %v7610_v3 = vld [vmem:[#allocation29_spill] sm:$0xff] }
 0x33e   : > { %1156 = vadd.xlane.f32.xlu2 %v1155_v12  ;;  %1105 = vadd.xlane.f32.xlu1 %v1104_v23  ;;  %v5383_v26 = vpop.eup %4452  ;;  %4462 = vpow2.f32 %v1047_v24  ;;  %v1280_v49 = vmul.f32 %v4441_v57, %v1248_v36  ;;  %v973_v10 = vmul.f32 1.442695, %v897_v11  ;;  %v1101_v60 = vadd.f32 %v5381_v6, %v5373_v55  ;;  %v7608_v36 = vld [vmem:[#allocation13_spill] sm:$0xff] }
 0x33f   : > { %1171 = vadd.xlane.f32.xlu0 %v1170_v63  ;;  %v5387_v59 = vpop.eup %4454  ;;  %v975_v28 = vmul.f32 1.442695, %v898_v25  ;;  %v1041_v16 = vmul.f32 1.442695, %v931_v1  ;;  %v1043_v56 = vmul.f32 1.442695, %v932_v9  ;;  %v895_v38 = vsub.f32 %v5015_v45, %v5129_v52 }
 0x340   : > { %v1152_v50 = vadd.f32 %v5387_v59, %v5383_v26  ;;  %v1323_v34 = vmul.f32 %v5251_v14, %v1280_v49  ;;  %v1324_v44 = vmul.f32 %v5255_v30, %v1280_v49  ;;  %4464 = vpow2.f32 %v973_v10  ;;  %v7605_v14 = vld [vmem:[#allocation32_spill] sm:$0xff]  ;;  %v7611_v25 = vld [vmem:[#allocation30_spill] sm:$0xff] }
 0x341   : > { %1367 = vmatpush.xpose.msrb.mxu2 %v1327_v19  ;;  %1387 = vmatpush.xpose.msrb.mxu3 %v1328_v20  ;;  %v5403_v15 = vpop.eup %4456  ;;  %v896_v27 = vsub.f32 %v7602_v42, %v5129_v52  ;;  %4466 = vpow2.f32 %v975_v28  ;;  %v929_v41 = vsub.f32 %v7604_v18, %v7603_v17  ;;  %v930_v30 = vsub.f32 %v7605_v14, %v7603_v17  ;;  %v7606_v63 = vld [vmem:[#allocation24_spill] sm:$0xff]  ;;  %v7614_v42 = vld [vmem:[#allocation11_spill] sm:$0xff]  ;;  %v7615_v17 = vld [vmem:[#allocation38_spill] sm:$0xff] }
 0x342   : > { %v5405_v47 = vpop.eup %4458  ;;  %4468 = vpow2.f32 %v1041_v16  ;;  %v969_v8 = vmul.f32 1.442695, %v895_v38  ;;  %v893_v21 = vsub.f32 %v7607_v43, %v7606_v63  ;;  %v894_v19 = vsub.f32 %v7608_v36, %v7606_v63  ;;  %v7609_v20 = vld [vmem:[#allocation36_spill] sm:$0xff]  ;;  %v7616_v18 = vld [vmem:[#allocation27_spill] sm:$0xff]  ;;  %v7618_v36 = vld [vmem:[#allocation18_spill] sm:$0xff] }
 0x343   : > { %v5409_v29 = vpop.eup %4460  ;;  %4470 = vpow2.f32 %v1043_v56  ;;  %v1098_v0 = vadd.f32 %v5405_v47, %v5403_v15  ;;  %v971_v54 = vmul.f32 1.442695, %v896_v27  ;;  %v1037_v4 = vmul.f32 1.442695, %v929_v41  ;;  %v7612_v56 = vld [vmem:[#allocation21_spill] sm:$0xff]  ;;  %v7617_v14 = vld [vmem:[#allocation28_spill] sm:$0xff] }
 0x344   : > { %v5413_v57 = vpop.eup %4462  ;;  %v1039_v12 = vmul.f32 1.442695, %v930_v30  ;;  %4472 = vpow2.f32 %v969_v8  ;;  %v927_v11 = vsub.f32 %v7610_v3, %v7609_v20  ;;  %v928_v1 = vsub.f32 %v7611_v25, %v7609_v20 }
 0x345   : > { %1368 = vmatpush.xpose.msrb.mxu2 %v1325_v40  ;;  %1388 = vmatpush.xpose.msrb.mxu3 %v1326_v58  ;;  %v1149_v45 = vadd.f32 %v5413_v57, %v5409_v29  ;;  %4474 = vpow2.f32 %v971_v54  ;;  %v965_v9 = vmul.f32 1.442695, %v893_v21  ;;  %v967_v49 = vmul.f32 1.442695, %v894_v19  ;;  %v7619_v19 = vld [vmem:[#allocation8_spill] sm:$0xff] }
 0x346   : > { %1153 = vadd.xlane.f32.xlu2 %v1152_v50  ;;  %1102 = vadd.xlane.f32.xlu1 %v1101_v60  ;;  %v5425_v52 = vpop.eup %4464  ;;  %4476 = vpow2.f32 %v1037_v4  ;;  %v1033_v50 = vmul.f32 1.442695, %v927_v11  ;;  %v1035_v28 = vmul.f32 1.442695, %v928_v1  ;;  %v892_v27 = vsub.f32 %v7614_v42, %v7612_v56  ;;  %v7620_v11 = vld [vmem:[#allocation9_spill] sm:$0xff]  ;;  %v7621_v1 = vld [vmem:[#allocation35_spill] sm:$0xff] }
 0x347   : > { %v5427_v33 = vpop.eup %4466  ;;  %4478 = vpow2.f32 %v1039_v12  ;;  %v925_v41 = vsub.f32 %v7616_v18, %v7615_v17  ;;  %v926_v30 = vsub.f32 %v7617_v14, %v7615_v17  ;;  %v889_v20 = vsub.f32 %v7619_v19, %v7618_v36 }
 0x348   : > { %v5429_v23 = vpop.eup %4468  ;;  %v1095_v58 = vadd.f32 %v5427_v33, %v5425_v52  ;;  %4480 = vpow2.f32 %v965_v9  ;;  %v963_v54 = vmul.f32 1.442695, %v892_v27  ;;  %v890_v25 = vsub.f32 %v7620_v11, %v7618_v36  ;;  %v7622_v9 = vld [vmem:[#allocation25_spill] sm:$0xff]  ;;  %v338_v27 = vld [vmem:[%s7414_s1 + $0x10] sm:$0xff]  ;;  %v7628_v36 = vld [vmem:[#allocation19_spill] sm:$0xff] }
 0x349   : > { %1369 = vmatpush.xpose.msrb.mxu2 %v1323_v34  ;;  %1389 = vmatpush.xpose.msrb.mxu3 %v1324_v44  ;;  %v5433_v24 = vpop.eup %4470  ;;  %v7613_v34 = vld [vmem:[#allocation10_spill] sm:$0xff]  ;;  %4482 = vpow2.f32 %v967_v49  ;;  %v1029_v12 = vmul.f32 1.442695, %v925_v41  ;;  %v1031_v43 = vmul.f32 1.442695, %v926_v30  ;;  %v842_v41 = vpop.xlane.xlu1 %841  ;;  %v7625_v30 = vld [vmem:[#allocation33_spill] sm:$0xff] }
 0x34a   : > { %v1146_v40 = vadd.f32 %v5433_v24, %v5429_v23  ;;  %v5445_v10 = vpop.eup %4472  ;;  %v891_v44 = vsub.f32 %v7613_v34, %v7612_v56  ;;  %4484 = vpow2.f32 %v1033_v50  ;;  %v957_v50 = vmul.f32 1.442695, %v889_v20  ;;  %4115 = vmatmul.msk.f32.gmra.mxu0 %vm341_vm0, %v338_v27  ;;  %4118 = vmatmul.msk.f32.gmra.mxu1 %vm341_vm0, %v338_v27  ;;  %v7629_v20 = vld [vmem:[#allocation20_spill] sm:$0xff]  ;;  %v7635_v27 = vld [vmem:[#allocation15_spill] sm:$0xff] }
 0x34b   : > { %v5447_v60 = vpop.eup %4474  ;;  %4486 = vpow2.f32 %v1035_v28  ;;  %v959_v34 = vmul.f32 1.442695, %v890_v25  ;;  %v919_v19 = vsub.f32 %v7628_v36, %v842_v41  ;;  %v920_v11 = vsub.f32 %v7629_v20, %v842_v41 }
 0x34c   : > { %v5449_v16 = vpop.eup %4476  ;;  %v961_v8 = vmul.f32 1.442695, %v891_v44  ;;  %v4798_v20 = vmov 0  }
 0x34d   : > { %v5453_v38 = vpop.eup %4478  ;;  %4335 = vset.pattern.permute.xlu2 %v4798_v20  ;;  %4336 = vset.pattern.permute.xlu1 %v4798_v20  ;;  %v7648_v20 = vld [vmem:[#allocation17_spill] sm:$0xff] }
 0x34e   : > { %1150 = vadd.xlane.f32.xlu2 %v1149_v45  ;;  %1099 = vadd.xlane.f32.xlu1 %v1098_v0  ;;  %v1143_v45 = vadd.f32 %v5453_v38, %v5449_v16  ;;  %v1092_v0 = vadd.f32 %v5447_v60, %v5445_v10  ;;  %v5465_v4 = vpop.eup %4480  ;;  %4488 = vpow2.f32 %v961_v8  ;;  %v7626_v8 = vld [vmem:[#allocation6_spill] sm:$0xff] }
 0x34f   : > { %v5467_v63 = vpop.eup %4482  ;;  %4490 = vpow2.f32 %v963_v54 }
 0x350   : > { %v5469_v21 = vpop.eup %4484  ;;  %4492 = vpow2.f32 %v1029_v12  ;;  %v1089_v56 = vadd.f32 %v5467_v63, %v5465_v4  ;;  %v7627_v12 = vld [vmem:[#allocation7_spill] sm:$0xff] }
 0x351   : > { %v5473_v3 = vpop.eup %4486  ;;  %4494 = vpow2.f32 %v1031_v43  ;;  %v888_v43 = vsub.f32 %v7627_v12, %v7625_v30 }
 0x352   : > { %v1140_v28 = vadd.f32 %v5473_v3, %v5469_v21  ;;  %4496 = vpow2.f32 %v957_v50  ;;  %v5513_v50 = vld [vmem:[%s7420_s7] sm:$0xff] }
 0x353   : > { %4498 = vpow2.f32 %v959_v34  ;;  %7631 = vst [vmem:[#allocation31_spill] sm:$0xff] %v5513_v50 }
 0x354   : > { %v5485_v44 = vpop.eup %4488 }
 0x355   : > { %v5490_v17 = vpop.eup %4490 }
 0x356   : > { %1147 = vadd.xlane.f32.xlu2 %v1146_v40  ;;  %1096 = vadd.xlane.f32.xlu1 %v1095_v58  ;;  %v923_v40 = vsub.f32 %v7622_v9, %v7621_v1  ;;  %v7623_v58 = vld [vmem:[#allocation26_spill] sm:$0xff]  ;;  %7624 = vst [vmem:[#allocation14_spill] sm:$0xff] %v5490_v17  ;;  %v5494_v14 = vpop.eup %4492  ;;  %v1086_v9 = vadd.f32 %v5490_v17, %v5485_v44 }
 0x357   : > { %v924_v49 = vsub.f32 %v7623_v58, %v7621_v1  ;;  %v5498_v54 = vpop.eup %4494 }
 0x358   : > { %v1025_v42 = vmul.f32 1.442695, %v923_v40  ;;  %v1137_v1 = vadd.f32 %v5498_v54, %v5494_v14  ;;  %v955_v40 = vmul.f32 1.442695, %v888_v43  ;;  %v5508_v58 = vpop.eup %4496 }
 0x359   : > { %v1027_v18 = vmul.f32 1.442695, %v924_v49  ;;  %7630 = vst [vmem:[#allocation37_spill] sm:$0xff] %v5508_v58  ;;  %v1017_v49 = vmul.f32 1.442695, %v919_v19 }
 0x35a   : > { %4500 = vpow2.f32 %v1025_v42 }
 0x35b   : > { %4502 = vpow2.f32 %v1027_v18  ;;  %v7636_v18 = vld [vmem:[#allocation4_spill] sm:$0xff] }
 0x35c   : > { %v885_v41 = vsub.f32 %v7636_v18, %v7635_v27 }
 0x35e   : > { %1144 = vadd.xlane.f32.xlu2 %v1143_v45  ;;  %1093 = vadd.xlane.f32.xlu1 %v1092_v0  ;;  %v887_v45 = vsub.f32 %v7626_v8, %v7625_v30  ;;  %v4797_v0 = vmov 7   ;;  %v7637_v30 = vld [vmem:[#allocation5_spill] sm:$0xff]  ;;  %v949_v43 = vmul.f32 1.442695, %v885_v41 }
 0x35f   : > { %4337 = vset.pattern.permute.xlu0 %v4797_v0  ;;  %v886_v8 = vsub.f32 %v7637_v30, %v7635_v27 }
 0x360   : > { %v953_v25 = vmul.f32 1.442695, %v887_v45  ;;  %2733 = vperm.xlu0 %4337, %v5513_v50  }
 0x361   : > { %v951_v19 = vmul.f32 1.442695, %v886_v8  ;;  %v839_v8 = vpop.xlane.xlu2 %838 }
 0x362   : > { %4504 = vpow2.f32 %v953_v25 }
 0x363   : > { %4506 = vpow2.f32 %v955_v40 }
 0x364   : > { %4508 = vpow2.f32 %v1017_v49  ;;  %v7644_v49 = vld [vmem:[#allocation23_spill] sm:$0xff] }
 0x366   : > { %1141 = vadd.xlane.f32.xlu2 %v1140_v28  ;;  %1090 = vadd.xlane.f32.xlu1 %v1089_v56  ;;  %v5515_v28 = vpop.eup %4498  ;;  %v1019_v56 = vmul.f32 1.442695, %v920_v11 }
 0x367   : > { %7632 = vst [vmem:[#allocation32_spill] sm:$0xff] %v5515_v28  ;;  %v5518_v34 = vpop.eup %4500  ;;  %v1083_v0 = vadd.f32 %v5515_v28, %v5508_v58 }
 0x368   : > { %7633 = vst [vmem:[#allocation24_spill] sm:$0xff] %v5518_v34  ;;  %v5520_v42 = vpop.eup %4502  ;;  %4510 = vpow2.f32 %v1019_v56 }
 0x369   : > { %7634 = vst [vmem:[#allocation12_spill] sm:$0xff] %v5520_v42  ;;  %v1134_v45 = vadd.f32 %v5520_v42, %v5518_v34  ;;  %v5530_v12 = vpop.eup %4504  ;;  %4512 = vpow2.f32 %v949_v43  ;;  %v7647_v43 = vld [vmem:[#allocation16_spill] sm:$0xff] }
 0x36a   : > { %7638 = vst [vmem:[#allocation13_spill] sm:$0xff] %v5530_v12  ;;  %v5532_v36 = vpop.eup %4506  ;;  %4514 = vpow2.f32 %v951_v19  ;;  %v917_v19 = vsub.f32 %v7647_v43, %v839_v8 }
 0x36b   : > { %7639 = vst [vmem:[#allocation36_spill] sm:$0xff] %v5532_v36  ;;  %v5534_v11 = vpop.eup %4508  ;;  %v1080_v27 = vadd.f32 %v5532_v36, %v5530_v12 }
 0x36c   : > { %7640 = vst [vmem:[#allocation29_spill] sm:$0xff] %v5534_v11 }
 0x36e   : > { %1138 = vadd.xlane.f32.xlu2 %v1137_v1  ;;  %1087 = vadd.xlane.f32.xlu1 %v1086_v9  ;;  %v5536_v25 = vpop.eup %4510  ;;  %v7642_v1 = vld [vmem:[#allocation34_spill] sm:$0xff] }
 0x36f   : > { %7641 = vst [vmem:[#allocation30_spill] sm:$0xff] %v5536_v25  ;;  %v7643_v9 = vld [vmem:[#allocation22_spill] sm:$0xff]  ;;  %v922_v56 = vsub.f32 %v7644_v49, %v7642_v1  ;;  %v1128_v18 = vadd.f32 %v5536_v25, %v5534_v11  ;;  %v1013_v49 = vmul.f32 1.442695, %v917_v19 }
 0x370   : > { %v921_v40 = vsub.f32 %v7643_v9, %v7642_v1  ;;  %v918_v1 = vsub.f32 %v7648_v20, %v839_v8  ;;  %v340_v8 = vld [vmem:[%s7416_s3] sm:$0xff] }
 0x371   : > { %v1023_v30 = vmul.f32 1.442695, %v922_v56 }
 0x372   : > { %v1021_v41 = vmul.f32 1.442695, %v921_v40  ;;  %v1015_v40 = vmul.f32 1.442695, %v918_v1 }
 0x374   : > { %4516 = vpow2.f32 %v1021_v41 }
 0x375   : > { %4518 = vpow2.f32 %v1023_v30 }
 0x376   : > { %1135 = vadd.xlane.f32.xlu2 %v1134_v45  ;;  %1084 = vadd.xlane.f32.xlu1 %v1083_v0  ;;  %v5546_v45 = vpop.eup %4512  ;;  %4520 = vpow2.f32 %v1013_v49 }
 0x377   : > { %7645 = vst [vmem:[#allocation21_spill] sm:$0xff] %v5546_v45  ;;  %v5548_v0 = vpop.eup %4514  ;;  %4522 = vpow2.f32 %v1015_v40 }
 0x378   : > { %7646 = vst [vmem:[#allocation10_spill] sm:$0xff] %v5548_v0  ;;  %v1077_v9 = vadd.f32 %v5548_v0, %v5546_v45 }
 0x37e   : > { %1081 = vadd.xlane.f32.xlu1 %v1080_v27  ;;  %1129 = vadd.xlane.f32.xlu2 %v1128_v18  ;;  %v5554_v27 = vpop.eup %4516 }
 0x37f   : > { %7649 = vst [vmem:[#allocation11_spill] sm:$0xff] %v5554_v27  ;;  %v5556_v56 = vpop.eup %4518 }
 0x380   : > { %7650 = vst [vmem:[#allocation38_spill] sm:$0xff] %v5556_v56  ;;  %v1131_v18 = vadd.f32 %v5556_v56, %v5554_v27  ;;  %v5560_v41 = vpop.eup %4520 }
 0x381   : > { %7651 = vst [vmem:[#allocation27_spill] sm:$0xff] %v5560_v41  ;;  %v5562_v30 = vpop.eup %4522 }
 0x382   : > { %7652 = vst [vmem:[#allocation28_spill] sm:$0xff] %v5562_v30  ;;  %v1125_v43 = vadd.f32 %v5562_v30, %v5560_v41 }
 0x386   : > { %1078 = vadd.xlane.f32.xlu1 %v1077_v9  ;;  %v4799_v9 = vmov 14  }
 0x38e   : > { %1132 = vadd.xlane.f32.xlu1 %v1131_v18 }
 0x396   : > { %1126 = vadd.xlane.f32.xlu1 %v1125_v43  ;;  %1447 = vperm.xlu2 %4335, %v340_v8  }
 0x399   : > { %v1166_v19 = vpop.xlane.xlu2 %1165 }
 0x39e   : > { %2726 = vperm.xlu2 %4335, %v5513_v50  }
 0x3a1   : > { %v1163_v20 = vpop.xlane.xlu2 %1162  ;;  %v1169_v1 = vpop.xlane.xlu1 %1168 }
 0x3a6   : > { %4338 = vset.pattern.permute.xlu2 %v4799_v9 }
 0x3a7   : > { %2758 = vperm.xlu2 %4338, %v5513_v50  }
 0x3a9   : > { %v1160_v49 = vpop.xlane.xlu2 %1159  ;;  %v1109_v40 = vpop.xlane.xlu1 %1108 }
 0x3aa   : > { %4524 = vrcp.f32 %v1109_v40 }
 0x3ab   : > { %4526 = vrcp.f32 %v1169_v1 }
 0x3ac   : > { %4528 = vrcp.f32 %v1166_v19 }
 0x3b0   : > { %v4525_v18 = vpop.eup %4524 }
 0x3b1   : > { %v5571_v25 = vpop.xlane.xlu2 %1156  ;;  %v1106_v11 = vpop.xlane.xlu1 %1105  ;;  %v1215_v43 = vmul.f32 %v4525_v18, %v1109_v40 }
 0x3b2   : > { %v1172_v8 = vpop.xlane.xlu0 %1171  ;;  %v4527_v41 = vpop.eup %4526 }
 0x3b3   : > { %4530 = vrcp.f32 %v1172_v8  ;;  %v1247_v30 = vsub.f32 2.0, %v1215_v43  ;;  %v4529_v27 = vpop.eup %4528  ;;  %v1235_v9 = vmul.f32 %v4527_v41, %v1169_v1 }
 0x3b4   : > { %4532 = vrcp.f32 %v1106_v11  ;;  %v1234_v40 = vmul.f32 %v4529_v27, %v1166_v19 }
 0x3b5   : > { %v1279_v56 = vmul.f32 %v4525_v18, %v1247_v30  ;;  %4534 = vrcp.f32 %v1163_v20  ;;  %v1267_v42 = vsub.f32 2.0, %v1235_v9 }
 0x3b7   : > { %v1321_v0 = vmul.f32 %v5303_v37, %v1279_v56  ;;  %v1322_v45 = vmul.f32 %v5322_v62, %v1279_v56  ;;  %v1266_v37 = vsub.f32 2.0, %v1234_v40 }
 0x3b9   : > { %v4531_v36 = vpop.eup %4530  ;;  %v5575_v12 = vpop.xlane.xlu2 %1153  ;;  %1370 = vmatpush.xpose.msrb.mxu2 %v1321_v0  ;;  %1390 = vmatpush.xpose.msrb.mxu3 %v1322_v45 }
 0x3ba   : > { %v1103_v50 = vpop.xlane.xlu1 %1102  ;;  %v4533_v28 = vpop.eup %4532  ;;  %v1236_v58 = vmul.f32 %v4531_v36, %v1172_v8  ;;  %v1299_v8 = vmul.f32 %v4527_v41, %v1267_v42 }
 0x3bb   : > { %v1214_v43 = vmul.f32 %v4533_v28, %v1106_v11  ;;  %4536 = vrcp.f32 %v1103_v50  ;;  %v4535_v1 = vpop.eup %4534 }
 0x3bc   : > { %4538 = vrcp.f32 %v1160_v49  ;;  %v1268_v30 = vsub.f32 2.0, %v1236_v58  ;;  %v1233_v45 = vmul.f32 %v4535_v1, %v1163_v20 }
 0x3bd   : > { %v1246_v18 = vsub.f32 2.0, %v1214_v43  ;;  %4540 = vrcp.f32 %v5571_v25 }
 0x3be   : > { %v1300_v34 = vmul.f32 %v4531_v36, %v1268_v30  ;;  %4542 = vrcp.f32 %v5575_v12  ;;  %v1265_v42 = vsub.f32 2.0, %v1233_v45 }
 0x3bf   : > { %v1278_v17 = vmul.f32 %v4533_v28, %v1246_v18  ;;  %v1362_v28 = vmul.f32 %v5318_v61, %v1299_v8 }
 0x3c0   : > { %v1363_v62 = vmul.f32 %v5363_v32, %v1300_v34  ;;  %v1364_v56 = vmul.f32 %v5369_v53, %v1300_v34  ;;  %v1361_v53 = vmul.f32 %v5316_v5, %v1299_v8  ;;  %v1298_v34 = vmul.f32 %v4529_v27, %v1266_v37 }
 0x3c1   : > { %v4537_v0 = vpop.eup %4536  ;;  %v1151_v19 = vpop.xlane.xlu2 %1150  ;;  %v1319_v11 = vmul.f32 %v5348_v39, %v1278_v17  ;;  %v1320_v9 = vmul.f32 %v5350_v22, %v1278_v17  ;;  %v1297_v37 = vmul.f32 %v4535_v1, %v1265_v42 }
 0x3c2   : > { %v1100_v58 = vpop.xlane.xlu1 %1099  ;;  %v4539_v43 = vpop.eup %4538  ;;  %v1213_v36 = vmul.f32 %v4537_v0, %v1103_v50  ;;  %1405 = vmatpush.xpose.msrb.mxu0 %v1363_v62  ;;  %1425 = vmatpush.xpose.msrb.mxu1 %v1364_v56  ;;  %v1359_v40 = vmul.f32 %v5296_v13, %v1298_v34  ;;  %v1360_v27 = vmul.f32 %v5298_v51, %v1298_v34 }
 0x3c3   : > { %1371 = vmatpush.xpose.msrb.mxu2 %v1319_v11  ;;  %1391 = vmatpush.xpose.msrb.mxu3 %v1320_v9  ;;  %4544 = vrcp.f32 %v1100_v58  ;;  %v1232_v39 = vmul.f32 %v4539_v43, %v1160_v49  ;;  %v4541_v41 = vpop.eup %4540  ;;  %v1357_v56 = vmul.f32 %v5307_v7, %v1297_v37 }
 0x3c4   : > { %v1245_v32 = vsub.f32 2.0, %v1213_v36  ;;  %v4543_v17 = vpop.eup %4542  ;;  %4546 = vrcp.f32 %v1151_v19  ;;  %v1231_v5 = vmul.f32 %v4541_v41, %v5571_v25  ;;  %v1358_v25 = vmul.f32 %v5311_v48, %v1297_v37 }
 0x3c5   : > { %v1264_v18 = vsub.f32 2.0, %v1232_v39 }
 0x3c6   : > { %1406 = vmatpush.xpose.msrb.mxu0 %v1361_v53  ;;  %1426 = vmatpush.xpose.msrb.mxu1 %v1362_v28  ;;  %v1277_v22 = vmul.f32 %v4537_v0, %v1245_v32  ;;  %v1263_v13 = vsub.f32 2.0, %v1231_v5 }
 0x3c7   : > { %v1296_v8 = vmul.f32 %v4539_v43, %v1264_v18 }
 0x3c8   : > { %v1317_v50 = vmul.f32 %v5373_v55, %v1277_v22  ;;  %v1318_v20 = vmul.f32 %v5381_v6, %v1277_v22  ;;  %v1230_v55 = vmul.f32 %v4543_v17, %v5575_v12  ;;  %v1295_v53 = vmul.f32 %v4541_v41, %v1263_v13 }
 0x3c9   : > { %v4545_v30 = vpop.eup %4544  ;;  %v1148_v61 = vpop.xlane.xlu2 %1147  ;;  %v1355_v36 = vmul.f32 %v5328_v31, %v1296_v8  ;;  %v1356_v32 = vmul.f32 %v5337_v2, %v1296_v8 }
 0x3ca   : > { %v1097_v49 = vpop.xlane.xlu1 %1096  ;;  %v1212_v62 = vmul.f32 %v4545_v30, %v1100_v58  ;;  %1372 = vmatpush.xpose.msrb.mxu2 %v1317_v50  ;;  %1392 = vmatpush.xpose.msrb.mxu3 %v1318_v20  ;;  %v4547_v0 = vpop.eup %4546  ;;  %v1262_v1 = vsub.f32 2.0, %v1230_v55  ;;  %v1354_v31 = vmul.f32 %v5359_v46, %v1295_v53 }
 0x3cb   : > { %1407 = vmatpush.xpose.msrb.mxu0 %v1359_v40  ;;  %1427 = vmatpush.xpose.msrb.mxu1 %v1360_v27  ;;  %4548 = vrcp.f32 %v1097_v49  ;;  %v1229_v58 = vmul.f32 %v4547_v0, %v1151_v19  ;;  %v1353_v19 = vmul.f32 %v5353_v35, %v1295_v53 }
 0x3cc   : > { %v1244_v6 = vsub.f32 2.0, %v1212_v62  ;;  %4550 = vrcp.f32 %v1148_v61  ;;  %v1294_v28 = vmul.f32 %v4543_v17, %v1262_v1 }
 0x3ce   : > { %v1276_v51 = vmul.f32 %v4545_v30, %v1244_v6  ;;  %v1351_v22 = vmul.f32 %v5383_v26, %v1294_v28  ;;  %v1352_v30 = vmul.f32 %v5387_v59, %v1294_v28  ;;  %v1537_v59 = vld [vmem:[%s7419_s6] sm:$0xff] }
 0x3cf   : > { %1408 = vmatpush.xpose.msrb.mxu0 %v1357_v56  ;;  %1428 = vmatpush.xpose.msrb.mxu1 %v1358_v25 }
 0x3d0   : > { %v1315_v45 = vmul.f32 %v5403_v15, %v1276_v51  ;;  %v1316_v11 = vmul.f32 %v5405_v47, %v1276_v51  ;;  %v1261_v47 = vsub.f32 2.0, %v1229_v58  ;;  %2643 = vperm.xlu1 %4336, %v1537_v59   ;;  %v4802_v59 = vmov 35  }
 0x3d1   : > { %v4549_v9 = vpop.eup %4548  ;;  %v1145_v12 = vpop.xlane.xlu2 %1144  ;;  %4341 = vset.pattern.permute.xlu0 %v4802_v59  ;;  %v4808_v59 = vmov 42  }
 0x3d2   : > { %v1094_v7 = vpop.xlane.xlu1 %1093  ;;  %v4551_v48 = vpop.eup %4550  ;;  %v1211_v43 = vmul.f32 %v4549_v9, %v1097_v49  ;;  %4552 = vrcp.f32 %v1145_v12  ;;  %1373 = vmatpush.xpose.msrb.mxu2 %v1315_v45  ;;  %1393 = vmatpush.xpose.msrb.mxu3 %v1316_v11  ;;  %v1293_v35 = vmul.f32 %v4547_v0, %v1261_v47  ;;  %v7654_v47 = vld [vmem:[#allocation14_spill] sm:$0xff] }
 0x3d3   : > { %1409 = vmatpush.xpose.msrb.mxu0 %v1355_v36  ;;  %1429 = vmatpush.xpose.msrb.mxu1 %v1356_v32  ;;  %4554 = vrcp.f32 %v1094_v7  ;;  %v1228_v34 = vmul.f32 %v4551_v48, %v1148_v61 }
 0x3d4   : > { %v1243_v15 = vsub.f32 2.0, %v1211_v43  ;;  %v1350_v26 = vmul.f32 %v5413_v57, %v1293_v35 }
 0x3d5   : > { %v1260_v20 = vsub.f32 2.0, %v1228_v34 }
 0x3d6   : > { %v1275_v42 = vmul.f32 %v4549_v9, %v1243_v15 }
 0x3d7   : > { %1410 = vmatpush.xpose.msrb.mxu0 %v1353_v19  ;;  %1430 = vmatpush.xpose.msrb.mxu1 %v1354_v31  ;;  %v1292_v61 = vmul.f32 %v4551_v48, %v1260_v20  ;;  %v7655_v20 = vld [vmem:[#allocation24_spill] sm:$0xff] }
 0x3d8   : > { %v4553_v2 = vpop.eup %4552  ;;  %v1313_v39 = vmul.f32 %v5425_v52, %v1275_v42  ;;  %v1314_v41 = vmul.f32 %v5427_v33, %v1275_v42  ;;  %v1349_v33 = vmul.f32 %v5409_v29, %v1293_v35  ;;  %v7658_v35 = vld [vmem:[#allocation32_spill] sm:$0xff] }
 0x3d9   : > { %v4555_v50 = vpop.eup %4554  ;;  %v1227_v40 = vmul.f32 %v4553_v2, %v1145_v12  ;;  %v1142_v17 = vpop.xlane.xlu2 %1141  ;;  %v1347_v29 = vmul.f32 %v5429_v23, %v1292_v61  ;;  %v1348_v57 = vmul.f32 %v5433_v24, %v1292_v61 }
 0x3da   : > { %v1091_v18 = vpop.xlane.xlu1 %1090  ;;  %v1210_v5 = vmul.f32 %v4555_v50, %v1094_v7  ;;  %4556 = vrcp.f32 %v1142_v17  ;;  %1374 = vmatpush.xpose.msrb.mxu2 %v1313_v39  ;;  %1394 = vmatpush.xpose.msrb.mxu3 %v1314_v41 }
 0x3db   : > { %1411 = vmatpush.xpose.msrb.mxu0 %v1351_v22  ;;  %1431 = vmatpush.xpose.msrb.mxu1 %v1352_v30  ;;  %4558 = vrcp.f32 %v1091_v18  ;;  %v1259_v52 = vsub.f32 2.0, %v1227_v40  ;;  %v7656_v40 = vld [vmem:[#allocation12_spill] sm:$0xff]  ;;  %v7657_v30 = vld [vmem:[#allocation37_spill] sm:$0xff] }
 0x3dc   : > { %v1242_v46 = vsub.f32 2.0, %v1210_v5 }
 0x3dd   : > { %v1291_v25 = vmul.f32 %v4553_v2, %v1259_v52 }
 0x3de   : > { %v1274_v27 = vmul.f32 %v4555_v50, %v1242_v46 }
 0x3df   : > { %1412 = vmatpush.xpose.msrb.mxu0 %v1349_v33  ;;  %1432 = vmatpush.xpose.msrb.mxu1 %v1350_v26  ;;  %v1345_v1 = vmul.f32 %v5449_v16, %v1291_v25  ;;  %v1346_v23 = vmul.f32 %v5453_v38, %v1291_v25 }
 0x3e0   : > { %v4557_v49 = vpop.eup %4556  ;;  %v1311_v37 = vmul.f32 %v5445_v10, %v1274_v27  ;;  %v1312_v62 = vmul.f32 %v5447_v60, %v1274_v27  ;;  %v5612_v10 = vpop.permute.xlu0 %2733 }
 0x3e1   : > { %v4559_v55 = vpop.eup %4558  ;;  %v1226_v6 = vmul.f32 %v4557_v49, %v1142_v17  ;;  %v1139_v13 = vpop.xlane.xlu2 %1138  ;;  %7653 = vst [vmem:[#allocation18_spill] sm:$0xff] %v5612_v10  ;;  %v2736_v51 = vmul.f32 0.0, %v5612_v10 }
 0x3e2   : > { %v1088_v56 = vpop.xlane.xlu1 %1087  ;;  %v1209_v8 = vmul.f32 %v4559_v55, %v1091_v18  ;;  %4560 = vrcp.f32 %v1139_v13  ;;  %1375 = vmatpush.xpose.msrb.mxu2 %v1311_v37  ;;  %1395 = vmatpush.xpose.msrb.mxu3 %v1312_v62  ;;  %v7660_v62 = vld [vmem:[#allocation13_spill] sm:$0xff] }
 0x3e3   : > { %v1258_v0 = vsub.f32 2.0, %v1226_v6  ;;  %1413 = vmatpush.xpose.msrb.mxu0 %v1347_v29  ;;  %1433 = vmatpush.xpose.msrb.mxu1 %v1348_v57  ;;  %4562 = vrcp.f32 %v1088_v56  ;;  %v7661_v6 = vld [vmem:[#allocation36_spill] sm:$0xff] }
 0x3e4   : > { %v1241_v60 = vsub.f32 2.0, %v1209_v8  ;;  %2742 = vrot.lane.b32.xlu1 %v2736_v51, %s4800_s28  ;;  %v7663_v51 = vld [vmem:[#allocation21_spill] sm:$0xff] }
 0x3e5   : > { %v1290_v24 = vmul.f32 %v4557_v49, %v1258_v0  ;;  %v7659_v49 = vld [vmem:[#allocation31_spill] sm:$0xff] }
 0x3e6   : > { %v1273_v45 = vmul.f32 %v4559_v55, %v1241_v60  ;;  %2836 = vperm.xlu0 %4341, %v7659_v49  }
 0x3e7   : > { %1414 = vmatpush.xpose.msrb.mxu0 %v1345_v1  ;;  %1434 = vmatpush.xpose.msrb.mxu1 %v1346_v23  ;;  %v1343_v11 = vmul.f32 %v5469_v21, %v1290_v24  ;;  %v1344_v9 = vmul.f32 %v5473_v3, %v1290_v24  ;;  %v7664_v23 = vld [vmem:[#allocation10_spill] sm:$0xff] }
 0x3e8   : > { %v4561_v58 = vpop.eup %4560  ;;  %v1309_v12 = vmul.f32 %v5465_v4, %v1273_v45  ;;  %v1310_v36 = vmul.f32 %v5467_v63, %v1273_v45 }
 0x3e9   : > { %v4563_v32 = vpop.eup %4562  ;;  %v1225_v16 = vmul.f32 %v4561_v58, %v1139_v13  ;;  %v1136_v7 = vpop.xlane.xlu2 %1135 }
 0x3ea   : > { %v1085_v38 = vpop.xlane.xlu1 %1084  ;;  %v1208_v53 = vmul.f32 %v4563_v32, %v1088_v56  ;;  %4564 = vrcp.f32 %v1136_v7  ;;  %1376 = vmatpush.xpose.msrb.mxu2 %v1309_v12  ;;  %1396 = vmatpush.xpose.msrb.mxu3 %v1310_v36  ;;  %v400_v36 = vpop.f32.mrf.mxu1 }
 0x3eb   : > { %v1257_v48 = vsub.f32 2.0, %v1225_v16  ;;  %1415 = vmatpush.xpose.msrb.mxu0 %v1343_v11  ;;  %1435 = vmatpush.xpose.msrb.mxu1 %v1344_v9  ;;  %4566 = vrcp.f32 %v1085_v38  ;;  %v374_v11 = vpop.f32.mrf.mxu0 }
 0x3ec   : > { %v1240_v21 = vsub.f32 2.0, %v1208_v53  ;;  %v7666_v53 = vld [vmem:[#allocation11_spill] sm:$0xff] }
 0x3ed   : > { %v1289_v43 = vmul.f32 %v4561_v58, %v1257_v48 }
 0x3ee   : > { %v1272_v3 = vmul.f32 %v4563_v32, %v1240_v21  ;;  %v7667_v21 = vld [vmem:[#allocation38_spill] sm:$0xff] }
 0x3ef   : > { %v1341_v15 = vmul.f32 %v5494_v14, %v1289_v43  ;;  %v1342_v4 = vmul.f32 %v5498_v54, %v1289_v43  ;;  %v4801_v14 = vmov 21  }
 0x3f0   : > { %v4565_v63 = vpop.eup %4564  ;;  %v1307_v28 = vmul.f32 %v5485_v44, %v1272_v3  ;;  %v1308_v34 = vmul.f32 %v7654_v47, %v1272_v3  ;;  %4339 = vset.pattern.permute.xlu1 %v4801_v14  ;;  %v4804_v14 = vmov 28  }
 0x3f1   : > { %v4567_v19 = vpop.eup %4566  ;;  %v1224_v31 = vmul.f32 %v4565_v63, %v1136_v7  ;;  %v1130_v42 = vpop.xlane.xlu2 %1129  ;;  %1416 = vmatpush.xpose.msrb.mxu0 %v1341_v15  ;;  %1436 = vmatpush.xpose.msrb.mxu1 %v1342_v4 }
 0x3f2   : > { %v1082_v2 = vpop.xlane.xlu1 %1081  ;;  %v1207_v39 = vmul.f32 %v4567_v19, %v1085_v38  ;;  %1377 = vmatpush.xpose.msrb.mxu2 %v1307_v28  ;;  %1397 = vmatpush.xpose.msrb.mxu3 %v1308_v34  ;;  %v7668_v28 = vld [vmem:[#allocation29_spill] sm:$0xff]  ;;  %v7669_v34 = vld [vmem:[#allocation30_spill] sm:$0xff] }
 0x3f3   : > { %v1256_v41 = vsub.f32 2.0, %v1224_v31  ;;  %4568 = vrcp.f32 %v1082_v2  ;;  %4340 = vset.pattern.permute.xlu2 %v4804_v14 }
 0x3f4   : > { %v1239_v22 = vsub.f32 2.0, %v1207_v39  ;;  %v7671_v39 = vld [vmem:[#allocation28_spill] sm:$0xff] }
 0x3f5   : > { %v1288_v54 = vmul.f32 %v4565_v63, %v1256_v41 }
 0x3f6   : > { %v1271_v50 = vmul.f32 %v4567_v19, %v1239_v22 }
 0x3f7   : > { %v1339_v44 = vmul.f32 %v7655_v20, %v1288_v54  ;;  %v1340_v17 = vmul.f32 %v7656_v40, %v1288_v54 }
 0x3f8   : > { %v1305_v18 = vmul.f32 %v7657_v30, %v1271_v50  ;;  %v1306_v5 = vmul.f32 %v7658_v35, %v1271_v50 }
 0x3f9   : > { %v4569_v46 = vpop.eup %4568  ;;  %v5630_v52 = vpop.permute.xlu2 %1447  ;;  %1417 = vmatpush.xpose.msrb.mxu0 %v1339_v44  ;;  %1437 = vmatpush.xpose.msrb.mxu1 %v1340_v17 }
 0x3fa   : > { %v1079_v33 = vpop.xlane.xlu1 %1078  ;;  %v1206_v26 = vmul.f32 %v4569_v46, %v1082_v2  ;;  %1378 = vmatpush.xpose.msrb.mxu2 %v1305_v18  ;;  %1398 = vmatpush.xpose.msrb.mxu3 %v1306_v5  ;;  %v339_v5 = vld [vmem:[%s7415_s2] sm:$0xff] }
 0x3fb   : > { %4570 = vrcp.f32 %v1079_v33 }
 0x3fc   : > { %v1238_v61 = vsub.f32 2.0, %v1206_v26  ;;  %4572 = vrcp.f32 %v1130_v42 }
 0x3fe   : > { %v1270_v27 = vmul.f32 %v4569_v46, %v1238_v61  ;;  %v4807_v61 = vmov 8  }
 0x400   : > { %v1303_v55 = vmul.f32 %v7660_v62, %v1270_v27  ;;  %v1304_v13 = vmul.f32 %v7661_v6, %v1270_v27 }
 0x401   : > { %v4571_v37 = vpop.eup %4570  ;;  %v5635_v57 = vpop.permute.xlu2 %2726 }
 0x402   : > { %v1205_v29 = vmul.f32 %v4571_v37, %v1079_v33  ;;  %7662 = vst [vmem:[#allocation8_spill] sm:$0xff] %v5635_v57  ;;  %v1133_v56 = vpop.xlane.xlu1 %1132  ;;  %1379 = vmatpush.xpose.msrb.mxu2 %v1303_v55  ;;  %1399 = vmatpush.xpose.msrb.mxu3 %v1304_v13  ;;  %v4573_v8 = vpop.eup %4572 }
 0x403   : > { %4574 = vrcp.f32 %v1133_v56  ;;  %v1222_v60 = vmul.f32 %v4573_v8, %v1130_v42  ;;  %v7670_v42 = vld [vmem:[#allocation27_spill] sm:$0xff] }
 0x404   : > { %v1237_v25 = vsub.f32 2.0, %v1205_v29 }
 0x405   : > { %v1254_v16 = vsub.f32 2.0, %v1222_v60 }
 0x406   : > { %v1269_v0 = vmul.f32 %v4571_v37, %v1237_v25 }
 0x407   : > { %v1286_v3 = vmul.f32 %v4573_v8, %v1254_v16 }
 0x408   : > { %v1301_v1 = vmul.f32 %v7663_v51, %v1269_v0  ;;  %v1302_v24 = vmul.f32 %v7664_v23, %v1269_v0 }
 0x409   : > { %v4575_v45 = vpop.eup %4574  ;;  %v5639_v58 = vpop.permute.xlu2 %2758  ;;  %v1335_v47 = vmul.f32 %v7668_v28, %v1286_v3  ;;  %v1336_v19 = vmul.f32 %v7669_v34, %v1286_v3  ;;  %v4787_v34 = vld [vmem:[%s4927_s15 + $0x8] sm:$0xff] }
 0x40a   : > { %v1223_v9 = vmul.f32 %v4575_v45, %v1133_v56  ;;  %7665 = vst [vmem:[#allocation9_spill] sm:$0xff] %v5639_v58  ;;  %1380 = vmatpush.xpose.msrb.mxu2 %v1301_v1  ;;  %1400 = vmatpush.xpose.msrb.mxu3 %v1302_v24  ;;  %v1127_v12 = vpop.xlane.xlu1 %1126  ;;  %v2761_v32 = vmul.f32 0.0, %v5639_v58 }
 0x40b   : > { %4576 = vrcp.f32 %v1127_v12 }
 0x40c   : > { %v1255_v7 = vsub.f32 2.0, %v1223_v9  ;;  %2767 = vrot.lane.b32.xlu1 %v2761_v32, %s4803_s29 }
 0x40d   : > { %1381 = vmatmul.f32.vlgmr.msrb.gmra.mxu2 %v374_v11  ;;  %1401 = vmatmul.f32.vlgmr.msrb.gmra.mxu3 %v400_v36 }
 0x40e   : > { %v1287_v38 = vmul.f32 %v4575_v45, %v1255_v7 }
 0x410   : > { %v1337_v48 = vmul.f32 %v7666_v53, %v1287_v38  ;;  %v1338_v43 = vmul.f32 %v7667_v21, %v1287_v38  ;;  %v4786_v38 = vld [vmem:[%s4927_s15] sm:$0xff] }
 0x411   : > { %v4577_v15 = vpop.eup %4576 }
 0x412   : > { %v1221_v4 = vmul.f32 %v4577_v15, %v1127_v12  ;;  %1418 = vmatpush.xpose.msrb.mxu0 %v1337_v48  ;;  %1438 = vmatpush.xpose.msrb.mxu1 %v1338_v43  ;;  %v1533_v48 = vld [vmem:[%s7417_s4] sm:$0xff] }
 0x414   : > { %v1253_v63 = vsub.f32 2.0, %v1221_v4  ;;  %2783 = vperm.xlu1 %4339, %v7659_v49  }
 0x416   : > { %1419 = vmatpush.xpose.msrb.mxu0 %v1335_v47  ;;  %1439 = vmatpush.xpose.msrb.mxu1 %v1336_v19  ;;  %v1285_v31 = vmul.f32 %v4577_v15, %v1253_v63 }
 0x418   : > { %v1333_v2 = vmul.f32 %v7670_v42, %v1285_v31  ;;  %v1334_v41 = vmul.f32 %v7671_v39, %v1285_v31  ;;  %v4810_v31 = vmov 22  }
 0x41a   : > { %1420 = vmatpush.xpose.msrb.mxu0 %v1333_v2  ;;  %1440 = vmatpush.xpose.msrb.mxu1 %v1334_v41 }
 0x41c   : > { %4344 = vset.pattern.permute.xlu1 %v4807_v61 }
 0x41d   : > { %1421 = vmatmul.f32.vlgmr.msrb.gmra.mxu0 %v374_v11  ;;  %1441 = vmatmul.f32.vlgmr.msrb.gmra.mxu1 %v400_v36 }
 0x442   : > { %v5650_v22 = vpop.permute.xlu1 %2643 }
 0x443   : > { %7672 = vst [vmem:[#allocation35_spill] sm:$0xff] %v5650_v22 }
 0x456   : > { %v5652_v54 = vpop.permute.xlu1 %2742 }
 0x457   : > { %7673 = vst [vmem:[#allocation25_spill] sm:$0xff] %v5652_v54 }
 0x458   : > { %v5654_v50 = vpop.permute.xlu0 %2836 }
 0x459   : > { %7674 = vst [vmem:[#allocation26_spill] sm:$0xff] %v5654_v50  ;;  %v2841_v44 = vmul.f32 0.0, %v5654_v50 }
 0x45b   : > { %2849 = vrot.lane.b32.xlu1 %v2841_v44, %s4805_s30 }
 0x463   : > { %2921 = vperm.xlu1 %4344, %v7659_v49  }
 0x47e   : > { %v5656_v20 = vpop.permute.xlu1 %2767 }
 0x47f   : > { %7675 = vst [vmem:[#allocation33_spill] sm:$0xff] %v5656_v20 }
 0x486   : > { %v5660_v40 = vpop.permute.xlu1 %2783 }
 0x487   : > { %7676 = vst [vmem:[#allocation6_spill] sm:$0xff] %v5660_v40  ;;  %v2786_v17 = vmul.f32 0.0, %v5660_v40 }
 0x489   : > { %2792 = vrot.lane.b32.xlu2 %v2786_v17, %s4806_s10  ;;  %v4812_v17 = vmov 36  }
 0x490   : > { %v1382_v30 = vpop.f32.mrf.mxu2  ;;  %v1402_v18 = vpop.f32.mrf.mxu3 }
 0x491   : > { %v1403_v35 = vadd.f32 %v1402_v18, %v1382_v30  ;;  %2811 = vperm.xlu2 %4340, %v7659_v49   ;;  %v4813_v30 = vmov 1   ;;  %v4814_v18 = vmov 15  }
 0x492   : > { %4343 = vset.pattern.permute.xlu0 %v4813_v30 }
 0x493   : > { %1468 = vmatpush.msra.mxu0 %v1403_v35  ;;  %2914 = vperm.xlu0 %4343, %v7659_v49   ;;  %v4815_v35 = vmov 2  }
 0x494   : > { %4183 = vmatmul.msk.f32.vlgmr.msra.gmra.mxu0 %vm341_vm0, %v339_v5 }
 0x499   : > { %4342 = vset.pattern.permute.xlu2 %v4808_v59 }
 0x49a   : > { %v1422_v46 = vpop.f32.mrf.mxu0  ;;  %v1442_v33 = vpop.f32.mrf.mxu1 }
 0x49b   : > { %v1443_v26 = vadd.f32 %v1442_v33, %v1422_v46  ;;  %4345 = vset.pattern.permute.xlu0 %v4814_v18  ;;  %v1534_v33 = vld [vmem:[%s7417_s4 + $0x8] sm:$0xff] }
 0x49c   : > { %2945 = vperm.xlu0 %4345, %v7659_v49  }
 0x49d   : > { %1488 = vmatpush.msra.mxu1 %v1443_v26 }
 0x49e   : > { %4184 = vmatmul.msk.f32.vlgmr.msra.gmra.mxu1 %vm341_vm0, %v339_v5 }
 0x4cd   : > { %v5695_v2 = vpop.permute.xlu1 %2849 }
 0x4ce   : > { %7682 = vst [vmem:[#allocation5_spill] sm:$0xff] %v5695_v2 }
 0x4d5   : > { %v5701_v14 = vpop.permute.xlu1 %2921 }
 0x4d6   : > { %7684 = vst [vmem:[#allocation22_spill] sm:$0xff] %v5701_v14  ;;  %v2924_v44 = vmul.f32 0.0, %v5701_v14 }
 0x4e3   : > { %v5671_v27 = vpop.permute.xlu2 %2792 }
 0x4e4   : > { %7677 = vst [vmem:[#allocation7_spill] sm:$0xff] %v5671_v27 }
 0x4eb   : > { %v5673_v37 = vpop.permute.xlu2 %2811 }
 0x4ec   : > { %7678 = vst [vmem:[#allocation19_spill] sm:$0xff] %v5673_v37  ;;  %v2816_v62 = vmul.f32 0.0, %v5673_v37 }
 0x4ee   : > { %2824 = vrot.lane.b32.xlu2 %v2816_v62, %s4809_s16  ;;  %v4816_v62 = vmov 29  }
 0x4ef   : > { %4347 = vset.pattern.permute.xlu0 %v4816_v62 }
 0x4f6   : > { %2861 = vperm.xlu2 %4342, %v7659_v49  }
 0x4fe   : > { %4346 = vset.pattern.permute.xlu2 %v4810_v31 }
 0x511   : > { %v1470_v55 = vpop.f32.mrf.mxu0 }
 0x512   : > { %v1471_v6 = vadd.f32 %v1470_v55, %v5630_v52 }
 0x514   : > { %v4185_v13 = vmul.f32 -1.442695, %v1471_v6 }
 0x516   : > { %4578 = vpow2.f32 %v4185_v13  ;;  %v4817_v13 = vmov 16  }
 0x51b   : > { %v1490_v29 = vpop.f32.mrf.mxu1 }
 0x51c   : > { %v1491_v56 = vadd.f32 %v1490_v29, %v5630_v52  ;;  %v4579_v25 = vpop.eup %4578  ;;  %v4818_v29 = vmov 30  }
 0x51d   : > { %v1499_v8 = vadd.f32 1.0, %v4579_v25  ;;  %v4820_v25 = vmov 9  }
 0x51e   : > { %v4186_v0 = vmul.f32 -1.442695, %v1491_v56  ;;  %v4819_v56 = vmov 43  }
 0x51f   : > { %4580 = vrcp.f32 %v1499_v8  ;;  %v1512_v45 = vand.u32 2147483648, %v1499_v8  ;;  %v1510_v9 = vand.u32 2147483647, %v1499_v8  ;;  %vm1506_vm2 = vweird.f32 %v1499_v8 }
 0x520   : > { %4582 = vpow2.f32 %v4186_v0  ;;  %v1535_v0 = vld [vmem:[%s7417_s4 + $0x10] sm:$0xff] }
 0x521   : > { %v1513_v52 = vor.u32 1.1754944e-38, %v1512_v45  ;;  %vm1511_vm4 = vcmp.eq.f32.partialorder %v1510_v9, 8.507059e+37 }
 0x525   : > { %v4581_v60 = vpop.eup %4580 }
 0x526   : > { %v4583_v51 = vpop.eup %4582  ;;  %v1502_v1 = vmul.f32 %v4581_v60, %v1499_v8  ;;  %vm1507_vm1 = vweird.f32 %v4581_v60  ;;  %v4821_v8 = vmov 23  }
 0x527   : > { %v1500_v23 = vadd.f32 1.0, %v4583_v51  ;;  %vm1508_vm3 = vmor %vm1506_vm2, %vm1507_vm1  ;;  %vm3266_vm2 = vcmask 400384  }
 0x528   : > { %v1503_v24 = vsub.f32 1.0, %v1502_v1 }
 0x529   : > { %4584 = vrcp.f32 %v1500_v23  ;;  %v1527_v43 = vand.u32 2147483648, %v1500_v23  ;;  %v1525_v15 = vand.u32 2147483647, %v1500_v23  ;;  %vm1521_vm6 = vweird.f32 %v1500_v23 }
 0x52a   : > { %v1504_v11 = vmul.f32 %v4581_v60, %v1503_v24 }
 0x52b   : > { %v1528_v63 = vor.u32 1.1754944e-38, %v1527_v43  ;;  %vm1526_vm8 = vcmp.eq.f32.partialorder %v1525_v15, 8.507059e+37 }
 0x52c   : > { %v1505_v12 = vadd.f32 %v4581_v60, %v1504_v11 }
 0x52e   : > { %v1509_v36 = vsel %vm1508_vm3, %v4581_v60, %v1505_v12  ;;  %vm3085_vm3 = vcmask 408576  }
 0x52f   : > { %v4585_v32 = vpop.eup %4584  ;;  %v1514_v16 = vsel %vm1511_vm4, %v1513_v52, %v1509_v36 }
 0x530   : > { %v1517_v7 = vmul.f32 %v4585_v32, %v1500_v23  ;;  %v5681_v53 = vmul.f32 %v4786_v38, %v1514_v16  ;;  %vm1522_vm5 = vweird.f32 %v4585_v32  ;;  %v5754_v16 = vpop.permute.xlu0 %2914 }
 0x531   : > { %vm1523_vm7 = vmor %vm1521_vm6, %vm1522_vm5  ;;  %7693 = vst [vmem:[#allocation31_spill] sm:$0xff] %v5754_v16 }
 0x532   : > { %7679 = vst [vmem:[#allocation20_spill] sm:$0xff] %v5681_v53  ;;  %v1518_v21 = vsub.f32 1.0, %v1517_v7  ;;  %1562 = vmatpush.msrb.mxu0 %v5681_v53 }
 0x533   : > { %4187 = vmatmul.msk.f32.vlgmr.msrb.gmra.mxu0 %vm341_vm0, %v1533_v48 }
 0x534   : > { %v1519_v3 = vmul.f32 %v4585_v32, %v1518_v21 }
 0x536   : > { %v1520_v4 = vadd.f32 %v4585_v32, %v1519_v3 }
 0x538   : > { %v1524_v28 = vsel %vm1523_vm7, %v4585_v32, %v1520_v4  ;;  %v5760_v7 = vpop.permute.xlu0 %2945 }
 0x539   : > { %v1529_v47 = vsel %vm1526_vm8, %v1528_v63, %v1524_v28  ;;  %7694 = vst [vmem:[#allocation13_spill] sm:$0xff] %v5760_v7  ;;  %v2948_v43 = vmul.f32 0.0, %v5760_v7  ;;  %vm3801_vm8 = vcmask 375808  }
 0x53a   : > { %v5689_v19 = vmul.f32 %v4787_v34, %v1529_v47 }
 0x53b   : > { %4188 = vmatmul.msk.f32.gmra.mxu0 %vm341_vm0, %v1534_v33 }
 0x53c   : > { %7680 = vst [vmem:[#allocation15_spill] sm:$0xff] %v5689_v19  ;;  %1588 = vmatpush.msrb.mxu1 %v5689_v19 }
 0x53d   : > { %4190 = vmatmul.msk.f32.vlgmr.msrb.gmra.mxu1 %vm341_vm0, %v1533_v48 }
 0x543   : > { %4189 = vmatmul.msk.f32.gmra.mxu0 %vm341_vm0, %v1535_v0 }
 0x545   : > { %4191 = vmatmul.msk.f32.gmra.mxu1 %vm341_vm0, %v1534_v33 }
 0x548   : > { %v5693_v42 = vpop.permute.xlu2 %2824 }
 0x549   : > { %7681 = vst [vmem:[#allocation4_spill] sm:$0xff] %v5693_v42 }
 0x54d   : > { %4192 = vmatmul.msk.f32.gmra.mxu1 %vm341_vm0, %v1535_v0 }
 0x550   : > { %v5697_v39 = vpop.permute.xlu2 %2861 }
 0x551   : > { %7683 = vst [vmem:[#allocation34_spill] sm:$0xff] %v5697_v39  ;;  %v2866_v41 = vmul.f32 0.0, %v5697_v39 }
 0x553   : > { %2874 = vrot.lane.b32.xlu2 %v2866_v41, %s4811_s19 }
 0x55b   : > { %2930 = vrot.lane.b32.xlu2 %v2924_v44, %s4800_s28 }
 0x563   : > { %2969 = vperm.xlu2 %4346, %v7659_v49  }
 0x56b   : > { %4348 = vset.pattern.permute.xlu2 %v4812_v17 }
 0x56c   : > { %3017 = vperm.xlu2 %4348, %v7659_v49  }
 0x574   : > { %4350 = vset.pattern.permute.xlu2 %v4815_v35 }
 0x5ad   : > { %v5709_v5 = vpop.permute.xlu2 %2874 }
 0x5ae   : > { %7685 = vst [vmem:[#allocation23_spill] sm:$0xff] %v5709_v5 }
 0x5b0   : > { %v1564_v46 = vpop.f32.mrf.mxu0 }
 0x5b1   : > { %1599 = vxpose.xlu1.b32.start.end [1/1] (short) %v1564_v46, 128 }
 0x5b5   : > { %v5716_v26 = vpop.permute.xlu2 %2930 }
 0x5b6   : > { %7686 = vst [vmem:[#allocation16_spill] sm:$0xff] %v5716_v26 }
 0x5b8   : > { %v1567_v23 = vpop.f32.mrf.mxu0 }
 0x5b9   : > { %1774 = vmatpush.msra.mxu0 %v1567_v23 }
 0x5ba   : > { %v1590_v51 = vpop.f32.mrf.mxu1 }
 0x5bd   : > { %v5718_v61 = vpop.permute.xlu2 %2969 }
 0x5be   : > { %7687 = vst [vmem:[#allocation17_spill] sm:$0xff] %v5718_v61  ;;  %v2972_v59 = vmul.f32 0.0, %v5718_v61 }
 0x5c0   : > { %2978 = vrot.lane.b32.xlu0 %v2972_v59, %s4806_s10 }
 0x5c2   : > { %v1593_v24 = vpop.f32.mrf.mxu1 }
 0x5c3   : > { %1887 = vmatpush.msra.mxu1 %v1593_v24 }
 0x5c6   : > { %v5722_v55 = vpop.permute.xlu2 %3017 }
 0x5c7   : > { %7688 = vst [vmem:[#allocation14_spill] sm:$0xff] %v5722_v55  ;;  %v3022_v6 = vmul.f32 0.0, %v5722_v55 }
 0x5c8   : > { %2993 = vperm.xlu0 %4347, %v7659_v49  }
 0x5c9   : > { %3030 = vrot.lane.b32.xlu2 %v3022_v6, %s4805_s30  ;;  %v5806_v6 = vpop.f32.mrf.mxu0 }
 0x5ca   : > { %7701 = vst [vmem:[#allocation30_spill] sm:$0xff] %v5806_v6 }
 0x5d0   : > { %4349 = vset.pattern.permute.xlu0 %v4819_v56 }
 0x5d1   : > { %3095 = vperm.xlu2 %4350, %v7659_v49   ;;  %3041 = vperm.xlu0 %4349, %v7659_v49  }
 0x5d9   : > { %4352 = vset.pattern.permute.xlu2 %v4817_v13  ;;  %4351 = vset.pattern.permute.xlu0 %v4820_v25  ;;  %v5808_v13 = vpop.f32.mrf.mxu1 }
 0x5da   : > { %3126 = vperm.xlu2 %4352, %v7659_v49   ;;  %3102 = vperm.xlu0 %4351, %v7659_v49   ;;  %7702 = vst [vmem:[#allocation27_spill] sm:$0xff] %v5808_v13 }
 0x5e2   : > { %4354 = vset.pattern.permute.xlu2 %v4818_v29  ;;  %4353 = vset.pattern.permute.xlu0 %v4821_v8 }
 0x5e3   : > { %3174 = vperm.xlu2 %4354, %v7659_v49  }
 0x623   : > { %v5737_v60 = vpop.permute.xlu2 %3030 }
 0x624   : > { %7689 = vst [vmem:[#allocation24_spill] sm:$0xff] %v5737_v60 }
 0x62b   : > { %v5739_v1 = vpop.permute.xlu2 %3095 }
 0x62c   : > { %7690 = vst [vmem:[#allocation12_spill] sm:$0xff] %v5739_v1 }
 0x632   : > { %v5764_v48 = vpop.permute.xlu0 %2978 }
 0x633   : > { %7695 = vst [vmem:[#allocation36_spill] sm:$0xff] %v5764_v48 }
 0x634   : > { %v5741_v45 = vpop.permute.xlu2 %3126 }
 0x635   : > { %7691 = vst [vmem:[#allocation37_spill] sm:$0xff] %v5741_v45  ;;  %v3129_v11 = vmul.f32 0.0, %v5741_v45 }
 0x637   : > { %3135 = vrot.lane.b32.xlu0 %v3129_v11, %s4803_s29 }
 0x63a   : > { %v5769_v3 = vpop.permute.xlu0 %2993 }
 0x63b   : > { %7696 = vst [vmem:[#allocation21_spill] sm:$0xff] %v5769_v3  ;;  %v2998_v4 = vmul.f32 0.0, %v5769_v3 }
 0x63d   : > { %v5745_v9 = vpop.permute.xlu2 %3174 }
 0x63e   : > { %7692 = vst [vmem:[#allocation32_spill] sm:$0xff] %v5745_v9  ;;  %v3179_v12 = vmul.f32 0.0, %v5745_v9 }
 0x63f   : > { %3150 = vperm.xlu0 %4353, %v7659_v49  }
 0x640   : > { %3187 = vrot.lane.b32.xlu2 %v3179_v12, %s4809_s16 }
 0x643   : > { %v5776_v63 = vpop.permute.xlu0 %3041 }
 0x644   : > { %7697 = vst [vmem:[#allocation10_spill] sm:$0xff] %v5776_v63  ;;  %v3046_v47 = vmul.f32 0.0, %v5776_v63 }
 0x64c   : > { %v5784_v31 = vpop.permute.xlu0 %3102 }
 0x64d   : > { %7698 = vst [vmem:[#allocation11_spill] sm:$0xff] %v5784_v31  ;;  %v3105_v41 = vmul.f32 0.0, %v5784_v31 }
 0x655   : > { %v1615_v52 = vpop.trf.xlu1 }
 0x656   : > { %4193 = vmatmul.msk.f32.vlgmr.msra.gmra.mxu0 %vm341_vm0, %v1615_v52  ;;  %4225 = vmatmul.msk.f32.vlgmr.msra.gmra.mxu1 %vm341_vm0, %v1615_v52 }
 0x65d   : > { %v1616_v36 = vpop.trf.xlu1 }
 0x65e   : > { %4194 = vmatmul.msk.f32.gmra.mxu0 %vm341_vm0, %v1616_v36  ;;  %4226 = vmatmul.msk.f32.gmra.mxu1 %vm341_vm0, %v1616_v36 }
 0x665   : > { %v1617_v32 = vpop.trf.xlu1 }
 0x666   : > { %4195 = vmatmul.msk.f32.gmra.mxu0 %vm341_vm0, %v1617_v32  ;;  %4227 = vmatmul.msk.f32.gmra.mxu1 %vm341_vm0, %v1617_v32 }
 0x667   : > { %1631 = vxpose.xlu2.b32.start.end [1/1] (short) %v1590_v51, 128 }
 0x66d   : > { %v1618_v49 = vpop.trf.xlu1 }
 0x66e   : > { %4196 = vmatmul.msk.f32.gmra.mxu0 %vm341_vm0, %v1618_v49  ;;  %4228 = vmatmul.msk.f32.gmra.mxu1 %vm341_vm0, %v1618_v49 }
 0x675   : > { %v1619_v38 = vpop.trf.xlu1 }
 0x676   : > { %4197 = vmatmul.msk.f32.gmra.mxu0 %vm341_vm0, %v1619_v38  ;;  %4229 = vmatmul.msk.f32.gmra.mxu1 %vm341_vm0, %v1619_v38 }
 0x67d   : > { %v1620_v21 = vpop.trf.xlu1 }
 0x67e   : > { %4198 = vmatmul.msk.f32.gmra.mxu0 %vm341_vm0, %v1620_v21  ;;  %4230 = vmatmul.msk.f32.gmra.mxu1 %vm341_vm0, %v1620_v21 }
 0x683   : > { %2954 = vrot.lane.b32.xlu1 %v2948_v43, %s4803_s29 }
 0x685   : > { %v1621_v15 = vpop.trf.xlu1 }
 0x686   : > { %4199 = vmatmul.msk.f32.gmra.mxu0 %vm341_vm0, %v1621_v15  ;;  %4231 = vmatmul.msk.f32.gmra.mxu1 %vm341_vm0, %v1621_v15 }
 0x68b   : > { %3006 = vrot.lane.b32.xlu1 %v2998_v4, %s4809_s16 }
 0x68d   : > { %v1622_v28 = vpop.trf.xlu1 }
 0x68e   : > { %4200 = vmatmul.msk.f32.gmra.mxu0 %vm341_vm0, %v1622_v28  ;;  %4232 = vmatmul.msk.f32.gmra.mxu1 %vm341_vm0, %v1622_v28 }
 0x693   : > { %3054 = vrot.lane.b32.xlu1 %v3046_v47, %s4811_s19 }
 0x695   : > { %v1623_v34 = vpop.trf.xlu1 }
 0x696   : > { %4201 = vmatmul.msk.f32.gmra.mxu0 %vm341_vm0, %v1623_v34  ;;  %4233 = vmatmul.msk.f32.gmra.mxu1 %vm341_vm0, %v1623_v34 }
 0x69a   : > { %v5840_v21 = vpop.permute.xlu2 %3187 }
 0x69b   : > { %3111 = vrot.lane.b32.xlu1 %v3105_v41, %s4800_s28  ;;  %7703 = vst [vmem:[#allocation28_spill] sm:$0xff] %v5840_v21 }
 0x69d   : > { %v1624_v44 = vpop.trf.xlu1 }
 0x69e   : > { %4202 = vmatmul.msk.f32.gmra.mxu0 %vm341_vm0, %v1624_v44  ;;  %4234 = vmatmul.msk.f32.gmra.mxu1 %vm341_vm0, %v1624_v44 }
 0x6a5   : > { %v1625_v17 = vpop.trf.xlu1 }
 0x6a6   : > { %4203 = vmatmul.msk.f32.gmra.mxu0 %vm341_vm0, %v1625_v17  ;;  %4235 = vmatmul.msk.f32.gmra.mxu1 %vm341_vm0, %v1625_v17 }
 0x6a9   : > { %v5792_v30 = vpop.permute.xlu0 %3135 }
 0x6aa   : > { %7699 = vst [vmem:[#allocation38_spill] sm:$0xff] %v5792_v30 }
 0x6ad   : > { %v1626_v18 = vpop.trf.xlu1 }
 0x6ae   : > { %4204 = vmatmul.msk.f32.gmra.mxu0 %vm341_vm0, %v1626_v18  ;;  %4236 = vmatmul.msk.f32.gmra.mxu1 %vm341_vm0, %v1626_v18 }
 0x6b1   : > { %v5796_v35 = vpop.permute.xlu0 %3150 }
 0x6b2   : > { %7700 = vst [vmem:[#allocation29_spill] sm:$0xff] %v5796_v35  ;;  %v3153_v46 = vmul.f32 0.0, %v5796_v35 }
 0x6b4   : > { %3159 = vrot.lane.b32.xlu1 %v3153_v46, %s4806_s10 }
 0x6b5   : > { %v1627_v33 = vpop.trf.xlu1 }
 0x6b6   : > { %4205 = vmatmul.msk.f32.gmra.mxu0 %vm341_vm0, %v1627_v33  ;;  %4237 = vmatmul.msk.f32.gmra.mxu1 %vm341_vm0, %v1627_v33 }
 0x6bd   : > { %v1628_v59 = vpop.trf.xlu1 }
 0x6be   : > { %4206 = vmatmul.msk.f32.gmra.mxu0 %vm341_vm0, %v1628_v59  ;;  %4238 = vmatmul.msk.f32.gmra.mxu1 %vm341_vm0, %v1628_v59 }
 0x6c5   : > { %v1629_v62 = vpop.trf.xlu1 }
 0x6c6   : > { %4207 = vmatmul.msk.f32.gmra.mxu0 %vm341_vm0, %v1629_v62  ;;  %4239 = vmatmul.msk.f32.gmra.mxu1 %vm341_vm0, %v1629_v62 }
 0x6cd   : > { %v1630_v29 = vpop.trf.xlu1 }
 0x6ce   : > { %4208 = vmatmul.msk.f32.gmra.mxu0 %vm341_vm0, %v1630_v29  ;;  %4240 = vmatmul.msk.f32.gmra.mxu1 %vm341_vm0, %v1630_v29 }
 0x6d3   : > { %v5812_v56 = vpop.f32.mrf.mxu0  ;;  %v5814_v25 = vpop.f32.mrf.mxu1 }
 0x6d4   : > { %v1985_v30 = vmax.f32 %v5812_v56, %v5814_v25 }
 0x6db   : > { %v5816_v8 = vpop.f32.mrf.mxu0  ;;  %v5818_v0 = vpop.f32.mrf.mxu1 }
 0x6dc   : > { %v1988_v51 = vmax.f32 %v5816_v8, %v5818_v0 }
 0x6de   : > { %1989 = vmax.xlane.f32.xlu1 %v1988_v51 }
 0x6e3   : > { %v5822_v23 = vpop.f32.mrf.mxu0  ;;  %v5824_v24 = vpop.f32.mrf.mxu1 }
 0x6e4   : > { %v1991_v11 = vmax.f32 %v5822_v23, %v5824_v24 }
 0x6e6   : > { %1992 = vmax.xlane.f32.xlu0 %v1991_v11 }
 0x6eb   : > { %v5828_v12 = vpop.f32.mrf.mxu0  ;;  %v5830_v52 = vpop.f32.mrf.mxu1 }
 0x6ec   : > { %v1994_v36 = vmax.f32 %v5828_v12, %v5830_v52 }
 0x6ee   : > { %1995 = vmax.xlane.f32.xlu0 %v1994_v36 }
 0x6f3   : > { %v5834_v32 = vpop.f32.mrf.mxu0  ;;  %v5836_v49 = vpop.f32.mrf.mxu1 }
 0x6f4   : > { %v1997_v38 = vmax.f32 %v5834_v32, %v5836_v49 }
 0x6f5   : > { %v5920_v5 = vpop.permute.xlu1 %2954 }
 0x6f6   : > { %1998 = vmax.xlane.f32.xlu0 %v1997_v38  ;;  %7704 = vst [vmem:[#allocation39_spill] sm:$0xff] %v5920_v5 }
 0x6fb   : > { %v5842_v43 = vpop.f32.mrf.mxu0  ;;  %v5844_v15 = vpop.f32.mrf.mxu1 }
 0x6fc   : > { %v2000_v4 = vmax.f32 %v5842_v43, %v5844_v15 }
 0x6fe   : > { %2001 = vmax.xlane.f32.xlu0 %v2000_v4 }
 0x700   : > { %v1647_v28 = vpop.trf.xlu2 }
 0x701   : > { %4209 = vmatmul.msk.f32.gmra.mxu0 %vm341_vm0, %v1647_v28  ;;  %4241 = vmatmul.msk.f32.gmra.mxu1 %vm341_vm0, %v1647_v28 }
 0x703   : > { %v5850_v47 = vpop.f32.mrf.mxu0  ;;  %v5852_v34 = vpop.f32.mrf.mxu1 }
 0x704   : > { %v2003_v41 = vmax.f32 %v5850_v47, %v5852_v34 }
 0x706   : > { %2004 = vmax.xlane.f32.xlu0 %v2003_v41 }
 0x708   : > { %v1648_v44 = vpop.trf.xlu2 }
 0x709   : > { %4210 = vmatmul.msk.f32.gmra.mxu0 %vm341_vm0, %v1648_v44  ;;  %4242 = vmatmul.msk.f32.gmra.mxu1 %vm341_vm0, %v1648_v44 }
 0x70b   : > { %v5858_v17 = vpop.f32.mrf.mxu0  ;;  %v5860_v18 = vpop.f32.mrf.mxu1 }
 0x70c   : > { %v2006_v46 = vmax.f32 %v5858_v17, %v5860_v18 }
 0x70e   : > { %2007 = vmax.xlane.f32.xlu0 %v2006_v46 }
 0x710   : > { %v1649_v33 = vpop.trf.xlu2 }
 0x711   : > { %4211 = vmatmul.msk.f32.gmra.mxu0 %vm341_vm0, %v1649_v33  ;;  %4243 = vmatmul.msk.f32.gmra.mxu1 %vm341_vm0, %v1649_v33 }
 0x713   : > { %v5866_v59 = vpop.f32.mrf.mxu0  ;;  %v5868_v62 = vpop.f32.mrf.mxu1 }
 0x714   : > { %v2009_v29 = vmax.f32 %v5866_v59, %v5868_v62 }
 0x716   : > { %2010 = vmax.xlane.f32.xlu0 %v2009_v29 }
 0x718   : > { %v1650_v51 = vpop.trf.xlu2 }
 0x719   : > { %4212 = vmatmul.msk.f32.gmra.mxu0 %vm341_vm0, %v1650_v51  ;;  %4244 = vmatmul.msk.f32.gmra.mxu1 %vm341_vm0, %v1650_v51 }
 0x71b   : > { %v5874_v11 = vpop.f32.mrf.mxu0  ;;  %v5876_v36 = vpop.f32.mrf.mxu1 }
 0x71c   : > { %v2012_v38 = vmax.f32 %v5874_v11, %v5876_v36 }
 0x71e   : > { %2013 = vmax.xlane.f32.xlu0 %v2012_v38 }
 0x720   : > { %v1651_v4 = vpop.trf.xlu2 }
 0x721   : > { %4213 = vmatmul.msk.f32.gmra.mxu0 %vm341_vm0, %v1651_v4  ;;  %4245 = vmatmul.msk.f32.gmra.mxu1 %vm341_vm0, %v1651_v4 }
 0x723   : > { %v5882_v28 = vpop.f32.mrf.mxu0  ;;  %v5884_v41 = vpop.f32.mrf.mxu1 }
 0x724   : > { %v2015_v44 = vmax.f32 %v5882_v28, %v5884_v41 }
 0x726   : > { %2016 = vmax.xlane.f32.xlu0 %v2015_v44 }
 0x728   : > { %v1652_v46 = vpop.trf.xlu2 }
 0x729   : > { %4214 = vmatmul.msk.f32.gmra.mxu0 %vm341_vm0, %v1652_v46  ;;  %4246 = vmatmul.msk.f32.gmra.mxu1 %vm341_vm0, %v1652_v46 }
 0x72b   : > { %v5890_v33 = vpop.f32.mrf.mxu0  ;;  %v5892_v29 = vpop.f32.mrf.mxu1 }
 0x72c   : > { %v2018_v51 = vmax.f32 %v5890_v33, %v5892_v29 }
 0x72e   : > { %2019 = vmax.xlane.f32.xlu0 %v2018_v51 }
 0x730   : > { %v1653_v38 = vpop.trf.xlu2 }
 0x731   : > { %4215 = vmatmul.msk.f32.gmra.mxu0 %vm341_vm0, %v1653_v38  ;;  %4247 = vmatmul.msk.f32.gmra.mxu1 %vm341_vm0, %v1653_v38 }
 0x733   : > { %v5898_v4 = vpop.f32.mrf.mxu0  ;;  %v5900_v44 = vpop.f32.mrf.mxu1 }
 0x734   : > { %v2021_v46 = vmax.f32 %v5898_v4, %v5900_v44 }
 0x736   : > { %2022 = vmax.xlane.f32.xlu0 %v2021_v46 }
 0x738   : > { %v1654_v19 = vpop.trf.xlu2 }
 0x739   : > { %4216 = vmatmul.msk.f32.gmra.mxu0 %vm341_vm0, %v1654_v19  ;;  %4248 = vmatmul.msk.f32.gmra.mxu1 %vm341_vm0, %v1654_v19 }
 0x73b   : > { %v5906_v53 = vpop.f32.mrf.mxu0  ;;  %v5908_v51 = vpop.f32.mrf.mxu1 }
 0x73c   : > { %v2024_v38 = vmax.f32 %v5906_v53, %v5908_v51 }
 0x73e   : > { %2025 = vmax.xlane.f32.xlu0 %v2024_v38 }
 0x740   : > { %v1655_v21 = vpop.trf.xlu2 }
 0x741   : > { %4217 = vmatmul.msk.f32.gmra.mxu0 %vm341_vm0, %v1655_v21  ;;  %4249 = vmatmul.msk.f32.gmra.mxu1 %vm341_vm0, %v1655_v21 }
 0x743   : > { %v5914_v60 = vpop.f32.mrf.mxu0  ;;  %v5916_v46 = vpop.f32.mrf.mxu1 }
 0x744   : > { %v2027_v19 = vmax.f32 %v5914_v60, %v5916_v46 }
 0x746   : > { %2028 = vmax.xlane.f32.xlu0 %v2027_v19  ;;  %v5934_v19 = vpop.permute.xlu1 %3006 }
 0x747   : > { %7705 = vst [vmem:[#allocation40_spill] sm:$0xff] %v5934_v19 }
 0x748   : > { %v1656_v2 = vpop.trf.xlu2 }
 0x749   : > { %4218 = vmatmul.msk.f32.gmra.mxu0 %vm341_vm0, %v1656_v2  ;;  %4250 = vmatmul.msk.f32.gmra.mxu1 %vm341_vm0, %v1656_v2 }
 0x74b   : > { %v5924_v38 = vpop.f32.mrf.mxu0  ;;  %v5926_v42 = vpop.f32.mrf.mxu1 }
 0x74c   : > { %v2030_v21 = vmax.f32 %v5924_v38, %v5926_v42 }
 0x74e   : > { %2031 = vmax.xlane.f32.xlu0 %v2030_v21  ;;  %v5940_v26 = vpop.permute.xlu1 %3054 }
 0x74f   : > { %7706 = vst [vmem:[#allocation41_spill] sm:$0xff] %v5940_v26 }
 0x750   : > { %v1657_v1 = vpop.trf.xlu2  ;;  %1986 = vmax.xlane.f32.xlu2 %v1985_v30 }
 0x751   : > { %4219 = vmatmul.msk.f32.gmra.mxu0 %vm341_vm0, %v1657_v1  ;;  %4251 = vmatmul.msk.f32.gmra.mxu1 %vm341_vm0, %v1657_v1 }
 0x758   : > { %v1658_v2 = vpop.trf.xlu2 }
 0x759   : > { %4252 = vmatmul.msk.f32.gmra.mxu1 %vm341_vm0, %v1658_v2  ;;  %v1993_v48 = vpop.xlane.xlu0 %1992  ;;  %4220 = vmatmul.msk.f32.gmra.mxu0 %vm341_vm0, %v1658_v2 }
 0x75a   : > { %v2085_v5 = vsub.f32 %v5822_v23, %v1993_v48  ;;  %v2086_v16 = vsub.f32 %v5824_v24, %v1993_v48  ;;  %v5950_v23 = vpop.permute.xlu1 %3111 }
 0x75b   : > { %7709 = vst [vmem:[#allocation44_spill] sm:$0xff] %v5950_v23 }
 0x75c   : > { %v2153_v21 = vmul.f32 1.442695, %v2085_v5  ;;  %v2155_v30 = vmul.f32 1.442695, %v2086_v16 }
 0x75e   : > { %4586 = vpow2.f32 %v2153_v21 }
 0x75f   : > { %4588 = vpow2.f32 %v2155_v30 }
 0x760   : > { %v1659_v27 = vpop.trf.xlu2 }
 0x761   : > { %4253 = vmatmul.msk.f32.gmra.mxu1 %vm341_vm0, %v1659_v27  ;;  %v5943_v1 = vpop.xlane.xlu0 %1995  ;;  %4221 = vmatmul.msk.f32.gmra.mxu0 %vm341_vm0, %v1659_v27 }
 0x762   : > { %v5956_v24 = vpop.permute.xlu1 %3159 }
 0x763   : > { %7710 = vst [vmem:[#allocation45_spill] sm:$0xff] %v5956_v24 }
 0x764   : > { %v5946_v19 = vpop.eup %4586 }
 0x765   : > { %7707 = vst [vmem:[#allocation42_spill] sm:$0xff] %v5946_v19  ;;  %v5948_v2 = vpop.eup %4588 }
 0x766   : > { %7708 = vst [vmem:[#allocation43_spill] sm:$0xff] %v5948_v2  ;;  %v2279_v48 = vadd.f32 %v5948_v2, %v5946_v19 }
 0x768   : > { %2280 = vadd.xlane.f32.xlu1 %v2279_v48  ;;  %v1660_v5 = vpop.trf.xlu2 }
 0x769   : > { %4254 = vmatmul.msk.f32.gmra.mxu1 %vm341_vm0, %v1660_v5  ;;  %v1999_v16 = vpop.xlane.xlu0 %1998  ;;  %4222 = vmatmul.msk.f32.gmra.mxu0 %vm341_vm0, %v1660_v5 }
 0x76a   : > { %v1990_v5 = vpop.xlane.xlu1 %1989  ;;  %v2089_v39 = vsub.f32 %v5834_v32, %v1999_v16  ;;  %v2090_v45 = vsub.f32 %v5836_v49, %v1999_v16 }
 0x76c   : > { %v2161_v3 = vmul.f32 1.442695, %v2089_v39  ;;  %v2163_v61 = vmul.f32 1.442695, %v2090_v45 }
 0x770   : > { %v1661_v21 = vpop.trf.xlu2 }
 0x771   : > { %4255 = vmatmul.msk.f32.gmra.mxu1 %vm341_vm0, %v1661_v21  ;;  %v2002_v27 = vpop.xlane.xlu0 %2001  ;;  %4223 = vmatmul.msk.f32.gmra.mxu0 %vm341_vm0, %v1661_v21  ;;  %v2083_v21 = vsub.f32 %v5816_v8, %v1990_v5 }
 0x772   : > { %v2091_v30 = vsub.f32 %v5842_v43, %v2002_v27  ;;  %v2092_v26 = vsub.f32 %v5844_v15, %v2002_v27  ;;  %v2084_v43 = vsub.f32 %v5818_v0, %v1990_v5 }
 0x774   : > { %v2165_v23 = vmul.f32 1.442695, %v2091_v30  ;;  %v2167_v48 = vmul.f32 1.442695, %v2092_v26  ;;  %v2151_v30 = vmul.f32 1.442695, %v2084_v43 }
 0x776   : > { %4590 = vpow2.f32 %v2165_v23 }
 0x777   : > { %4592 = vpow2.f32 %v2167_v48 }
 0x778   : > { %v1662_v20 = vpop.trf.xlu2 }
 0x779   : > { %4256 = vmatmul.msk.f32.gmra.mxu1 %vm341_vm0, %v1662_v20  ;;  %4224 = vmatmul.msk.f32.gmra.mxu0 %vm341_vm0, %v1662_v20  ;;  %v2149_v20 = vmul.f32 1.442695, %v2083_v21  ;;  %v5978_v27 = vpop.xlane.xlu0 %2004 }
 0x77b   : > { %4594 = vpow2.f32 %v2149_v20 }
 0x77c   : > { %v5964_v24 = vpop.eup %4590  ;;  %4596 = vpow2.f32 %v2151_v30 }
 0x77d   : > { %v5966_v57 = vpop.eup %4592  ;;  %4598 = vpow2.f32 %v2161_v3 }
 0x77e   : > { %7711 = vst [vmem:[#allocation46_spill] sm:$0xff] %v5966_v57  ;;  %v5970_v54 = vpop.f32.mrf.mxu0  ;;  %v5972_v15 = vpop.f32.mrf.mxu1  ;;  %v2288_v26 = vadd.f32 %v5966_v57, %v5964_v24  ;;  %4600 = vpow2.f32 %v2163_v61 }
 0x77f   : > { %v2033_v23 = vmax.f32 %v5970_v54, %v5972_v15 }
 0x780   : > { %2289 = vadd.xlane.f32.xlu1 %v2288_v26 }
 0x781   : > { %2034 = vmax.xlane.f32.xlu0 %v2033_v23  ;;  %v5986_v5 = vpop.eup %4594  ;;  %v2008_v9 = vpop.xlane.xlu0 %2007 }
 0x782   : > { %7712 = vst [vmem:[#allocation47_spill] sm:$0xff] %v5986_v5  ;;  %v5988_v55 = vpop.eup %4596  ;;  %v2096_v58 = vsub.f32 %v5860_v18, %v2008_v9 }
 0x783   : > { %7713 = vst [vmem:[#allocation48_spill] sm:$0xff] %v5988_v55  ;;  %v2276_v43 = vadd.f32 %v5988_v55, %v5986_v5  ;;  %v6020_v16 = vpop.eup %4598 }
 0x784   : > { %7714 = vst [vmem:[#allocation49_spill] sm:$0xff] %v6020_v16  ;;  %v6022_v50 = vpop.eup %4600 }
 0x785   : > { %7715 = vst [vmem:[#allocation50_spill] sm:$0xff] %v6022_v50 }
 0x786   : > { %v5980_v8 = vpop.f32.mrf.mxu0  ;;  %v5982_v0 = vpop.f32.mrf.mxu1 }
 0x787   : > { %v2036_v48 = vmax.f32 %v5980_v8, %v5982_v0 }
 0x789   : > { %2037 = vmax.xlane.f32.xlu0 %v2036_v48  ;;  %v2011_v23 = vpop.xlane.xlu0 %2010 }
 0x78a   : > { %v2097_v39 = vsub.f32 %v5866_v59, %v2011_v23  ;;  %v2098_v45 = vsub.f32 %v5868_v62, %v2011_v23 }
 0x78c   : > { %v2177_v35 = vmul.f32 1.442695, %v2097_v39  ;;  %v2179_v31 = vmul.f32 1.442695, %v2098_v45  ;;  %v2175_v45 = vmul.f32 1.442695, %v2096_v58 }
 0x78e   : > { %v5990_v21 = vpop.f32.mrf.mxu0  ;;  %v5992_v26 = vpop.f32.mrf.mxu1  ;;  %4602 = vpow2.f32 %v2177_v35 }
 0x78f   : > { %v2039_v48 = vmax.f32 %v5990_v21, %v5992_v26  ;;  %4604 = vpow2.f32 %v2179_v31 }
 0x791   : > { %2277 = vadd.xlane.f32.xlu0 %v2276_v43  ;;  %v6008_v40 = vpop.xlane.xlu0 %2013 }
 0x796   : > { %v5996_v20 = vpop.f32.mrf.mxu0  ;;  %v5998_v30 = vpop.f32.mrf.mxu1 }
 0x797   : > { %v2042_v43 = vmax.f32 %v5996_v20, %v5998_v30 }
 0x799   : > { %2040 = vmax.xlane.f32.xlu0 %v2039_v48  ;;  %v6018_v49 = vpop.xlane.xlu0 %2016 }
 0x79a   : > { %v2101_v6 = vsub.f32 %v5882_v28, %v6018_v49 }
 0x79e   : > { %v6004_v37 = vpop.f32.mrf.mxu0  ;;  %v6006_v63 = vpop.f32.mrf.mxu1 }
 0x79f   : > { %v2045_v32 = vmax.f32 %v6004_v37, %v6006_v63 }
 0x7a1   : > { %2043 = vmax.xlane.f32.xlu0 %v2042_v43  ;;  %v2285_v43 = vadd.f32 %v6022_v50, %v6020_v16  ;;  %v2020_v7 = vpop.xlane.xlu0 %2019 }
 0x7a6   : > { %v6012_v14 = vpop.f32.mrf.mxu0  ;;  %v6014_v48 = vpop.f32.mrf.mxu1 }
 0x7a7   : > { %v2048_v23 = vmax.f32 %v6012_v14, %v6014_v48 }
 0x7a9   : > { %2046 = vmax.xlane.f32.xlu0 %v2045_v32  ;;  %v2095_v32 = vsub.f32 %v5858_v17, %v2008_v9  ;;  %v2103_v9 = vsub.f32 %v5890_v33, %v2020_v7  ;;  %v6047_v31 = vpop.xlane.xlu0 %2022  ;;  %v2104_v17 = vsub.f32 %v5892_v29, %v2020_v7  ;;  %v2087_v7 = vsub.f32 %v5828_v12, %v5943_v1 }
 0x7aa   : > { %v2088_v12 = vsub.f32 %v5830_v52, %v5943_v1  ;;  %v2093_v1 = vsub.f32 %v5850_v47, %v5978_v27 }
 0x7ab   : > { %v2173_v39 = vmul.f32 1.442695, %v2095_v32  ;;  %v2189_v32 = vmul.f32 1.442695, %v2103_v9  ;;  %v2102_v9 = vsub.f32 %v5884_v41, %v6018_v49  ;;  %v2157_v28 = vmul.f32 1.442695, %v2087_v7 }
 0x7ac   : > { %v2185_v41 = vmul.f32 1.442695, %v2101_v6 }
 0x7ad   : > { %4606 = vpow2.f32 %v2173_v39 }
 0x7ae   : > { %v6026_v3 = vpop.f32.mrf.mxu0  ;;  %v6028_v61 = vpop.f32.mrf.mxu1  ;;  %4608 = vpow2.f32 %v2175_v45 }
 0x7af   : > { %4610 = vpow2.f32 %v2189_v32 }
 0x7b1   : > { %2286 = vadd.xlane.f32.xlu0 %v2285_v43  ;;  %v6042_v43 = vpop.eup %4602  ;;  %v2026_v32 = vpop.xlane.xlu0 %2025 }
 0x7b2   : > { %v6044_v35 = vpop.eup %4604 }
 0x7b3   : > { %v2297_v58 = vadd.f32 %v6044_v35, %v6042_v43  ;;  %v6058_v33 = vpop.eup %4606 }
 0x7b4   : > { %v6060_v45 = vpop.eup %4608 }
 0x7b5   : > { %v6080_v49 = vpop.eup %4610 }
 0x7b6   : > { %v6034_v59 = vpop.f32.mrf.mxu0  ;;  %v6036_v62 = vpop.f32.mrf.mxu1 }
 0x7b7   : > { %v2054_v10 = vmax.f32 %v6034_v59, %v6036_v62 }
 0x7b9   : > { %2049 = vmax.xlane.f32.xlu0 %v2048_v23  ;;  %2055 = vmax.xlane.f32.xlu1 %v2054_v10  ;;  %v2051_v10 = vmax.f32 %v6026_v3, %v6028_v61  ;;  %v2191_v23 = vmul.f32 1.442695, %v2104_v17 }
 0x7bb   : > { %4612 = vpow2.f32 %v2191_v23  ;;  %v2159_v23 = vmul.f32 1.442695, %v2088_v12 }
 0x7be   : > { %v6050_v18 = vpop.f32.mrf.mxu0  ;;  %v6052_v22 = vpop.f32.mrf.mxu1 }
 0x7c1   : > { %2052 = vmax.xlane.f32.xlu0 %v2051_v10  ;;  %2298 = vadd.xlane.f32.xlu1 %v2297_v58 }
 0x7c3   : > { %v1987_v39 = vpop.xlane.xlu2 %1986 }
 0x7c4   : > { %v2081_v29 = vsub.f32 %v5812_v56, %v1987_v39  ;;  %v2082_v13 = vsub.f32 %v5814_v25, %v1987_v39  ;;  %v2294_v25 = vadd.f32 %v6060_v45, %v6058_v33  ;;  %v6082_v39 = vpop.eup %4612 }
 0x7c6   : > { %v2145_v17 = vmul.f32 1.442695, %v2081_v29  ;;  %v2147_v10 = vmul.f32 1.442695, %v2082_v13  ;;  %v6070_v58 = vpop.f32.mrf.mxu0  ;;  %v6072_v55 = vpop.f32.mrf.mxu1  ;;  %v2187_v13 = vmul.f32 1.442695, %v2102_v9  ;;  %v2094_v9 = vsub.f32 %v5852_v34, %v5978_v27 }
 0x7c7   : > { %v2060_v56 = vmax.f32 %v6070_v58, %v6072_v55 }
 0x7c8   : > { %4614 = vpow2.f32 %v2145_v17  ;;  %v2057_v17 = vmax.f32 %v6050_v18, %v6052_v22  ;;  %v2171_v27 = vmul.f32 1.442695, %v2094_v9 }
 0x7c9   : > { %4616 = vpow2.f32 %v2147_v10  ;;  %2295 = vadd.xlane.f32.xlu0 %v2294_v25  ;;  %2061 = vmax.xlane.f32.xlu1 %v2060_v56  ;;  %v2306_v10 = vadd.f32 %v6082_v39, %v6080_v49  ;;  %v2169_v56 = vmul.f32 1.442695, %v2093_v1  ;;  %v2099_v25 = vsub.f32 %v5874_v11, %v6008_v40 }
 0x7ca   : > { %4618 = vpow2.f32 %v2157_v28  ;;  %v2029_v28 = vpop.xlane.xlu0 %2028 }
 0x7cb   : > { %4620 = vpow2.f32 %v2185_v41  ;;  %v2107_v41 = vsub.f32 %v5906_v53, %v2026_v32  ;;  %v2181_v1 = vmul.f32 1.442695, %v2099_v25  ;;  %v2100_v53 = vsub.f32 %v5876_v36, %v6008_v40 }
 0x7cc   : > { %4622 = vpow2.f32 %v2187_v13 }
 0x7cd   : > { %4624 = vpow2.f32 %v2159_v23  ;;  %v2108_v23 = vsub.f32 %v5908_v51, %v2026_v32  ;;  %v2197_v9 = vmul.f32 1.442695, %v2107_v41  ;;  %v2183_v25 = vmul.f32 1.442695, %v2100_v53 }
 0x7ce   : > { %v6084_v52 = vpop.eup %4614  ;;  %v6088_v7 = vpop.f32.mrf.mxu0  ;;  %4626 = vpow2.f32 %v2169_v56 }
 0x7cf   : > { %7716 = vst [vmem:[#allocation51_spill] sm:$0xff] %v6084_v52  ;;  %v6090_v6 = vpop.f32.mrf.mxu1  ;;  %v6092_v29 = vpop.eup %4616  ;;  %4628 = vpow2.f32 %v2171_v27  ;;  %v2199_v32 = vmul.f32 1.442695, %v2108_v23 }
 0x7d0   : > { %7717 = vst [vmem:[#allocation52_spill] sm:$0xff] %v6092_v29  ;;  %v2273_v47 = vadd.f32 %v6092_v29, %v6084_v52  ;;  %v6102_v12 = vpop.eup %4618  ;;  %4630 = vpow2.f32 %v2181_v1 }
 0x7d1   : > { %2058 = vmax.xlane.f32.xlu0 %v2057_v17  ;;  %2307 = vadd.xlane.f32.xlu1 %v2306_v10  ;;  %7718 = vst [vmem:[#allocation53_spill] sm:$0xff] %v6102_v12  ;;  %v6106_v34 = vpop.eup %4620  ;;  %v2109_v17 = vsub.f32 %v5914_v60, %v2029_v28  ;;  %v2110_v10 = vsub.f32 %v5916_v46, %v2029_v28  ;;  %4632 = vpow2.f32 %v2197_v9 }
 0x7d2   : > { %2274 = vadd.xlane.f32.xlu2 %v2273_v47  ;;  %v6109_v13 = vpop.eup %4622  ;;  %4634 = vpow2.f32 %v2199_v32  ;;  %v2032_v5 = vpop.xlane.xlu0 %2031 }
 0x7d3   : > { %v6112_v29 = vpop.eup %4624  ;;  %v2303_v51 = vadd.f32 %v6109_v13, %v6106_v34  ;;  %v2201_v56 = vmul.f32 1.442695, %v2109_v17  ;;  %v2203_v46 = vmul.f32 1.442695, %v2110_v10 }
 0x7d4   : > { %7719 = vst [vmem:[#allocation54_spill] sm:$0xff] %v6112_v29  ;;  %v2282_v60 = vadd.f32 %v6112_v29, %v6102_v12  ;;  %v6126_v28 = vpop.eup %4626  ;;  %v2112_v12 = vsub.f32 %v5926_v42, %v2032_v5 }
 0x7d5   : > { %v6128_v27 = vpop.eup %4628  ;;  %4636 = vpow2.f32 %v2201_v56 }
 0x7d6   : > { %v6116_v11 = vpop.f32.mrf.mxu0  ;;  %4638 = vpow2.f32 %v2203_v46  ;;  %v6138_v17 = vpop.eup %4630  ;;  %v2291_v1 = vadd.f32 %v6128_v27, %v6126_v28 }
 0x7d7   : > { %v6118_v47 = vpop.f32.mrf.mxu1  ;;  %4640 = vpow2.f32 %v2183_v25  ;;  %v6142_v10 = vpop.eup %4632  ;;  %v2106_v25 = vsub.f32 %v5900_v44, %v6047_v31 }
 0x7d8   : > { %v2066_v41 = vmax.f32 %v6116_v11, %v6118_v47  ;;  %v6144_v53 = vpop.eup %4634 }
 0x7d9   : > { %2304 = vadd.xlane.f32.xlu0 %v2303_v51 }
 0x7da   : > { %2283 = vadd.xlane.f32.xlu2 %v2282_v60  ;;  %v2105_v60 = vsub.f32 %v5898_v4, %v6047_v31  ;;  %v2195_v4 = vmul.f32 1.442695, %v2106_v25  ;;  %v2063_v31 = vmax.f32 %v6088_v7, %v6090_v6 }
 0x7db   : > { %v6146_v9 = vpop.eup %4636 }
 0x7dc   : > { %v6148_v51 = vpop.eup %4638  ;;  %v2193_v52 = vmul.f32 1.442695, %v2105_v60 }
 0x7dd   : > { %v6150_v32 = vpop.eup %4640 }
 0x7de   : > { %v6130_v40 = vpop.f32.mrf.mxu0  ;;  %4642 = vpow2.f32 %v2193_v52 }
 0x7df   : > { %v6132_v36 = vpop.f32.mrf.mxu1  ;;  %4644 = vpow2.f32 %v2195_v4 }
 0x7e0   : > { %v2069_v23 = vmax.f32 %v6130_v40, %v6132_v36 }
 0x7e1   : > { %2067 = vmax.xlane.f32.xlu0 %v2066_v41  ;;  %v2312_v41 = vadd.f32 %v6144_v53, %v6142_v10 }
 0x7e2   : > { %2070 = vmax.xlane.f32.xlu1 %v2069_v23  ;;  %2292 = vadd.xlane.f32.xlu2 %v2291_v1  ;;  %v2315_v23 = vadd.f32 %v6148_v51, %v6146_v9  ;;  %v2300_v1 = vadd.f32 %v6150_v32, %v6138_v17 }
 0x7e6   : > { %v6154_v56 = vpop.f32.mrf.mxu0 }
 0x7e7   : > { %v6156_v46 = vpop.f32.mrf.mxu1 }
 0x7e9   : > { %2313 = vadd.xlane.f32.xlu0 %v2312_v41  ;;  %v6174_v41 = vpop.eup %4642 }
 0x7ea   : > { %2316 = vadd.xlane.f32.xlu1 %v2315_v23  ;;  %2301 = vadd.xlane.f32.xlu2 %v2300_v1  ;;  %v6176_v23 = vpop.eup %4644  ;;  %v2111_v1 = vsub.f32 %v5924_v38, %v2032_v5  ;;  %v2207_v38 = vmul.f32 1.442695, %v2112_v12 }
 0x7eb   : > { %v2309_v16 = vadd.f32 %v6176_v23, %v6174_v41 }
 0x7ee   : > { %v6166_v2 = vpop.f32.mrf.mxu0 }
 0x7ef   : > { %v6168_v19 = vpop.f32.mrf.mxu1 }
 0x7f0   : > { %v2075_v44 = vmax.f32 %v6166_v2, %v6168_v19 }
 0x7f2   : > { %2076 = vmax.xlane.f32.xlu0 %v2075_v44  ;;  %2064 = vmax.xlane.f32.xlu2 %v2063_v31 }
 0x7f4   : > { %v2035_v60 = vpop.xlane.xlu0 %2034 }
 0x7f5   : > { %v2113_v52 = vsub.f32 %v5970_v54, %v2035_v60  ;;  %v2114_v25 = vsub.f32 %v5972_v15, %v2035_v60  ;;  %v2205_v54 = vmul.f32 1.442695, %v2111_v1 }
 0x7f6   : > { %v6181_v4 = vpop.f32.mrf.mxu0 }
 0x7f7   : > { %v6183_v29 = vpop.f32.mrf.mxu1  ;;  %v2209_v50 = vmul.f32 1.442695, %v2113_v52  ;;  %v2211_v44 = vmul.f32 1.442695, %v2114_v25 }
 0x7f8   : > { %v2078_v31 = vmax.f32 %v6181_v4, %v6183_v29 }
 0x7f9   : > { %4646 = vpow2.f32 %v2209_v50  ;;  %v2072_v50 = vmax.f32 %v6154_v56, %v6156_v46 }
 0x7fa   : > { %2079 = vmax.xlane.f32.xlu1 %v2078_v31  ;;  %4648 = vpow2.f32 %v2211_v44  ;;  %2310 = vadd.xlane.f32.xlu2 %v2309_v16 }
 0x7fb   : > { %4650 = vpow2.f32 %v2205_v54 }
 0x7fc   : > { %v2038_v15 = vpop.xlane.xlu0 %2037  ;;  %4652 = vpow2.f32 %v2207_v38 }
 0x7fd   : > { %v2115_v60 = vsub.f32 %v5980_v8, %v2038_v15  ;;  %v2116_v57 = vsub.f32 %v5982_v0, %v2038_v15 }
 0x7ff   : > { %v6192_v42 = vpop.eup %4646  ;;  %v2213_v5 = vmul.f32 1.442695, %v2115_v60  ;;  %v2215_v52 = vmul.f32 1.442695, %v2116_v57 }
 0x800   : > { %7720 = vst [vmem:[#allocation55_spill] sm:$0xff] %v6192_v42  ;;  %v6194_v25 = vpop.eup %4648 }
 0x801   : > { %7721 = vst [vmem:[#allocation56_spill] sm:$0xff] %v6194_v25  ;;  %4654 = vpow2.f32 %v2213_v5  ;;  %v2321_v16 = vadd.f32 %v6194_v25, %v6192_v42  ;;  %v6200_v8 = vpop.eup %4650 }
 0x802   : > { %4656 = vpow2.f32 %v2215_v52  ;;  %2073 = vmax.xlane.f32.xlu2 %v2072_v50  ;;  %v6204_v12 = vpop.eup %4652 }
 0x803   : > { %2322 = vadd.xlane.f32.xlu0 %v2321_v16  ;;  %v2318_v44 = vadd.f32 %v6204_v12, %v6200_v8 }
 0x804   : > { %v6202_v0 = vpop.xlane.xlu0 %2277 }
 0x807   : > { %v6206_v1 = vpop.eup %4654 }
 0x808   : > { %7722 = vst [vmem:[#allocation57_spill] sm:$0xff] %v6206_v1  ;;  %v6208_v57 = vpop.eup %4656 }
 0x809   : > { %7723 = vst [vmem:[#allocation58_spill] sm:$0xff] %v6208_v57  ;;  %v2324_v31 = vadd.f32 %v6208_v57, %v6206_v1 }
 0x80a   : > { %2319 = vadd.xlane.f32.xlu2 %v2318_v44 }
 0x80b   : > { %2325 = vadd.xlane.f32.xlu1 %v2324_v31 }
 0x80c   : > { %v2041_v54 = vpop.xlane.xlu0 %2040 }
 0x80d   : > { %v2117_v38 = vsub.f32 %v5990_v21, %v2041_v54  ;;  %v2118_v15 = vsub.f32 %v5992_v26, %v2041_v54  ;;  %v6224_v26 = vpop.xlane.xlu1 %2280 }
 0x80f   : > { %v2217_v60 = vmul.f32 1.442695, %v2117_v38  ;;  %v2219_v5 = vmul.f32 1.442695, %v2118_v15 }
 0x811   : > { %4658 = vpow2.f32 %v2217_v60 }
 0x812   : > { %4660 = vpow2.f32 %v2219_v5 }
 0x814   : > { %v2044_v52 = vpop.xlane.xlu0 %2043 }
 0x815   : > { %v2119_v50 = vsub.f32 %v5996_v20, %v2044_v52  ;;  %v2120_v16 = vsub.f32 %v5998_v30, %v2044_v52 }
 0x817   : > { %v6218_v25 = vpop.eup %4658  ;;  %v2221_v42 = vmul.f32 1.442695, %v2119_v50  ;;  %v2223_v57 = vmul.f32 1.442695, %v2120_v16 }
 0x818   : > { %7724 = vst [vmem:[#allocation59_spill] sm:$0xff] %v6218_v25  ;;  %v6220_v44 = vpop.eup %4660 }
 0x819   : > { %7725 = vst [vmem:[#allocation60_spill] sm:$0xff] %v6220_v44  ;;  %4662 = vpow2.f32 %v2221_v42  ;;  %v2327_v21 = vadd.f32 %v6220_v44, %v6218_v25 }
 0x81a   : > { %4664 = vpow2.f32 %v2223_v57  ;;  %v6234_v57 = vpop.xlane.xlu1 %2289 }
 0x81b   : > { %2328 = vadd.xlane.f32.xlu2 %v2327_v21 }
 0x81c   : > { %v2047_v31 = vpop.xlane.xlu0 %2046 }
 0x81d   : > { %v2121_v54 = vsub.f32 %v6004_v37, %v2047_v31  ;;  %v2122_v20 = vsub.f32 %v6006_v63, %v2047_v31 }
 0x81f   : > { %v6228_v30 = vpop.eup %4662  ;;  %v2225_v38 = vmul.f32 1.442695, %v2121_v54  ;;  %v2227_v15 = vmul.f32 1.442695, %v2122_v20 }
 0x820   : > { %7726 = vst [vmem:[#allocation61_spill] sm:$0xff] %v6228_v30  ;;  %v6230_v60 = vpop.eup %4664 }
 0x821   : > { %7727 = vst [vmem:[#allocation62_spill] sm:$0xff] %v6230_v60  ;;  %4666 = vpow2.f32 %v2225_v38  ;;  %v2330_v42 = vadd.f32 %v6230_v60, %v6228_v30 }
 0x822   : > { %4668 = vpow2.f32 %v2227_v15 }
 0x823   : > { %2331 = vadd.xlane.f32.xlu0 %v2330_v42 }
 0x824   : > { %v6236_v5 = vpop.xlane.xlu0 %2286 }
 0x827   : > { %v6238_v52 = vpop.eup %4666 }
 0x828   : > { %7728 = vst [vmem:[#allocation63_spill] sm:$0xff] %v6238_v52  ;;  %v6240_v37 = vpop.eup %4668 }
 0x829   : > { %7729 = vst [vmem:[#allocation64_spill] sm:$0xff] %v6240_v37  ;;  %v2333_v63 = vadd.f32 %v6240_v37, %v6238_v52 }
 0x82b   : > { %2334 = vadd.xlane.f32.xlu1 %v2333_v63 }
 0x82c   : > { %v2050_v50 = vpop.xlane.xlu0 %2049  ;;  %v2056_v16 = vpop.xlane.xlu1 %2055 }
 0x82d   : > { %v2123_v21 = vsub.f32 %v6012_v14, %v2050_v50  ;;  %v2124_v31 = vsub.f32 %v6014_v48, %v2050_v50  ;;  %v2127_v54 = vsub.f32 %v6034_v59, %v2056_v16  ;;  %v2128_v20 = vsub.f32 %v6036_v62, %v2056_v16 }
 0x82f   : > { %v2229_v38 = vmul.f32 1.442695, %v2123_v21  ;;  %v2231_v15 = vmul.f32 1.442695, %v2124_v31  ;;  %v2237_v42 = vmul.f32 1.442695, %v2127_v54 }
 0x830   : > { %v2239_v1 = vmul.f32 1.442695, %v2128_v20 }
 0x831   : > { %4670 = vpow2.f32 %v2229_v38 }
 0x832   : > { %4672 = vpow2.f32 %v2231_v15 }
 0x833   : > { %4674 = vpow2.f32 %v2237_v42 }
 0x834   : > { %4676 = vpow2.f32 %v2239_v1  ;;  %v2053_v44 = vpop.xlane.xlu0 %2052  ;;  %v6248_v63 = vpop.xlane.xlu1 %2298 }
 0x835   : > { %v2125_v25 = vsub.f32 %v6026_v3, %v2053_v44  ;;  %v2126_v14 = vsub.f32 %v6028_v61, %v2053_v44 }
 0x837   : > { %v6252_v48 = vpop.eup %4670  ;;  %v2233_v59 = vmul.f32 1.442695, %v2125_v25  ;;  %v2235_v50 = vmul.f32 1.442695, %v2126_v14 }
 0x838   : > { %7730 = vst [vmem:[#allocation65_spill] sm:$0xff] %v6252_v48  ;;  %v6254_v62 = vpop.eup %4672 }
 0x839   : > { %7731 = vst [vmem:[#allocation66_spill] sm:$0xff] %v6254_v62  ;;  %v6256_v16 = vpop.eup %4674  ;;  %4678 = vpow2.f32 %v2233_v59  ;;  %v2336_v21 = vadd.f32 %v6254_v62, %v6252_v48 }
 0x83a   : > { %7732 = vst [vmem:[#allocation67_spill] sm:$0xff] %v6256_v16  ;;  %v6260_v1 = vpop.eup %4676  ;;  %4680 = vpow2.f32 %v2235_v50 }
 0x83b   : > { %7733 = vst [vmem:[#allocation68_spill] sm:$0xff] %v6260_v1  ;;  %2337 = vadd.xlane.f32.xlu2 %v2336_v21  ;;  %v2342_v3 = vadd.f32 %v6260_v1, %v6256_v16 }
 0x83c   : > { %v6264_v61 = vpop.xlane.xlu0 %2295  ;;  %v2062_v44 = vpop.xlane.xlu1 %2061 }
 0x83d   : > { %2343 = vadd.xlane.f32.xlu1 %v2342_v3  ;;  %v2131_v25 = vsub.f32 %v6070_v58, %v2062_v44  ;;  %v2132_v31 = vsub.f32 %v6072_v55, %v2062_v44 }
 0x83f   : > { %v6268_v54 = vpop.eup %4678  ;;  %v2245_v20 = vmul.f32 1.442695, %v2131_v25  ;;  %v2247_v38 = vmul.f32 1.442695, %v2132_v31 }
 0x840   : > { %7734 = vst [vmem:[#allocation69_spill] sm:$0xff] %v6268_v54  ;;  %v6270_v15 = vpop.eup %4680 }
 0x841   : > { %7735 = vst [vmem:[#allocation70_spill] sm:$0xff] %v6270_v15  ;;  %4682 = vpow2.f32 %v2245_v20  ;;  %v2339_v42 = vadd.f32 %v6270_v15, %v6268_v54 }
 0x842   : > { %4684 = vpow2.f32 %v2247_v38 }
 0x843   : > { %2340 = vadd.xlane.f32.xlu0 %v2339_v42 }
 0x844   : > { %v2059_v14 = vpop.xlane.xlu0 %2058  ;;  %v6284_v31 = vpop.xlane.xlu1 %2307 }
 0x845   : > { %v6274_v59 = vpop.xlane.xlu2 %2274  ;;  %v2129_v50 = vsub.f32 %v6050_v18, %v2059_v14  ;;  %v2130_v58 = vsub.f32 %v6052_v22, %v2059_v14 }
 0x847   : > { %v6278_v55 = vpop.eup %4682  ;;  %v2241_v21 = vmul.f32 1.442695, %v2129_v50  ;;  %v2243_v3 = vmul.f32 1.442695, %v2130_v58 }
 0x848   : > { %7736 = vst [vmem:[#allocation71_spill] sm:$0xff] %v6278_v55  ;;  %v6280_v44 = vpop.eup %4684 }
 0x849   : > { %7737 = vst [vmem:[#allocation72_spill] sm:$0xff] %v6280_v44  ;;  %4686 = vpow2.f32 %v2241_v21  ;;  %v2348_v25 = vadd.f32 %v6280_v44, %v6278_v55 }
 0x84a   : > { %4688 = vpow2.f32 %v2243_v3 }
 0x84b   : > { %2349 = vadd.xlane.f32.xlu0 %v2348_v25 }
 0x84c   : > { %v6286_v20 = vpop.xlane.xlu0 %2304 }
 0x84d   : > { %v6288_v38 = vpop.xlane.xlu2 %2283 }
 0x84f   : > { %v6290_v18 = vpop.eup %4686 }
 0x850   : > { %7738 = vst [vmem:[#allocation73_spill] sm:$0xff] %v6290_v18  ;;  %v6292_v22 = vpop.eup %4688 }
 0x851   : > { %7739 = vst [vmem:[#allocation74_spill] sm:$0xff] %v6292_v22  ;;  %v2345_v42 = vadd.f32 %v6292_v22, %v6290_v18  ;;  %v4822_v22 = vmov 37  }
 0x852   : > { %4355 = vset.pattern.permute.xlu0 %v4822_v22 }
 0x853   : > { %2346 = vadd.xlane.f32.xlu2 %v2345_v42 }
 0x854   : > { %v2068_v14 = vpop.xlane.xlu0 %2067 }
 0x855   : > { %v2071_v50 = vpop.xlane.xlu1 %2070  ;;  %v6296_v58 = vpop.xlane.xlu2 %2292  ;;  %v2135_v21 = vsub.f32 %v6116_v11, %v2068_v14  ;;  %v2136_v3 = vsub.f32 %v6118_v47, %v2068_v14 }
 0x856   : > { %v2137_v25 = vsub.f32 %v6130_v40, %v2071_v50  ;;  %v2138_v60 = vsub.f32 %v6132_v36, %v2071_v50 }
 0x857   : > { %v2253_v30 = vmul.f32 1.442695, %v2135_v21  ;;  %v2255_v37 = vmul.f32 1.442695, %v2136_v3 }
 0x858   : > { %v2257_v52 = vmul.f32 1.442695, %v2137_v25  ;;  %v2259_v62 = vmul.f32 1.442695, %v2138_v60 }
 0x859   : > { %4690 = vpow2.f32 %v2253_v30 }
 0x85a   : > { %4692 = vpow2.f32 %v2255_v37 }
 0x85b   : > { %4694 = vpow2.f32 %v2257_v52 }
 0x85c   : > { %4696 = vpow2.f32 %v2259_v62  ;;  %v6302_v42 = vpop.xlane.xlu0 %2313 }
 0x85d   : > { %v6304_v48 = vpop.xlane.xlu2 %2301  ;;  %v2317_v60 = vpop.xlane.xlu1 %2316 }
 0x85f   : > { %v6306_v15 = vpop.eup %4690 }
 0x860   : > { %v6308_v11 = vpop.eup %4692 }
 0x861   : > { %v6310_v47 = vpop.eup %4694  ;;  %v2354_v40 = vadd.f32 %v6308_v11, %v6306_v15 }
 0x862   : > { %v6314_v36 = vpop.eup %4696 }
 0x863   : > { %2355 = vadd.xlane.f32.xlu2 %v2354_v40  ;;  %v2357_v30 = vadd.f32 %v6314_v36, %v6310_v47 }
 0x865   : > { %v2077_v52 = vpop.xlane.xlu0 %2076  ;;  %2358 = vadd.xlane.f32.xlu0 %v2357_v30  ;;  %v2065_v37 = vpop.xlane.xlu2 %2064 }
 0x866   : > { %v2141_v62 = vsub.f32 %v6166_v2, %v2077_v52  ;;  %v2142_v14 = vsub.f32 %v6168_v19, %v2077_v52  ;;  %v2133_v50 = vsub.f32 %v6088_v7, %v2065_v37  ;;  %v2134_v21 = vsub.f32 %v6090_v6, %v2065_v37 }
 0x868   : > { %v2265_v3 = vmul.f32 1.442695, %v2141_v62  ;;  %v2249_v25 = vmul.f32 1.442695, %v2133_v50  ;;  %v2251_v54 = vmul.f32 1.442695, %v2134_v21 }
 0x869   : > { %v2267_v1 = vmul.f32 1.442695, %v2142_v14 }
 0x86a   : > { %4698 = vpow2.f32 %v2265_v3 }
 0x86b   : > { %4700 = vpow2.f32 %v2249_v25 }
 0x86c   : > { %4702 = vpow2.f32 %v2251_v54 }
 0x86d   : > { %4704 = vpow2.f32 %v2267_v1  ;;  %v2080_v40 = vpop.xlane.xlu1 %2079  ;;  %v2311_v16 = vpop.xlane.xlu2 %2310 }
 0x86e   : > { %v2143_v30 = vsub.f32 %v6181_v4, %v2080_v40  ;;  %v2144_v2 = vsub.f32 %v6183_v29, %v2080_v40 }
 0x870   : > { %v6324_v19 = vpop.eup %4698  ;;  %v2269_v7 = vmul.f32 1.442695, %v2143_v30  ;;  %v2271_v6 = vmul.f32 1.442695, %v2144_v2 }
 0x871   : > { %v6326_v52 = vpop.eup %4700 }
 0x872   : > { %v6328_v37 = vpop.eup %4702  ;;  %4706 = vpow2.f32 %v2269_v7 }
 0x873   : > { %7740 = vst [vmem:[#allocation75_spill] sm:$0xff] %v6328_v37  ;;  %v6330_v62 = vpop.eup %4704  ;;  %4708 = vpow2.f32 %v2271_v6  ;;  %v2351_v1 = vadd.f32 %v6328_v37, %v6326_v52 }
 0x874   : > { %v2363_v29 = vadd.f32 %v6330_v62, %v6324_v19  ;;  %4710 = vrcp.f32 %v2317_v60 }
 0x875   : > { %2352 = vadd.xlane.f32.xlu1 %v2351_v1  ;;  %v2074_v4 = vpop.xlane.xlu2 %2073 }
 0x876   : > { %2364 = vadd.xlane.f32.xlu2 %v2363_v29  ;;  %v2139_v54 = vsub.f32 %v6154_v56, %v2074_v4  ;;  %v2140_v22 = vsub.f32 %v6156_v46, %v2074_v4 }
 0x878   : > { %v6338_v14 = vpop.eup %4706  ;;  %v2261_v21 = vmul.f32 1.442695, %v2139_v54  ;;  %v2263_v3 = vmul.f32 1.442695, %v2140_v22 }
 0x879   : > { %v6340_v50 = vpop.eup %4708 }
 0x87a   : > { %v2366_v25 = vadd.f32 %v6340_v50, %v6338_v14  ;;  %4712 = vpow2.f32 %v2261_v21  ;;  %v4711_v56 = vpop.eup %4710 }
 0x87b   : > { %4714 = vpow2.f32 %v2263_v3  ;;  %v2415_v6 = vmul.f32 %v4711_v56, %v2317_v60 }
 0x87c   : > { %2367 = vadd.xlane.f32.xlu0 %v2366_v25  ;;  %4716 = vrcp.f32 %v6302_v42 }
 0x87d   : > { %v2320_v40 = vpop.xlane.xlu2 %2319  ;;  %v2447_v54 = vsub.f32 2.0, %v2415_v6 }
 0x87e   : > { %4718 = vrcp.f32 %v2320_v40 }
 0x87f   : > { %4720 = vrcp.f32 %v2311_v16  ;;  %v2479_v37 = vmul.f32 %v4711_v56, %v2447_v54 }
 0x880   : > { %v6345_v30 = vpop.eup %4712  ;;  %4722 = vrcp.f32 %v6284_v31 }
 0x881   : > { %v6347_v46 = vpop.eup %4714  ;;  %4724 = vrcp.f32 %v6286_v20 }
 0x882   : > { %v2360_v2 = vadd.f32 %v6347_v46, %v6345_v30  ;;  %v4717_v7 = vpop.eup %4716  ;;  %4726 = vrcp.f32 %v6304_v48 }
 0x883   : > { %v2414_v4 = vmul.f32 %v4717_v7, %v6302_v42  ;;  %4728 = vrcp.f32 %v6248_v63 }
 0x884   : > { %v4719_v1 = vpop.eup %4718  ;;  %2361 = vadd.xlane.f32.xlu1 %v2360_v2  ;;  %v6361_v2 = vld [vmem:[%s7420_s7] sm:$0xff]  ;;  %4730 = vrcp.f32 %v6264_v61 }
 0x885   : > { %v2416_v29 = vmul.f32 %v4719_v1, %v2320_v40  ;;  %v4721_v21 = vpop.eup %4720  ;;  %v2446_v25 = vsub.f32 2.0, %v2414_v4  ;;  %v4823_v4 = vmov 3   ;;  %4732 = vrcp.f32 %v6296_v58 }
 0x886   : > { %v4723_v18 = vpop.eup %4722  ;;  %v2413_v44 = vmul.f32 %v4721_v21, %v2311_v16  ;;  %v2525_v16 = vmul.f32 %v6146_v9, %v2479_v37  ;;  %4734 = vrcp.f32 %v6234_v57 }
 0x887   : > { %v2448_v22 = vsub.f32 2.0, %v2416_v29  ;;  %v2412_v40 = vmul.f32 %v4723_v18, %v6284_v31  ;;  %v4725_v56 = vpop.eup %4724  ;;  %4736 = vrcp.f32 %v6236_v5 }
 0x888   : > { %v2445_v42 = vsub.f32 2.0, %v2413_v44  ;;  %v2411_v44 = vmul.f32 %v4725_v56, %v6286_v20  ;;  %v4727_v29 = vpop.eup %4726  ;;  %4738 = vrcp.f32 %v6288_v38 }
 0x889   : > { %v2480_v3 = vmul.f32 %v4719_v1, %v2448_v22  ;;  %4740 = vrcp.f32 %v6224_v26 }
 0x88a   : > { %v2477_v1 = vmul.f32 %v4721_v21, %v2445_v42  ;;  %4742 = vrcp.f32 %v6202_v0 }
 0x88b   : > { %v2527_v55 = vmul.f32 %v6200_v8, %v2480_v3  ;;  %v2528_v60 = vmul.f32 %v6204_v12, %v2480_v3  ;;  %v2526_v8 = vmul.f32 %v6148_v51, %v2479_v37  ;;  %v2478_v12 = vmul.f32 %v4717_v7, %v2446_v25  ;;  %v4729_v51 = vpop.eup %4728 }
 0x88c   : > { %v2443_v37 = vsub.f32 2.0, %v2411_v44  ;;  %v2410_v7 = vmul.f32 %v4727_v29, %v6304_v48  ;;  %v2521_v54 = vmul.f32 %v6174_v41, %v2477_v1  ;;  %v2522_v20 = vmul.f32 %v6176_v23, %v2477_v1  ;;  %v4731_v21 = vpop.eup %4730 }
 0x88d   : > { %2561 = vmatpush.xpose.msrb.mxu0 %v2527_v55  ;;  %2581 = vmatpush.xpose.msra.mxu3 %v2528_v60  ;;  %v2444_v55 = vsub.f32 2.0, %v2412_v40  ;;  %v2523_v31 = vmul.f32 %v6142_v10, %v2478_v12  ;;  %v2524_v6 = vmul.f32 %v6144_v53, %v2478_v12  ;;  %v2409_v10 = vmul.f32 %v4729_v51, %v6248_v63  ;;  %v4733_v60 = vpop.eup %4732 }
 0x88e   : > { %v2442_v53 = vsub.f32 2.0, %v2410_v7  ;;  %v2475_v48 = vmul.f32 %v4725_v56, %v2443_v37  ;;  %v2408_v23 = vmul.f32 %v4731_v21, %v6264_v61  ;;  %v4824_v40 = vmov 17  }
 0x88f   : > { %v2476_v9 = vmul.f32 %v4723_v18, %v2444_v55  ;;  %v2441_v41 = vsub.f32 2.0, %v2409_v10  ;;  %4744 = vrcp.f32 %v6274_v59  ;;  %v4826_v37 = vmov 4  }
 0x890   : > { %3198 = vperm.xlu0 %4355, %v6361_v2   ;;  %v2517_v3 = vmul.f32 %v6106_v34, %v2475_v48  ;;  %v2518_v63 = vmul.f32 %v6109_v13, %v2475_v48  ;;  %v2474_v25 = vmul.f32 %v4727_v29, %v2442_v53  ;;  %v2440_v42 = vsub.f32 2.0, %v2408_v23  ;;  %v7743_v53 = vld [vmem:[#allocation50_spill] sm:$0xff] }
 0x891   : > { %2562 = vmatpush.xpose.msrb.mxu0 %v2525_v16  ;;  %2582 = vmatpush.xpose.msra.mxu3 %v2526_v8  ;;  %v2519_v18 = vmul.f32 %v6080_v49, %v2476_v9  ;;  %v2520_v22 = vmul.f32 %v6082_v39, %v2476_v9  ;;  %v2473_v49 = vmul.f32 %v4729_v51, %v2441_v41  ;;  %v4735_v39 = vpop.eup %4734  ;;  %v7744_v41 = vld [vmem:[#allocation53_spill] sm:$0xff] }
 0x892   : > { %v2407_v16 = vmul.f32 %v4733_v60, %v6296_v58  ;;  %v2515_v61 = vmul.f32 %v6138_v17, %v2474_v25  ;;  %v2516_v34 = vmul.f32 %v6150_v32, %v2474_v25  ;;  %v2406_v13 = vmul.f32 %v4735_v39, %v6234_v57  ;;  %v4737_v44 = vpop.eup %4736  ;;  %v7745_v25 = vld [vmem:[#allocation54_spill] sm:$0xff] }
 0x893   : > { %v2513_v8 = vmul.f32 %v6042_v43, %v2473_v49  ;;  %v2514_v56 = vmul.f32 %v6044_v35, %v2473_v49  ;;  %v2472_v55 = vmul.f32 %v4731_v21, %v2440_v42  ;;  %v4825_v58 = vmov 38   ;;  %v7747_v42 = vld [vmem:[#allocation43_spill] sm:$0xff] }
 0x894   : > { %v2439_v12 = vsub.f32 2.0, %v2407_v16  ;;  %v2438_v17 = vsub.f32 2.0, %v2406_v13  ;;  %v2405_v32 = vmul.f32 %v4737_v44, %v6236_v5  ;;  %v6416_v13 = vpop.xlane.xlu0 %2322 }
 0x895   : > { %2563 = vmatpush.xpose.msrb.mxu0 %v2523_v31  ;;  %2583 = vmatpush.xpose.msra.mxu3 %v2524_v6  ;;  %v2511_v57 = vmul.f32 %v6058_v33, %v2472_v55  ;;  %v2512_v43 = vmul.f32 %v6060_v45, %v2472_v55  ;;  %v4739_v6 = vpop.eup %4738  ;;  %v7750_v55 = vld [vmem:[#allocation51_spill] sm:$0xff] }
 0x896   : > { %v2471_v31 = vmul.f32 %v4733_v60, %v2439_v12  ;;  %v2470_v35 = vmul.f32 %v4735_v39, %v2438_v17  ;;  %v4741_v1 = vpop.eup %4740  ;;  %v2437_v29 = vsub.f32 2.0, %v2405_v32  ;;  %v2404_v9 = vmul.f32 %v4739_v6, %v6288_v38  ;;  %v7742_v38 = vld [vmem:[#allocation49_spill] sm:$0xff]  ;;  %v6421_v17 = vpop.xlane.xlu2 %2328 }
 0x897   : > { %v2403_v33 = vmul.f32 %v4741_v1, %v6224_v26  ;;  %v4743_v10 = vpop.eup %4742 }
 0x898   : > { %4357 = vset.pattern.permute.xlu0 %v4823_v4  ;;  %v2509_v51 = vmul.f32 %v6126_v28, %v2471_v31  ;;  %v2510_v5 = vmul.f32 %v6128_v27, %v2471_v31  ;;  %v2436_v45 = vsub.f32 2.0, %v2404_v9  ;;  %v2507_v7 = vmul.f32 %v5964_v24, %v2470_v35  ;;  %v7741_v4 = vld [vmem:[#allocation46_spill] sm:$0xff]  ;;  %v4745_v48 = vpop.eup %4744  ;;  %v7753_v31 = vld [vmem:[#allocation27_spill] sm:$0xff] }
 0x899   : > { %3276 = vperm.xlu0 %4357, %v6361_v2   ;;  %2564 = vmatpush.xpose.msrb.mxu0 %v2521_v54  ;;  %v2508_v54 = vmul.f32 %v7741_v4, %v2470_v35  ;;  %v2435_v28 = vsub.f32 2.0, %v2403_v33  ;;  %v2402_v27 = vmul.f32 %v4743_v10, %v6202_v0  ;;  %v2401_v21 = vmul.f32 %v4745_v48, %v6274_v59  ;;  %v7748_v59 = vld [vmem:[#allocation47_spill] sm:$0xff] }
 0x89a   : > { %2584 = vmatpush.xpose.msra.mxu3 %v2522_v20  ;;  %v2469_v20 = vmul.f32 %v4737_v44, %v2437_v29  ;;  %v6433_v29 = vpop.xlane.xlu1 %2325  ;;  %v4830_v9 = vmov 12  }
 0x89b   : > { %v2434_v24 = vsub.f32 2.0, %v2402_v27  ;;  %v2433_v0 = vsub.f32 2.0, %v2401_v21 }
 0x89c   : > { %v2505_v26 = vmul.f32 %v7742_v38, %v2469_v20 }
 0x89d   : > { %2565 = vmatpush.xpose.msrb.mxu0 %v2519_v18  ;;  %v2506_v18 = vmul.f32 %v7743_v53, %v2469_v20  ;;  %v2466_v39 = vmul.f32 %v4743_v10, %v2434_v24 }
 0x89e   : > { %2585 = vmatpush.xpose.msra.mxu3 %v2520_v22  ;;  %v2468_v22 = vmul.f32 %v4739_v6, %v2436_v45  ;;  %v4829_v6 = vmov 46  }
 0x8a0   : > { %v2503_v23 = vmul.f32 %v7744_v41, %v2468_v22  ;;  %v2504_v60 = vmul.f32 %v7745_v25, %v2468_v22 }
 0x8a1   : > { %4359 = vset.pattern.permute.xlu0 %v4824_v40  ;;  %2566 = vmatpush.xpose.msrb.mxu0 %v2517_v3  ;;  %v2467_v3 = vmul.f32 %v4741_v1, %v2435_v28  ;;  %v7746_v40 = vld [vmem:[#allocation42_spill] sm:$0xff] }
 0x8a2   : > { %2586 = vmatpush.xpose.msra.mxu3 %v2518_v63  ;;  %3307 = vperm.xlu0 %4359, %v6361_v2   ;;  %v4827_v63 = vmov 18   ;;  %v6438_v33 = vpop.xlane.xlu1 %2334 }
 0x8a3   : > { %v2501_v49 = vmul.f32 %v7746_v40, %v2467_v3  ;;  %v2502_v16 = vmul.f32 %v7747_v42, %v2467_v3  ;;  %v4832_v3 = vmov 44  }
 0x8a4   : > { %4356 = vset.pattern.permute.xlu2 %v4832_v3 }
 0x8a5   : > { %2567 = vmatpush.xpose.msrb.mxu0 %v2515_v61  ;;  %v2499_v61 = vmul.f32 %v7748_v59, %v2466_v39  ;;  %3222 = vperm.xlu2 %4356, %v6361_v2  }
 0x8a6   : > { %2587 = vmatpush.xpose.msra.mxu3 %v2516_v34  ;;  %v2465_v34 = vmul.f32 %v4745_v48, %v2433_v0 }
 0x8a8   : > { %v2497_v44 = vmul.f32 %v7750_v55, %v2465_v34 }
 0x8a9   : > { %2568 = vmatpush.xpose.msrb.mxu0 %v2513_v8  ;;  %v7749_v8 = vld [vmem:[#allocation48_spill] sm:$0xff] }
 0x8aa   : > { %2588 = vmatpush.xpose.msra.mxu3 %v2514_v56  ;;  %4362 = vset.pattern.permute.xlu0 %v4825_v58  ;;  %v2500_v12 = vmul.f32 %v7749_v8, %v2466_v39  ;;  %v4828_v56 = vmov 32   ;;  %v7751_v58 = vld [vmem:[#allocation52_spill] sm:$0xff] }
 0x8ab   : > { %3374 = vperm.xlu0 %4362, %v6361_v2   ;;  %v2498_v32 = vmul.f32 %v7751_v58, %v2465_v34 }
 0x8ad   : > { %2569 = vmatpush.xpose.msrb.mxu0 %v2511_v57  ;;  %v6424_v57 = vpop.xlane.xlu0 %2331 }
 0x8ae   : > { %2589 = vmatpush.xpose.msra.mxu3 %v2512_v43  ;;  %v7752_v43 = vld [vmem:[#allocation30_spill] sm:$0xff]  ;;  %v6429_v35 = vpop.xlane.xlu2 %2337 }
 0x8b1   : > { %2570 = vmatpush.xpose.msrb.mxu0 %v2509_v51 }
 0x8b2   : > { %2590 = vmatpush.xpose.msra.mxu3 %v2510_v5 }
 0x8b3   : > { %4364 = vset.pattern.permute.xlu0 %v4826_v37 }
 0x8b4   : > { %3449 = vperm.xlu0 %4364, %v6361_v2  }
 0x8b5   : > { %2571 = vmatpush.xpose.msrb.mxu0 %v2507_v7  ;;  %v6440_v7 = vpop.xlane.xlu1 %2343 }
 0x8b6   : > { %2591 = vmatpush.xpose.msra.mxu3 %v2508_v54  ;;  %v6431_v1 = vpop.xlane.xlu0 %2340  ;;  %v4831_v54 = vmov 10  }
 0x8b7   : > { %4358 = vset.pattern.permute.xlu1 %v4831_v54 }
 0x8b9   : > { %2572 = vmatpush.xpose.msrb.mxu0 %v2505_v26 }
 0x8ba   : > { %2592 = vmatpush.xpose.msra.mxu3 %v2506_v18 }
 0x8bc   : > { %4366 = vset.pattern.permute.xlu0 %v4827_v63 }
 0x8bd   : > { %3480 = vperm.xlu0 %4366, %v6361_v2   ;;  %2573 = vmatpush.xpose.msrb.mxu0 %v2503_v23 }
 0x8be   : > { %2593 = vmatpush.xpose.msra.mxu3 %v2504_v60  ;;  %v2350_v5 = vpop.xlane.xlu0 %2349 }
 0x8c1   : > { %2574 = vmatpush.xpose.msrb.mxu0 %v2501_v49 }
 0x8c2   : > { %2594 = vmatpush.xpose.msra.mxu3 %v2502_v16 }
 0x8c5   : > { %4368 = vset.pattern.permute.xlu0 %v4828_v56  ;;  %2575 = vmatpush.xpose.msrb.mxu0 %v2499_v61 }
 0x8c6   : > { %2595 = vmatpush.xpose.msra.mxu3 %v2500_v12  ;;  %3528 = vperm.xlu0 %4368, %v6361_v2   ;;  %v6435_v51 = vpop.xlane.xlu2 %2346 }
 0x8c9   : > { %2576 = vmatpush.xpose.msrb.mxu0 %v2497_v44 }
 0x8ca   : > { %2596 = vmatpush.xpose.msra.mxu3 %v2498_v32 }
 0x8cc   : > { %2577 = vmatmul.f32.vlgmr.msrb.gmra.mxu0 %v7752_v43 }
 0x8cd   : > { %2597 = vmatmul.f32.vlgmr.msra.gmra.mxu3 %v7753_v31 }
 0x8ce   : > { %4370 = vset.pattern.permute.xlu0 %v4829_v6 }
 0x8cf   : > { %3576 = vperm.xlu0 %4370, %v6361_v2  }
 0x8d6   : > { %v2356_v45 = vpop.xlane.xlu2 %2355 }
 0x8d7   : > { %4372 = vset.pattern.permute.xlu0 %v4830_v9 }
 0x8d8   : > { %3637 = vperm.xlu0 %4372, %v6361_v2   ;;  %v2359_v37 = vpop.xlane.xlu0 %2358 }
 0x8e8   : > { %v2353_v10 = vpop.xlane.xlu1 %2352 }
 0x8e9   : > { %v2365_v4 = vpop.xlane.xlu2 %2364 }
 0x8ea   : > { %4746 = vrcp.f32 %v2365_v4 }
 0x8ef   : > { %v2368_v20 = vpop.xlane.xlu0 %2367 }
 0x8f0   : > { %4748 = vrcp.f32 %v2368_v20  ;;  %v4747_v28 = vpop.eup %4746 }
 0x8f1   : > { %4750 = vrcp.f32 %v2359_v37  ;;  %v2431_v27 = vmul.f32 %v4747_v28, %v2365_v4 }
 0x8f2   : > { %4752 = vrcp.f32 %v2356_v45 }
 0x8f3   : > { %v2463_v18 = vsub.f32 2.0, %v2431_v27  ;;  %v7754_v27 = vld [vmem:[#allocation75_spill] sm:$0xff] }
 0x8f5   : > { %v2495_v23 = vmul.f32 %v4747_v28, %v2463_v18 }
 0x8f6   : > { %v4749_v38 = vpop.eup %4748 }
 0x8f7   : > { %v2432_v26 = vmul.f32 %v4749_v38, %v2368_v20  ;;  %v2362_v53 = vpop.xlane.xlu1 %2361  ;;  %v4751_v48 = vpop.eup %4750  ;;  %v2557_v49 = vmul.f32 %v6324_v19, %v2495_v23  ;;  %v2558_v39 = vmul.f32 %v6330_v62, %v2495_v23  ;;  %v7757_v23 = vld [vmem:[#allocation73_spill] sm:$0xff] }
 0x8f8   : > { %4754 = vrcp.f32 %v2362_v53  ;;  %v4753_v63 = vpop.eup %4752  ;;  %v2429_v25 = vmul.f32 %v4751_v48, %v2359_v37 }
 0x8f9   : > { %v2464_v22 = vsub.f32 2.0, %v2432_v26  ;;  %4756 = vrcp.f32 %v2353_v10  ;;  %v2428_v40 = vmul.f32 %v4753_v63, %v2356_v45  ;;  %v4833_v26 = vmov 11  }
 0x8fa   : > { %4758 = vrcp.f32 %v2350_v5 }
 0x8fb   : > { %v2496_v24 = vmul.f32 %v4749_v38, %v2464_v22  ;;  %4760 = vrcp.f32 %v6435_v51  ;;  %v2460_v34 = vsub.f32 2.0, %v2428_v40  ;;  %v7756_v22 = vld [vmem:[#allocation72_spill] sm:$0xff] }
 0x8fc   : > { %4762 = vrcp.f32 %v6440_v7 }
 0x8fd   : > { %v2559_v21 = vmul.f32 %v6338_v14, %v2496_v24  ;;  %v2560_v41 = vmul.f32 %v6340_v50, %v2496_v24  ;;  %v2461_v14 = vsub.f32 2.0, %v2429_v25  ;;  %v2492_v6 = vmul.f32 %v4753_v63, %v2460_v34  ;;  %v7758_v63 = vld [vmem:[#allocation74_spill] sm:$0xff] }
 0x8fe   : > { %v4755_v60 = vpop.eup %4754  ;;  %4764 = vrcp.f32 %v6431_v1 }
 0x8ff   : > { %2601 = vmatpush.xpose.msra.mxu2 %v2559_v21  ;;  %2621 = vmatpush.xpose.msrb.mxu3 %v2560_v41  ;;  %v2430_v0 = vmul.f32 %v4755_v60, %v2362_v53  ;;  %v4757_v16 = vpop.eup %4756  ;;  %v2493_v12 = vmul.f32 %v4751_v48, %v2461_v14  ;;  %4766 = vrcp.f32 %v6429_v35  ;;  %v7759_v14 = vld [vmem:[#allocation67_spill] sm:$0xff] }
 0x900   : > { %v4759_v8 = vpop.eup %4758  ;;  %v2427_v19 = vmul.f32 %v4757_v16, %v2353_v10  ;;  %4768 = vrcp.f32 %v6438_v33 }
 0x901   : > { %v2462_v42 = vsub.f32 2.0, %v2430_v0  ;;  %v2426_v55 = vmul.f32 %v4759_v8, %v2350_v5  ;;  %v2553_v58 = vmul.f32 %v6310_v47, %v2493_v12  ;;  %v2554_v32 = vmul.f32 %v6314_v36, %v2493_v12  ;;  %v4761_v9 = vpop.eup %4760  ;;  %v7761_v12 = vld [vmem:[#allocation69_spill] sm:$0xff] }
 0x902   : > { %v6447_v50 = vpop.permute.xlu0 %3198  ;;  %v2459_v44 = vsub.f32 2.0, %v2427_v19  ;;  %v2425_v37 = vmul.f32 %v4761_v9, %v6435_v51  ;;  %v2551_v5 = vmul.f32 %v6306_v15, %v2492_v6  ;;  %v2552_v47 = vmul.f32 %v6308_v11, %v2492_v6  ;;  %v7763_v6 = vld [vmem:[#allocation65_spill] sm:$0xff] }
 0x903   : > { %v3203_v59 = vmul.f32 0.0, %v6447_v50  ;;  %2602 = vmatpush.xpose.msra.mxu2 %v2557_v49  ;;  %2622 = vmatpush.xpose.msrb.mxu3 %v2558_v39  ;;  %v2494_v61 = vmul.f32 %v4755_v60, %v2462_v42  ;;  %4770 = vrcp.f32 %v6424_v57  ;;  %v7760_v42 = vld [vmem:[#allocation68_spill] sm:$0xff] }
 0x904   : > { %v2491_v4 = vmul.f32 %v4757_v16, %v2459_v44  ;;  %v2457_v10 = vsub.f32 2.0, %v2425_v37  ;;  %4772 = vrcp.f32 %v6421_v17 }
 0x905   : > { %3211 = vrot.lane.b32.xlu1 %v3203_v59, %s4805_s30  ;;  %v2555_v62 = vmul.f32 %v6345_v30, %v2494_v61  ;;  %v2556_v56 = vmul.f32 %v6347_v46, %v2494_v61  ;;  %v2458_v30 = vsub.f32 2.0, %v2426_v55  ;;  %v4763_v46 = vpop.eup %4762  ;;  %4774 = vrcp.f32 %v6433_v29 }
 0x906   : > { %v2424_v36 = vmul.f32 %v4763_v46, %v6440_v7  ;;  %v4765_v20 = vpop.eup %4764  ;;  %v2549_v28 = vmul.f32 %v6326_v52, %v2491_v4  ;;  %v2550_v38 = vmul.f32 %v7754_v27, %v2491_v4  ;;  %v7755_v7 = vld [vmem:[#allocation71_spill] sm:$0xff]  ;;  %v2489_v24 = vmul.f32 %v4761_v9, %v2457_v10 }
 0x907   : > { %2603 = vmatpush.xpose.msra.mxu2 %v2555_v62  ;;  %2623 = vmatpush.xpose.msrb.mxu3 %v2556_v56  ;;  %v2490_v54 = vmul.f32 %v4759_v8, %v2458_v30  ;;  %v2423_v11 = vmul.f32 %v4765_v20, %v6431_v1  ;;  %v4767_v53 = vpop.eup %4766  ;;  %v7762_v62 = vld [vmem:[#allocation70_spill] sm:$0xff]  ;;  %4776 = vrcp.f32 %v6416_v13 }
 0x908   : > { %v2456_v15 = vsub.f32 2.0, %v2424_v36  ;;  %v2422_v21 = vmul.f32 %v4767_v53, %v6429_v35  ;;  %v4769_v1 = vpop.eup %4768  ;;  %v2545_v3 = vmul.f32 %v7757_v23, %v2489_v24  ;;  %v2546_v25 = vmul.f32 %v7758_v63, %v2489_v24 }
 0x909   : > { %v2547_v18 = vmul.f32 %v7755_v7, %v2490_v54  ;;  %v2548_v48 = vmul.f32 %v7756_v22, %v2490_v54  ;;  %v2455_v41 = vsub.f32 2.0, %v2423_v11  ;;  %v2421_v0 = vmul.f32 %v4769_v1, %v6438_v33  ;;  %v4771_v40 = vpop.eup %4770  ;;  %v7765_v54 = vld [vmem:[#allocation63_spill] sm:$0xff]  ;;  %v7768_v11 = vld [vmem:[#allocation62_spill] sm:$0xff] }
 0x90a   : > { %v2488_v60 = vmul.f32 %v4763_v46, %v2456_v15  ;;  %v2454_v49 = vsub.f32 2.0, %v2422_v21  ;;  %v2420_v34 = vmul.f32 %v4771_v40, %v6424_v57  ;;  %v4773_v33 = vpop.eup %4772  ;;  %v7764_v57 = vld [vmem:[#allocation66_spill] sm:$0xff]  ;;  %v7769_v22 = vld [vmem:[#allocation59_spill] sm:$0xff] }
 0x90b   : > { %v6457_v45 = vpop.permute.xlu0 %3276  ;;  %2604 = vmatpush.xpose.msra.mxu2 %v2553_v58  ;;  %2624 = vmatpush.xpose.msrb.mxu3 %v2554_v32  ;;  %v2487_v39 = vmul.f32 %v4765_v20, %v2455_v41  ;;  %v2453_v8 = vsub.f32 2.0, %v2421_v0  ;;  %v2419_v44 = vmul.f32 %v4773_v33, %v6421_v17  ;;  %v4775_v58 = vpop.eup %4774  ;;  %v7766_v20 = vld [vmem:[#allocation64_spill] sm:$0xff]  ;;  %v7771_v41 = vld [vmem:[#allocation57_spill] sm:$0xff]  ;;  %v7773_v0 = vld [vmem:[#allocation55_spill] sm:$0xff] }
 0x90c   : > { %v2543_v35 = vmul.f32 %v7759_v14, %v2488_v60  ;;  %v2544_v16 = vmul.f32 %v7760_v42, %v2488_v60  ;;  %v2486_v55 = vmul.f32 %v4767_v53, %v2454_v49  ;;  %v2452_v32 = vsub.f32 2.0, %v2420_v34  ;;  %v7774_v49 = vld [vmem:[#allocation56_spill] sm:$0xff] }
 0x90d   : > { %3283 = vperm.xlu1 %4358, %v6361_v2   ;;  %v2541_v19 = vmul.f32 %v7761_v12, %v2487_v39  ;;  %v2542_v56 = vmul.f32 %v7762_v62, %v2487_v39  ;;  %v2485_v46 = vmul.f32 %v4769_v1, %v2453_v8  ;;  %v2451_v4 = vsub.f32 2.0, %v2419_v44 }
 0x90e   : > { %v2539_v9 = vmul.f32 %v7763_v6, %v2486_v55  ;;  %v2540_v30 = vmul.f32 %v7764_v57, %v2486_v55  ;;  %v2484_v36 = vmul.f32 %v4771_v40, %v2452_v32  ;;  %v4835_v12 = vmov 33  }
 0x90f   : > { %2605 = vmatpush.xpose.msra.mxu2 %v2551_v5  ;;  %2625 = vmatpush.xpose.msrb.mxu3 %v2552_v47  ;;  %v2418_v5 = vmul.f32 %v4775_v58, %v6433_v29  ;;  %v4777_v47 = vpop.eup %4776  ;;  %v2537_v17 = vmul.f32 %v7765_v54, %v2485_v46  ;;  %v2538_v10 = vmul.f32 %v7766_v20, %v2485_v46  ;;  %v4837_v62 = vmov 40  }
 0x910   : > { %v2483_v53 = vmul.f32 %v4773_v33, %v2451_v4  ;;  %v4839_v44 = vmov 6  }
 0x911   : > { %v2450_v27 = vsub.f32 2.0, %v2418_v5 }
 0x913   : > { %2606 = vmatpush.xpose.msra.mxu2 %v2549_v28  ;;  %2626 = vmatpush.xpose.msrb.mxu3 %v2550_v38  ;;  %v2417_v28 = vmul.f32 %v4777_v47, %v6416_v13  ;;  %v7767_v38 = vld [vmem:[#allocation61_spill] sm:$0xff]  ;;  %v2482_v21 = vmul.f32 %v4775_v58, %v2450_v27  ;;  %v4834_v13 = vmov 13  }
 0x914   : > { %v6470_v51 = vpop.permute.xlu0 %3307  ;;  %v2535_v15 = vmul.f32 %v7767_v38, %v2484_v36 }
 0x915   : > { %4365 = vset.pattern.permute.xlu1 %v4833_v26  ;;  %v3310_v52 = vmul.f32 0.0, %v6470_v51  ;;  %v2536_v26 = vmul.f32 %v7768_v11, %v2484_v36  ;;  %v2531_v23 = vmul.f32 %v7771_v41, %v2482_v21  ;;  %v4844_v41 = vmov 5  }
 0x917   : > { %2607 = vmatpush.xpose.msra.mxu2 %v2547_v18  ;;  %2627 = vmatpush.xpose.msrb.mxu3 %v2548_v48  ;;  %v2449_v18 = vsub.f32 2.0, %v2417_v28  ;;  %v2533_v48 = vmul.f32 %v7769_v22, %v2483_v53  ;;  %v4841_v28 = vmov 45  }
 0x918   : > { %3316 = vrot.lane.b32.xlu1 %v3310_v52, %s4803_s29  ;;  %v7770_v52 = vld [vmem:[#allocation60_spill] sm:$0xff] }
 0x919   : > { %v2534_v24 = vmul.f32 %v7770_v52, %v2483_v53  ;;  %v2481_v1 = vmul.f32 %v4777_v47, %v2449_v18  ;;  %v4842_v53 = vmov 25   ;;  %v4843_v52 = vmov 39  }
 0x91b   : > { %2608 = vmatpush.xpose.msra.mxu2 %v2545_v3  ;;  %2628 = vmatpush.xpose.msrb.mxu3 %v2546_v25  ;;  %v7772_v3 = vld [vmem:[#allocation58_spill] sm:$0xff]  ;;  %v2529_v40 = vmul.f32 %v7773_v0, %v2481_v1  ;;  %v2530_v39 = vmul.f32 %v7774_v49, %v2481_v1  ;;  %v4846_v0 = vmov 26   ;;  %v4848_v49 = vmov 34  }
 0x91c   : > { %v2532_v63 = vmul.f32 %v7772_v3, %v2482_v21 }
 0x91d   : > { %v6484_v59 = vpop.permute.xlu0 %3374 }
 0x91e   : > { %v3379_v61 = vmul.f32 0.0, %v6484_v59 }
 0x91f   : > { %2609 = vmatpush.xpose.msra.mxu2 %v2543_v35  ;;  %2629 = vmatpush.xpose.msrb.mxu3 %v2544_v16 }
 0x920   : > { %3387 = vrot.lane.b32.xlu1 %v3379_v61, %s4805_s30 }
 0x923   : > { %2610 = vmatpush.xpose.msra.mxu2 %v2541_v19  ;;  %2630 = vmatpush.xpose.msrb.mxu3 %v2542_v56  ;;  %v4836_v19 = vmov 24   ;;  %v4838_v56 = vmov 41  }
 0x924   : > { %4360 = vset.pattern.permute.xlu2 %v4836_v19 }
 0x926   : > { %v6496_v37 = vpop.permute.xlu0 %3449 }
 0x927   : > { %2611 = vmatpush.xpose.msra.mxu2 %v2539_v9  ;;  %2631 = vmatpush.xpose.msrb.mxu3 %v2540_v30  ;;  %v4840_v9 = vmov 31  }
 0x928   : > { %3456 = vperm.xlu1 %4365, %v6361_v2  }
 0x92b   : > { %2612 = vmatpush.xpose.msra.mxu2 %v2537_v17  ;;  %2632 = vmatpush.xpose.msrb.mxu3 %v2538_v10 }
 0x92f   : > { %2613 = vmatpush.xpose.msra.mxu2 %v2535_v15  ;;  %2633 = vmatpush.xpose.msrb.mxu3 %v2536_v26  ;;  %v6505_v29 = vpop.permute.xlu0 %3480 }
 0x930   : > { %v3483_v7 = vmul.f32 0.0, %v6505_v29  ;;  %4374 = vset.pattern.permute.xlu1 %v4834_v13 }
 0x932   : > { %3489 = vrot.lane.b32.xlu1 %v3483_v7, %s4803_s29 }
 0x933   : > { %2614 = vmatpush.xpose.msra.mxu2 %v2533_v48  ;;  %2634 = vmatpush.xpose.msrb.mxu3 %v2534_v24 }
 0x937   : > { %2615 = vmatpush.xpose.msra.mxu2 %v2531_v23  ;;  %2635 = vmatpush.xpose.msrb.mxu3 %v2532_v63 }
 0x938   : > { %v6513_v25 = vpop.permute.xlu0 %3528 }
 0x939   : > { %v3533_v60 = vmul.f32 0.0, %v6513_v25 }
 0x93b   : > { %2616 = vmatpush.xpose.msra.mxu2 %v2529_v40  ;;  %2636 = vmatpush.xpose.msrb.mxu3 %v2530_v39  ;;  %v4847_v40 = vmov 27  }
 0x93c   : > { %3541 = vrot.lane.b32.xlu1 %v3533_v60, %s4809_s16  ;;  %v4845_v60 = vmov 19  }
 0x93e   : > { %2617 = vmatmul.f32.vlgmr.msra.gmra.mxu2 %v7752_v43  ;;  %2637 = vmatmul.f32.vlgmr.msrb.gmra.mxu3 %v7753_v31  ;;  %v1536_v43 = vld [vmem:[%s7418_s5] sm:$0xff]  ;;  %v6534_v31 = vpop.permute.xlu2 %3222 }
 0x93f   : > { %v3227_v8 = vmul.f32 0.0, %v6534_v31 }
 0x941   : > { %v6521_v14 = vpop.permute.xlu0 %3576  ;;  %3235 = vrot.lane.b32.xlu2 %v3227_v8, %s4811_s19 }
 0x942   : > { %v3581_v35 = vmul.f32 0.0, %v6521_v14 }
 0x944   : > { %3589 = vrot.lane.b32.xlu1 %v3581_v35, %s4811_s19  ;;  %v4849_v35 = vmov 48  }
 0x949   : > { %v2578_v61 = vpop.f32.mrf.mxu0 }
 0x94a   : > { %v6525_v42 = vpop.permute.xlu0 %3637 }
 0x94b   : > { %v3640_v16 = vmul.f32 0.0, %v6525_v42 }
 0x94d   : > { %3646 = vrot.lane.b32.xlu1 %v3640_v16, %s4800_s28  ;;  %v7783_v16 = vld [vmem:[#allocation35_spill] sm:$0xff] }
 0x950   : > { %v2598_v34 = vpop.f32.mrf.mxu3 }
 0x951   : > { %v2599_v33 = vadd.f32 %v2598_v34, %v2578_v61  ;;  %v7784_v34 = vld [vmem:[#allocation18_spill] sm:$0xff] }
 0x953   : > { %2664 = vmatpush.msrb.mxu2 %v2599_v33 }
 0x954   : > { %4257 = vmatmul.msk.f32.vlgmr.msrb.gmra.mxu2 %vm341_vm0, %v1536_v43 }
 0x955   : > { %3818 = vperm.xlu1 %4374, %v6361_v2  }
 0x95d   : > { %4377 = vset.pattern.permute.xlu1 %v4835_v12  ;;  %v7786_v12 = vld [vmem:[#allocation13_spill] sm:$0xff] }
 0x95e   : > { %3709 = vperm.xlu1 %4377, %v6361_v2  }
 0x966   : > { %4379 = vset.pattern.permute.xlu1 %v4837_v62  ;;  %v7787_v62 = vld [vmem:[#allocation11_spill] sm:$0xff] }
 0x967   : > { %3733 = vperm.xlu1 %4379, %v6361_v2  }
 0x96f   : > { %4382 = vset.pattern.permute.xlu1 %v4838_v56 }
 0x970   : > { %3914 = vperm.xlu1 %4382, %v6361_v2  }
 0x977   : > { %v6541_v55 = vpop.permute.xlu1 %3211 }
 0x978   : > { %7775 = vst [vmem:[#allocation46_spill] sm:$0xff] %v6541_v55  ;;  %4384 = vset.pattern.permute.xlu1 %v4839_v44  ;;  %v4850_v44 = vmov 20  }
 0x979   : > { %3811 = vperm.xlu1 %4384, %v6361_v2   ;;  %4376 = vset.pattern.permute.xlu0 %v4850_v44 }
 0x97f   : > { %v6544_v58 = vpop.permute.xlu1 %3283 }
 0x980   : > { %v3286_v32 = vmul.f32 0.0, %v6544_v58 }
 0x982   : > { %3292 = vrot.lane.b32.xlu2 %v3286_v32, %s4800_s28 }
 0x98a   : > { %3331 = vperm.xlu2 %4360, %v6361_v2   ;;  %v6549_v6 = vpop.permute.xlu1 %3316 }
 0x992   : > { %4361 = vset.pattern.permute.xlu2 %v4840_v9  ;;  %v6552_v57 = vpop.permute.xlu1 %3387  ;;  %v7789_v9 = vld [vmem:[#allocation29_spill] sm:$0xff] }
 0x993   : > { %3350 = vperm.xlu2 %4361, %v6361_v2   ;;  %7776 = vst [vmem:[#allocation49_spill] sm:$0xff] %v6552_v57 }
 0x99a   : > { %v6554_v30 = vpop.permute.xlu1 %3456 }
 0x99b   : > { %4363 = vset.pattern.permute.xlu2 %v4841_v28  ;;  %v6569_v27 = vpop.permute.xlu2 %3235  ;;  %v3459_v48 = vmul.f32 0.0, %v6554_v30 }
 0x99c   : > { %7779 = vst [vmem:[#allocation54_spill] sm:$0xff] %v6569_v27  ;;  %v7825_v27 = vld [vmem:[#allocation33_spill] sm:$0xff] }
 0x9a4   : > { %v6556_v46 = vpop.permute.xlu1 %3489 }
 0x9ae   : > { %v6558_v5 = vpop.permute.xlu1 %3541 }
 0x9af   : > { %7777 = vst [vmem:[#allocation50_spill] sm:$0xff] %v6558_v5 }
 0x9b6   : > { %v6560_v47 = vpop.permute.xlu1 %3589 }
 0x9b7   : > { %7778 = vst [vmem:[#allocation53_spill] sm:$0xff] %v6560_v47 }
 0x9bf   : > { %v6562_v4 = vpop.permute.xlu1 %3646 }
 0x9c1   : > { %v2618_v36 = vpop.f32.mrf.mxu2  ;;  %v2638_v54 = vpop.f32.mrf.mxu3 }
 0x9c2   : > { %v2639_v17 = vadd.f32 %v2638_v54, %v2618_v36 }
 0x9c4   : > { %2684 = vmatpush.msra.mxu2 %v2639_v17 }
 0x9c5   : > { %4258 = vmatmul.msk.f32.vlgmr.msra.gmra.mxu2 %vm341_vm0, %v1536_v43  ;;  %v7785_v43 = vld [vmem:[#allocation9_spill] sm:$0xff] }
 0x9c7   : > { %v6565_v20 = vpop.permute.xlu1 %3818 }
 0x9c8   : > { %v3821_v10 = vmul.f32 0.0, %v6565_v20 }
 0x9ca   : > { %3827 = vrot.lane.b32.xlu1 %v3821_v10, %s4800_s28 }
 0x9d7   : > { %v2666_v39 = vpop.f32.mrf.mxu2 }
 0x9d8   : > { %v6611_v61 = vadd.f32 %v2666_v39, %v7783_v16 }
 0x9da   : > { %v2737_v33 = vmul.f32 %v7784_v34, %v6611_v61  ;;  %v2762_v8 = vmul.f32 %v7785_v43, %v6611_v61  ;;  %v2949_v19 = vmul.f32 %v7786_v12, %v6611_v61  ;;  %v3106_v56 = vmul.f32 %v7787_v62, %v6611_v61 }
 0x9db   : > { %v3154_v36 = vmul.f32 %v7789_v9, %v6611_v61  ;;  %v3311_v17 = vmul.f32 %v6470_v51, %v6611_v61  ;;  %v3484_v10 = vmul.f32 %v6505_v29, %v6611_v61 }
 0x9dc   : > { %v6571_v38 = vpop.permute.xlu2 %3292 }
 0x9e4   : > { %v6573_v15 = vpop.permute.xlu2 %3331 }
 0x9ed   : > { %v6575_v11 = vpop.permute.xlu2 %3350 }
 0x9ee   : > { %v3355_v26 = vmul.f32 0.0, %v6575_v11 }
 0x9f0   : > { %3363 = vrot.lane.b32.xlu2 %v3355_v26, %s4809_s16 }
 0x9f8   : > { %3398 = vperm.xlu2 %4363, %v6361_v2  }
 0xa00   : > { %4367 = vset.pattern.permute.xlu2 %v4842_v53  ;;  %v3641_v53 = vmul.f32 %v6525_v42, %v6611_v61 }
 0xa4a   : > { %v6580_v7 = vpop.permute.xlu2 %3363 }
 0xa4b   : > { %7780 = vst [vmem:[#allocation42_spill] sm:$0xff] %v6580_v7 }
 0xa52   : > { %v6582_v18 = vpop.permute.xlu2 %3398 }
 0xa53   : > { %v3403_v22 = vmul.f32 0.0, %v6582_v18 }
 0xa55   : > { %3411 = vrot.lane.b32.xlu2 %v3403_v22, %s4811_s19 }
 0xa5d   : > { %3465 = vrot.lane.b32.xlu2 %v3459_v48, %s4800_s28 }
 0xa65   : > { %3504 = vperm.xlu2 %4367, %v6361_v2  }
 0xa6d   : > { %4369 = vset.pattern.permute.xlu2 %v4843_v52 }
 0xaaf   : > { %v6589_v24 = vpop.permute.xlu2 %3411 }
 0xab0   : > { %7781 = vst [vmem:[#allocation43_spill] sm:$0xff] %v6589_v24 }
 0xab7   : > { %v6591_v21 = vpop.permute.xlu2 %3465 }
 0xabf   : > { %v6593_v13 = vpop.permute.xlu2 %3504 }
 0xac0   : > { %v3509_v1 = vmul.f32 0.0, %v6593_v13 }
 0xac2   : > { %3517 = vrot.lane.b32.xlu2 %v3509_v1, %s4806_s10  ;;  %v4851_v1 = vmov 47  }
 0xaca   : > { %3552 = vperm.xlu2 %4369, %v6361_v2  }
 0xad2   : > { %4371 = vset.pattern.permute.xlu2 %v4844_v41  ;;  %v3822_v41 = vmul.f32 %v6565_v20, %v6611_v61 }
 0xb1c   : > { %v6598_v23 = vpop.permute.xlu2 %3517 }
 0xb1d   : > { %7782 = vst [vmem:[#allocation47_spill] sm:$0xff] %v6598_v23 }
 0xb24   : > { %v6600_v3 = vpop.permute.xlu2 %3552 }
 0xb25   : > { %v3557_v63 = vmul.f32 0.0, %v6600_v3 }
 0xb27   : > { %3565 = vrot.lane.b32.xlu2 %v3557_v63, %s4805_s30 }
 0xb2f   : > { %3630 = vperm.xlu2 %4371, %v6361_v2  }
 0xb37   : > { %4373 = vset.pattern.permute.xlu2 %v4845_v60 }
 0xb38   : > { %3661 = vperm.xlu2 %4373, %v6361_v2  }
 0xb40   : > { %4375 = vset.pattern.permute.xlu2 %v4846_v0  ;;  %v6661_v0 = vpop.permute.xlu1 %3709 }
 0xb41   : > { %3685 = vperm.xlu2 %4375, %v6361_v2  }
 0xb49   : > { %4378 = vset.pattern.permute.xlu2 %v4847_v40  ;;  %v3714_v40 = vmul.f32 0.0, %v6661_v0 }
 0xb4a   : > { %3866 = vperm.xlu2 %4378, %v6361_v2  }
 0xb52   : > { %4380 = vset.pattern.permute.xlu2 %v4848_v49 }
 0xb53   : > { %3890 = vperm.xlu2 %4380, %v6361_v2  }
 0xb5b   : > { %4383 = vset.pattern.permute.xlu2 %v4849_v35 }
 0xb5c   : > { %3938 = vperm.xlu2 %4383, %v6361_v2  }
 0xb64   : > { %2744 = vrot.lane.b32.xlu2 %v2737_v33, %s4800_s28  ;;  %v6671_v33 = vpop.permute.xlu1 %3733 }
 0xb6c   : > { %2769 = vrot.lane.b32.xlu2 %v2762_v8, %s4803_s29  ;;  %v3738_v8 = vmul.f32 0.0, %v6671_v33 }
 0xb74   : > { %2956 = vrot.lane.b32.xlu2 %v2949_v19, %s4803_s29 }
 0xb7c   : > { %3113 = vrot.lane.b32.xlu2 %v3106_v56, %s4800_s28 }
 0xb81   : > { %v6625_v32 = vpop.permute.xlu2 %3565 }
 0xb82   : > { %7788 = vst [vmem:[#allocation48_spill] sm:$0xff] %v6625_v32 }
 0xb84   : > { %3161 = vrot.lane.b32.xlu2 %v3154_v36, %s4806_s10 }
 0xb89   : > { %v6630_v54 = vpop.permute.xlu2 %3630 }
 0xb8a   : > { %7790 = vst [vmem:[#allocation51_spill] sm:$0xff] %v6630_v54 }
 0xb8c   : > { %3318 = vrot.lane.b32.xlu2 %v3311_v17, %s4803_s29 }
 0xb92   : > { %v6637_v28 = vpop.permute.xlu2 %3661 }
 0xb93   : > { %v3664_v26 = vmul.f32 0.0, %v6637_v28  ;;  %v3665_v48 = vmul.f32 %v6637_v28, %v6611_v61 }
 0xb94   : > { %3491 = vrot.lane.b32.xlu2 %v3484_v10, %s4803_s29 }
 0xb95   : > { %3670 = vrot.lane.b32.xlu0 %v3664_v26, %s4803_s29 }
 0xb9b   : > { %v6644_v22 = vpop.permute.xlu2 %3685 }
 0xb9c   : > { %3648 = vrot.lane.b32.xlu2 %v3641_v53, %s4800_s28  ;;  %v3690_v63 = vmul.f32 0.0, %v6644_v22 }
 0xb9d   : > { %3842 = vperm.xlu0 %4376, %v6361_v2  }
 0xba4   : > { %3672 = vrot.lane.b32.xlu2 %v3665_v48, %s4803_s29  ;;  %v6651_v52 = vpop.permute.xlu2 %3866  ;;  %v3633_v48 = vmul.f32 0.0, %v6630_v54 }
 0xba5   : > { %4381 = vset.pattern.permute.xlu0 %v4851_v1 }
 0xba6   : > { %3757 = vperm.xlu0 %4381, %v6361_v2   ;;  %v3871_v2 = vmul.f32 0.0, %v6651_v52 }
 0xbac   : > { %3829 = vrot.lane.b32.xlu2 %v3822_v41, %s4800_s28 }
 0xbad   : > { %v6658_v60 = vpop.permute.xlu2 %3890 }
 0xbae   : > { %3698 = vrot.lane.b32.xlu0 %v3690_v63, %s4806_s10 }
 0xbaf   : > { %4385 = vset.pattern.permute.xlu0 %v4849_v35  ;;  %v3895_v35 = vmul.f32 0.0, %v6658_v60 }
 0xbb6   : > { %v6664_v49 = vpop.permute.xlu2 %3938  ;;  %3722 = vrot.lane.b32.xlu0 %v3714_v40, %s4809_s16 }
 0xbbe   : > { %v6668_v39 = vpop.permute.xlu2 %2744  ;;  %3879 = vrot.lane.b32.xlu0 %v3871_v2, %s4806_s10 }
 0xbc6   : > { %v6674_v19 = vpop.permute.xlu2 %2769  ;;  %3746 = vrot.lane.b32.xlu0 %v3738_v8, %s4805_s30 }
 0xbc7   : > { %v2774_v55 = vsel %vm2773_vm10, %v7825_v27, %v6674_v19 }
 0xbce   : > { %v6678_v56 = vpop.permute.xlu2 %2956  ;;  %3903 = vrot.lane.b32.xlu0 %v3895_v35, %s4809_s16 }
 0xbcf   : > { %7791 = vst [vmem:[#allocation52_spill] sm:$0xff] %v6678_v56 }
 0xbd6   : > { %v6681_v44 = vpop.permute.xlu2 %3113 }
 0xbde   : > { %v6683_v36 = vpop.permute.xlu2 %3161 }
 0xbe6   : > { %v6685_v17 = vpop.permute.xlu2 %3318 }
 0xbee   : > { %v6687_v10 = vpop.permute.xlu2 %3491 }
 0xbf6   : > { %v6689_v26 = vpop.permute.xlu2 %3648 }
 0xbf7   : > { %7792 = vst [vmem:[#allocation30_spill] sm:$0xff] %v6689_v26  ;;  %v3652_v53 = vsel %vm2748_vm9, %v6562_v4, %v6689_v26  ;;  %v2686_v4 = vpop.f32.mrf.mxu2 }
 0xbf8   : > { %v3657_v1 = vadd.f32 %v3652_v53, %v3633_v48  ;;  %v6709_v53 = vadd.f32 %v2686_v4, %v7783_v16  ;;  %v7794_v48 = vld [vmem:[#allocation26_spill] sm:$0xff] }
 0xbfa   : > { %v2763_v23 = vmul.f32 %v7785_v43, %v6709_v53  ;;  %v3737_v43 = vmul.f32 %v6671_v33, %v6709_v53 }
 0xbfe   : > { %v6695_v41 = vpop.permute.xlu2 %3672 }
 0xbff   : > { %7793 = vst [vmem:[#allocation27_spill] sm:$0xff] %v6695_v41 }
 0xc07   : > { %v3671_v63 = vpop.permute.xlu0 %3670 }
 0xc08   : > { %v3676_v40 = vsel %vm2773_vm10, %v3671_v63, %v6695_v41  ;;  %v2839_v63 = vmul.f32 %v7794_v48, %v6611_v61 }
 0xc09   : > { %v6699_v2 = vadd.f32 %v3676_v40, %v3657_v1  ;;  %v2840_v1 = vmul.f32 %v7794_v48, %v6709_v53 }
 0xc0f   : > { %v6701_v8 = vpop.permute.xlu0 %3842 }
 0xc10   : > { %v3845_v35 = vmul.f32 0.0, %v6701_v8  ;;  %v3846_v47 = vmul.f32 %v6701_v8, %v6611_v61 }
 0xc12   : > { %3853 = vrot.lane.b32.xlu2 %v3846_v47, %s4803_s29  ;;  %3851 = vrot.lane.b32.xlu1 %v3845_v35, %s4803_s29  ;;  %v6721_v47 = vpop.permute.xlu1 %3914  ;;  %v7795_v35 = vld [vmem:[#allocation22_spill] sm:$0xff] }
 0xc13   : > { %v3919_v16 = vmul.f32 0.0, %v6721_v47  ;;  %v2925_v4 = vmul.f32 %v7795_v35, %v6611_v61  ;;  %v2926_v48 = vmul.f32 %v7795_v35, %v6709_v53  ;;  %v7797_v35 = vld [vmem:[#allocation21_spill] sm:$0xff] }
 0xc18   : > { %v6715_v40 = vpop.permute.xlu0 %3757 }
 0xc19   : > { %v3762_v41 = vmul.f32 0.0, %v6715_v40  ;;  %v3760_v57 = vmul.f32 %v6715_v40, %v6611_v61 }
 0xc1a   : > { %2847 = vrot.lane.b32.xlu2 %v2840_v1, %s4805_s30  ;;  %2845 = vrot.lane.b32.xlu1 %v2839_v63, %s4805_s30  ;;  %v3943_v63 = vmul.f32 0.0, %v6664_v49 }
 0xc1b   : > { %3770 = vrot.lane.b32.xlu0 %v3762_v41, %s4811_s19  ;;  %v7796_v41 = vld [vmem:[#allocation17_spill] sm:$0xff] }
 0xc1c   : > { %v2973_v1 = vmul.f32 %v7796_v41, %v6611_v61  ;;  %v2974_v26 = vmul.f32 %v7796_v41, %v6709_v53 }
 0xc22   : > { %2934 = vrot.lane.b32.xlu2 %v2926_v48, %s4800_s28  ;;  %2932 = vrot.lane.b32.xlu1 %v2925_v4, %s4800_s28  ;;  %v2996_v48 = vmul.f32 %v7797_v35, %v6611_v61  ;;  %v7798_v4 = vld [vmem:[#allocation6_spill] sm:$0xff] }
 0xc23   : > { %3927 = vrot.lane.b32.xlu0 %v3919_v16, %s4805_s30  ;;  %v2997_v16 = vmul.f32 %v7797_v35, %v6709_v53  ;;  %v2787_v54 = vmul.f32 %v7798_v4, %v6611_v61  ;;  %v7801_v35 = vld [vmem:[#allocation37_spill] sm:$0xff] }
 0xc2a   : > { %2982 = vrot.lane.b32.xlu2 %v2974_v26, %s4806_s10  ;;  %2980 = vrot.lane.b32.xlu1 %v2973_v1, %s4806_s10  ;;  %v7799_v26 = vld [vmem:[#allocation10_spill] sm:$0xff]  ;;  %v7800_v1 = vld [vmem:[#allocation19_spill] sm:$0xff] }
 0xc2b   : > { %3951 = vrot.lane.b32.xlu0 %v3943_v63, %s4811_s19  ;;  %v3044_v41 = vmul.f32 %v7799_v26, %v6611_v61  ;;  %v3045_v63 = vmul.f32 %v7799_v26, %v6709_v53  ;;  %v2814_v32 = vmul.f32 %v7800_v1, %v6611_v61  ;;  %v3201_v26 = vmul.f32 %v6447_v50, %v6611_v61 }
 0xc32   : > { %3004 = vrot.lane.b32.xlu2 %v2997_v16, %s4809_s16  ;;  %3002 = vrot.lane.b32.xlu1 %v2996_v48, %s4809_s16  ;;  %v3130_v48 = vmul.f32 %v7801_v35, %v6611_v61  ;;  %v7802_v16 = vld [vmem:[#allocation34_spill] sm:$0xff] }
 0xc33   : > { %2794 = vrot.lane.b32.xlu0 %v2787_v54, %s4806_s10  ;;  %v3131_v54 = vmul.f32 %v7801_v35, %v6709_v53  ;;  %v2864_v5 = vmul.f32 %v7802_v16, %v6611_v61  ;;  %v3287_v35 = vmul.f32 %v6544_v58, %v6611_v61 }
 0xc3a   : > { %3052 = vrot.lane.b32.xlu2 %v3045_v63, %s4811_s19  ;;  %3050 = vrot.lane.b32.xlu1 %v3044_v41, %s4811_s19  ;;  %v7803_v41 = vld [vmem:[#allocation14_spill] sm:$0xff] }
 0xc3b   : > { %2820 = vrot.lane.b32.xlu0 %v2814_v32, %s4809_s16  ;;  %v3202_v32 = vmul.f32 %v6447_v50, %v6709_v53  ;;  %v3020_v63 = vmul.f32 %v7803_v41, %v6611_v61  ;;  %v3377_v50 = vmul.f32 %v6484_v59, %v6611_v61 }
 0xc42   : > { %3139 = vrot.lane.b32.xlu2 %v3131_v54, %s4803_s29  ;;  %3137 = vrot.lane.b32.xlu1 %v3130_v48, %s4803_s29  ;;  %v7804_v48 = vld [vmem:[#allocation32_spill] sm:$0xff] }
 0xc43   : > { %2870 = vrot.lane.b32.xlu0 %v2864_v5, %s4811_s19  ;;  %v3288_v5 = vmul.f32 %v6544_v58, %v6709_v53  ;;  %v3177_v54 = vmul.f32 %v7804_v48, %v6611_v61  ;;  %v6793_v58 = vpop.permute.xlu0 %3698 }
 0xc44   : > { %7805 = vst [vmem:[#allocation75_spill] sm:$0xff] %v6793_v58  ;;  %v3555_v58 = vmul.f32 %v6600_v3, %v6611_v61 }
 0xc4a   : > { %3209 = vrot.lane.b32.xlu2 %v3202_v32, %s4805_s30  ;;  %3207 = vrot.lane.b32.xlu1 %v3201_v26, %s4805_s30  ;;  %v3378_v26 = vmul.f32 %v6484_v59, %v6709_v53  ;;  %v3225_v32 = vmul.f32 %v6534_v31, %v6611_v61  ;;  %v3334_v59 = vmul.f32 %v6573_v15, %v6611_v61 }
 0xc4b   : > { %3026 = vrot.lane.b32.xlu0 %v3020_v63, %s4805_s30  ;;  %v3460_v63 = vmul.f32 %v6554_v30, %v6611_v61 }
 0xc52   : > { %3296 = vrot.lane.b32.xlu2 %v3288_v5, %s4800_s28  ;;  %3294 = vrot.lane.b32.xlu1 %v3287_v35, %s4800_s28  ;;  %v3461_v35 = vmul.f32 %v6554_v30, %v6709_v53  ;;  %v6804_v5 = vpop.permute.xlu2 %3829  ;;  %v3353_v30 = vmul.f32 %v6575_v11, %v6611_v61 }
 0xc53   : > { %3183 = vrot.lane.b32.xlu0 %v3177_v54, %s4809_s16  ;;  %v6806_v54 = vpop.permute.xlu0 %3722 }
 0xc54   : > { %7806 = vst [vmem:[#allocation71_spill] sm:$0xff] %v6806_v54 }
 0xc5a   : > { %3385 = vrot.lane.b32.xlu2 %v3378_v26, %s4805_s30  ;;  %3383 = vrot.lane.b32.xlu1 %v3377_v50, %s4805_s30  ;;  %v3531_v50 = vmul.f32 %v6513_v25, %v6611_v61  ;;  %v3532_v26 = vmul.f32 %v6513_v25, %v6709_v53  ;;  %v3401_v25 = vmul.f32 %v6582_v18, %v6611_v61 }
 0xc5b   : > { %3231 = vrot.lane.b32.xlu0 %v3225_v32, %s4811_s19 }
 0xc62   : > { %3469 = vrot.lane.b32.xlu2 %v3461_v35, %s4800_s28  ;;  %3467 = vrot.lane.b32.xlu1 %v3460_v63, %s4800_s28  ;;  %v6819_v63 = vpop.permute.xlu0 %3879  ;;  %v3579_v35 = vmul.f32 %v6521_v14, %v6611_v61 }
 0xc63   : > { %3338 = vrot.lane.b32.xlu0 %v3334_v59, %s4806_s10  ;;  %7807 = vst [vmem:[#allocation72_spill] sm:$0xff] %v6819_v63  ;;  %v3580_v59 = vmul.f32 %v6521_v14, %v6709_v53  ;;  %v3689_v63 = vmul.f32 %v6644_v22, %v6709_v53  ;;  %v3507_v14 = vmul.f32 %v6593_v13, %v6611_v61 }
 0xc6a   : > { %3539 = vrot.lane.b32.xlu2 %v3532_v26, %s4809_s16  ;;  %3537 = vrot.lane.b32.xlu1 %v3531_v50, %s4809_s16  ;;  %v6830_v50 = vpop.permute.xlu1 %3811  ;;  %v6840_v54 = vpop.permute.xlu0 %3746 }
 0xc6b   : > { %3359 = vrot.lane.b32.xlu0 %v3353_v30, %s4809_s16  ;;  %7808 = vst [vmem:[#allocation73_spill] sm:$0xff] %v6830_v50  ;;  %v3688_v30 = vmul.f32 %v6644_v22, %v6611_v61  ;;  %v3713_v22 = vmul.f32 %v6661_v0, %v6709_v53 }
 0xc6c   : > { %v6817_v32 = vpop.permute.xlu2 %3853  ;;  %7810 = vst [vmem:[#allocation67_spill] sm:$0xff] %v6840_v54  ;;  %v3869_v54 = vmul.f32 %v6651_v52, %v6611_v61 }
 0xc72   : > { %3587 = vrot.lane.b32.xlu2 %v3580_v59, %s4811_s19  ;;  %3585 = vrot.lane.b32.xlu1 %v3579_v35, %s4811_s19  ;;  %v6845_v35 = vpop.permute.xlu1 %3827 }
 0xc73   : > { %3407 = vrot.lane.b32.xlu0 %v3401_v25, %s4811_s19  ;;  %v3712_v25 = vmul.f32 %v6661_v0, %v6611_v61  ;;  %v3870_v0 = vmul.f32 %v6651_v52, %v6709_v53  ;;  %v3736_v52 = vmul.f32 %v6671_v33, %v6611_v61  ;;  %v3893_v33 = vmul.f32 %v6658_v60, %v6611_v61 }
 0xc74   : > { %v6832_v26 = vpop.permute.xlu2 %2847 }
 0xc75   : > { %7809 = vst [vmem:[#allocation74_spill] sm:$0xff] %v6832_v26 }
 0xc7a   : > { %3696 = vrot.lane.b32.xlu2 %v3689_v63, %s4806_s10  ;;  %3694 = vrot.lane.b32.xlu1 %v3688_v30, %s4806_s10  ;;  %v6858_v63 = vpop.permute.xlu0 %3903 }
 0xc7b   : > { %3513 = vrot.lane.b32.xlu0 %v3507_v14, %s4806_s10  ;;  %7812 = vst [vmem:[#allocation69_spill] sm:$0xff] %v6858_v63 }
 0xc7c   : > { %v6847_v59 = vpop.permute.xlu2 %2934 }
 0xc7d   : > { %7811 = vst [vmem:[#allocation68_spill] sm:$0xff] %v6847_v59 }
 0xc82   : > { %3720 = vrot.lane.b32.xlu2 %v3713_v22, %s4809_s16  ;;  %3718 = vrot.lane.b32.xlu1 %v3712_v25, %s4809_s16 }
 0xc83   : > { %3561 = vrot.lane.b32.xlu0 %v3555_v58, %s4805_s30 }
 0xc84   : > { %v6860_v30 = vpop.permute.xlu2 %2982  ;;  %v6862_v14 = vpop.permute.xlu1 %3851 }
 0xc85   : > { %7813 = vst [vmem:[#allocation70_spill] sm:$0xff] %v6860_v30 }
 0xc8a   : > { %3877 = vrot.lane.b32.xlu2 %v3870_v0, %s4806_s10  ;;  %3875 = vrot.lane.b32.xlu1 %v3869_v54, %s4806_s10  ;;  %v3666_v54 = vmul.f32 %v6637_v28, %v6709_v53  ;;  %v3894_v28 = vmul.f32 %v6658_v60, %v6709_v53  ;;  %v3761_v60 = vmul.f32 %v6715_v40, %v6709_v53  ;;  %v7823_v40 = vld [vmem:[#allocation25_spill] sm:$0xff] }
 0xc8b   : > { %2771 = vrot.lane.b32.xlu0 %v2763_v23, %s4803_s29 }
 0xc8c   : > { %v6873_v58 = vpop.permute.xlu2 %3004  ;;  %v2846_v25 = vpop.permute.xlu1 %2845 }
 0xc8d   : > { %7814 = vst [vmem:[#allocation65_spill] sm:$0xff] %v6873_v58  ;;  %v6877_v22 = vsel %vm2851_vm11, %v2846_v25, %v6832_v26  ;;  %v6879_v63 = vpop.permute.xlu0 %3770 }
 0xc8e   : > { %7815 = vst [vmem:[#allocation66_spill] sm:$0xff] %v6879_v63 }
 0xc92   : > { %3744 = vrot.lane.b32.xlu2 %v3737_v43, %s4805_s30  ;;  %3742 = vrot.lane.b32.xlu1 %v3736_v52, %s4805_s30  ;;  %v3823_v52 = vmul.f32 %v6565_v20, %v6709_v53  ;;  %v3847_v20 = vmul.f32 %v6701_v8, %v6709_v53  ;;  %v2749_v8 = vsel %vm2748_vm9, %v7823_v40, %v6668_v39  ;;  %v7826_v40 = vld [vmem:[#allocation7_spill] sm:$0xff] }
 0xc93   : > { %3674 = vrot.lane.b32.xlu0 %v3666_v54, %s4803_s29 }
 0xc94   : > { %v6890_v23 = vpop.permute.xlu2 %3052  ;;  %v2933_v0 = vpop.permute.xlu1 %2932 }
 0xc95   : > { %7816 = vst [vmem:[#allocation63_spill] sm:$0xff] %v6890_v23  ;;  %v6894_v63 = vsel %vm2748_vm9, %v2933_v0, %v6847_v59  ;;  %v6896_v24 = vpop.permute.xlu0 %3927 }
 0xc96   : > { %7817 = vst [vmem:[#allocation64_spill] sm:$0xff] %v6894_v63 }
 0xc97   : > { %7818 = vst [vmem:[#allocation61_spill] sm:$0xff] %v6896_v24 }
 0xc9a   : > { %3901 = vrot.lane.b32.xlu2 %v3894_v28, %s4809_s16  ;;  %3899 = vrot.lane.b32.xlu1 %v3893_v33, %s4809_s16 }
 0xc9b   : > { %3831 = vrot.lane.b32.xlu0 %v3823_v52, %s4800_s28 }
 0xc9c   : > { %v6907_v43 = vpop.permute.xlu2 %3139  ;;  %v6909_v54 = vpop.permute.xlu1 %2980 }
 0xc9d   : > { %7819 = vst [vmem:[#allocation62_spill] sm:$0xff] %v6907_v43  ;;  %v6911_v24 = vpop.permute.xlu0 %3951 }
 0xc9e   : > { %7820 = vst [vmem:[#allocation59_spill] sm:$0xff] %v6911_v24 }
 0xca2   : > { %3768 = vrot.lane.b32.xlu2 %v3761_v60, %s4811_s19  ;;  %3766 = vrot.lane.b32.xlu1 %v3760_v57, %s4811_s19  ;;  %v3917_v60 = vmul.f32 %v6721_v47, %v6611_v61  ;;  %v3918_v57 = vmul.f32 %v6721_v47, %v6709_v53 }
 0xca3   : > { %3855 = vrot.lane.b32.xlu0 %v3847_v20, %s4803_s29  ;;  %v7824_v20 = vld [vmem:[#allocation8_spill] sm:$0xff] }
 0xca4   : > { %v6922_v33 = vpop.permute.xlu2 %3209  ;;  %v3003_v28 = vpop.permute.xlu1 %3002  ;;  %v2729_v7 = vmul.f32 0.0, %v7824_v20 }
 0xca5   : > { %7821 = vst [vmem:[#allocation60_spill] sm:$0xff] %v6922_v33  ;;  %v6926_v52 = vsel %vm2826_vm12, %v3003_v28, %v6873_v58  ;;  %v6928_v24 = vpop.permute.xlu0 %2794 }
 0xca6   : > { %7822 = vst [vmem:[#allocation57_spill] sm:$0xff] %v6926_v52  ;;  %v2754_v43 = vadd.f32 %v2749_v8, %v2729_v7  ;;  %v2799_v58 = vsel %vm2798_vm13, %v7826_v40, %v6928_v24  ;;  %v3941_v8 = vmul.f32 %v6664_v49, %v6611_v61  ;;  %v7829_v40 = vld [vmem:[#allocation31_spill] sm:$0xff] }
 0xca7   : > { %v2917_v59 = vmul.f32 0.0, %v7829_v40 }
 0xca8   : > { %v2779_v52 = vadd.f32 %v2774_v55, %v2754_v43  ;;  %v7828_v55 = vld [vmem:[#allocation16_spill] sm:$0xff] }
 0xca9   : > { %v2936_v43 = vsel %vm2748_vm9, %v7828_v55, %v2933_v0  ;;  %v7832_v55 = vld [vmem:[#allocation36_spill] sm:$0xff] }
 0xcaa   : > { %3925 = vrot.lane.b32.xlu2 %v3918_v57, %s4805_s30  ;;  %3923 = vrot.lane.b32.xlu1 %v3917_v60, %s4805_s30  ;;  %v2804_v7 = vadd.f32 %v2799_v58, %v2779_v52  ;;  %v3942_v60 = vmul.f32 %v6664_v49, %v6709_v53 }
 0xcac   : > { %v6946_v30 = vpop.permute.xlu2 %3296  ;;  %v3051_v47 = vpop.permute.xlu1 %3050 }
 0xcad   : > { %v6950_v63 = vsel %vm2876_vm14, %v3051_v47, %v6890_v23  ;;  %v6952_v27 = vpop.permute.xlu0 %2820 }
 0xcae   : > { %7827 = vst [vmem:[#allocation58_spill] sm:$0xff] %v6950_v63  ;;  %v2832_v57 = vadd.f32 %v6952_v27, %v2804_v7  ;;  %v2941_v63 = vadd.f32 %v2936_v43, %v2917_v59  ;;  %v7831_v7 = vld [vmem:[#allocation39_spill] sm:$0xff]  ;;  %v2738_v59 = vmul.f32 %v7784_v34, %v6709_v53  ;;  %v7835_v34 = vld [vmem:[#allocation12_spill] sm:$0xff] }
 0xcaf   : > { %v2960_v0 = vsel %vm2773_vm10, %v7831_v7, %v6678_v56 }
 0xcb0   : > { %v2857_v58 = vadd.f32 %v2846_v25, %v2832_v57 }
 0xcb2   : > { %3949 = vrot.lane.b32.xlu2 %v3942_v60, %s4811_s19  ;;  %3947 = vrot.lane.b32.xlu1 %v3941_v8, %s4811_s19  ;;  %v2984_v60 = vsel %vm2798_vm13, %v7832_v55, %v6909_v54  ;;  %v2965_v8 = vadd.f32 %v2960_v0, %v2941_v63  ;;  %v3098_v63 = vmul.f32 0.0, %v7835_v34 }
 0xcb4   : > { %v6964_v23 = vpop.permute.xlu1 %3137  ;;  %v6968_v26 = vpop.permute.xlu2 %3385  ;;  %v2989_v25 = vadd.f32 %v2984_v60, %v2965_v8 }
 0xcb5   : > { %v6966_v52 = vpop.permute.xlu0 %2870  ;;  %7830 = vst [vmem:[#allocation55_spill] sm:$0xff] %v6968_v26 }
 0xcb6   : > { %v2882_v49 = vadd.f32 %v6966_v52, %v2857_v58  ;;  %v3013_v57 = vadd.f32 %v3003_v28, %v2989_v25  ;;  %v7833_v58 = vld [vmem:[#allocation44_spill] sm:$0xff]  ;;  %v2788_v28 = vmul.f32 %v7798_v4, %v6709_v53 }
 0xcb7   : > { %v3117_v7 = vsel %vm2748_vm9, %v7833_v58, %v6681_v44 }
 0xcb8   : > { %2900 = vrot.lane.b32.xlu0 %v2882_v49, %s4852_s27  ;;  %v7836_v49 = vld [vmem:[#allocation38_spill] sm:$0xff] }
 0xcb9   : > { %v3141_v60 = vsel %vm2773_vm10, %v7836_v49, %v6964_v23 }
 0xcba   : > { %2746 = vrot.lane.b32.xlu1 %v2738_v59, %s4800_s28  ;;  %v3122_v59 = vadd.f32 %v3117_v7, %v3098_v63 }
 0xcbc   : > { %v3208_v43 = vpop.permute.xlu1 %3207  ;;  %v6997_v8 = vpop.permute.xlu2 %3469  ;;  %v3146_v58 = vadd.f32 %v3141_v60, %v3122_v59 }
 0xcbd   : > { %v6986_v56 = vsel %vm2851_vm11, %v3208_v43, %v6922_v33  ;;  %v6988_v55 = vpop.permute.xlu0 %3026  ;;  %7837 = vst [vmem:[#allocation35_spill] sm:$0xff] %v6997_v8 }
 0xcbe   : > { %7834 = vst [vmem:[#allocation56_spill] sm:$0xff] %v6986_v56  ;;  %v3037_v0 = vadd.f32 %v6988_v55, %v3013_v57  ;;  %v7838_v57 = vld [vmem:[#allocation45_spill] sm:$0xff] }
 0xcbf   : > { %v3165_v56 = vsel %vm2798_vm13, %v7838_v57, %v6683_v36 }
 0xcc0   : > { %v3061_v25 = vadd.f32 %v3051_v47, %v3037_v0  ;;  %v3170_v7 = vadd.f32 %v3165_v56, %v3146_v58  ;;  %v2815_v47 = vmul.f32 %v7800_v1, %v6709_v53  ;;  %v2865_v56 = vmul.f32 %v7802_v16, %v6709_v53 }
 0xcc1   : > { %v2950_v16 = vmul.f32 %v7786_v12, %v6709_v53  ;;  %v3021_v12 = vmul.f32 %v7803_v41, %v6709_v53  ;;  %v3107_v41 = vmul.f32 %v7787_v62, %v6709_v53  ;;  %v3155_v62 = vmul.f32 %v7789_v9, %v6709_v53 }
 0xcc2   : > { %2796 = vrot.lane.b32.xlu1 %v2788_v28, %s4806_s10  ;;  %3079 = vrot.lane.b32.xlu2 %v3061_v25, %s4853_s13 }
 0xcc4   : > { %v3295_v33 = vpop.permute.xlu1 %3294  ;;  %v7013_v0 = vpop.permute.xlu2 %3539 }
 0xcc5   : > { %v7006_v49 = vsel %vm2748_vm9, %v3295_v33, %v6946_v30  ;;  %v7008_v4 = vpop.permute.xlu0 %3183 }
 0xcc6   : > { %v3194_v63 = vadd.f32 %v7008_v4, %v3170_v7 }
 0xcc8   : > { %v3218_v28 = vadd.f32 %v3208_v43, %v3194_v63  ;;  %v3298_v43 = vsel %vm2748_vm9, %v6571_v38, %v3295_v33  ;;  %v3279_v63 = vmul.f32 0.0, %v6457_v45 }
 0xcca   : > { %2822 = vrot.lane.b32.xlu1 %v2815_v47, %s4809_s16 }
 0xccc   : > { %v3384_v60 = vpop.permute.xlu1 %3383  ;;  %v7027_v1 = vpop.permute.xlu2 %3587 }
 0xccd   : > { %v7018_v59 = vsel %vm2851_vm11, %v3384_v60, %v6968_v26  ;;  %v7020_v25 = vpop.permute.xlu0 %3231 }
 0xcce   : > { %v3242_v57 = vadd.f32 %v7020_v25, %v3218_v28  ;;  %v3303_v28 = vadd.f32 %v3298_v43, %v3279_v63 }
 0xcd0   : > { %3260 = vrot.lane.b32.xlu0 %v3242_v57, %s4854_s14  ;;  %v3322_v57 = vsel %vm2773_vm10, %v6549_v6, %v6685_v17 }
 0xcd2   : > { %2872 = vrot.lane.b32.xlu1 %v2865_v56, %s4811_s19  ;;  %v3327_v56 = vadd.f32 %v3322_v57, %v3303_v28 }
 0xcd4   : > { %v3468_v58 = vpop.permute.xlu1 %3467 }
 0xcd5   : > { %v7033_v7 = vsel %vm2748_vm9, %v3468_v58, %v6997_v8  ;;  %v7035_v47 = vpop.permute.xlu0 %3338 }
 0xcd6   : > { %7839 = vst [vmem:[#allocation18_spill] sm:$0xff] %v7033_v7  ;;  %v7050_v7 = vpop.permute.xlu2 %3696  ;;  %v3346_v26 = vadd.f32 %v7035_v47, %v3327_v56  ;;  %v3471_v56 = vsel %vm2748_vm9, %v6591_v21, %v3468_v58 }
 0xcd7   : > { %7840 = vst [vmem:[#allocation9_spill] sm:$0xff] %v7050_v7  ;;  %v3452_v7 = vmul.f32 0.0, %v6496_v37 }
 0xcda   : > { %2958 = vrot.lane.b32.xlu1 %v2950_v16, %s4803_s29 }
 0xcdc   : > { %v3538_v38 = vpop.permute.xlu1 %3537 }
 0xcdd   : > { %v7046_v33 = vsel %vm2826_vm12, %v3538_v38, %v7013_v0  ;;  %v7048_v8 = vpop.permute.xlu0 %3359 }
 0xcde   : > { %v3370_v43 = vadd.f32 %v7048_v8, %v3346_v26  ;;  %v7069_v26 = vpop.permute.xlu2 %3720 }
 0xcdf   : > { %7842 = vst [vmem:[#allocation11_spill] sm:$0xff] %v7069_v26 }
 0xce0   : > { %v3394_v63 = vadd.f32 %v3384_v60, %v3370_v43  ;;  %v3476_v60 = vadd.f32 %v3471_v56, %v3452_v7  ;;  %v3495_v43 = vsel %vm2773_vm10, %v6556_v46, %v6687_v10  ;;  %v3814_v46 = vmul.f32 0.0, %v6830_v50 }
 0xce2   : > { %3028 = vrot.lane.b32.xlu1 %v3021_v12, %s4805_s30 }
 0xce4   : > { %v3586_v6 = vpop.permute.xlu1 %3585 }
 0xce5   : > { %v7059_v16 = vsel %vm2876_vm14, %v3586_v6, %v7027_v1  ;;  %v7061_v28 = vpop.permute.xlu0 %3407 }
 0xce6   : > { %7841 = vst [vmem:[#allocation13_spill] sm:$0xff] %v7061_v28  ;;  %v3418_v57 = vadd.f32 %v7061_v28, %v3394_v63  ;;  %v3500_v63 = vadd.f32 %v3495_v43, %v3476_v60  ;;  %v7085_v7 = vpop.permute.xlu2 %3877  ;;  %v3833_v60 = vsel %vm2748_vm9, %v6845_v35, %v6804_v5  ;;  %v3178_v43 = vmul.f32 %v7804_v48, %v6709_v53 }
 0xce7   : > { %v3226_v48 = vmul.f32 %v6534_v31, %v6709_v53  ;;  %v3335_v31 = vmul.f32 %v6573_v15, %v6709_v53 }
 0xce8   : > { %3434 = vrot.lane.b32.xlu0 %v3418_v57, %s4805_s30 }
 0xcea   : > { %3115 = vrot.lane.b32.xlu1 %v3107_v41, %s4800_s28 }
 0xcec   : > { %v7073_v12 = vpop.permute.xlu1 %3694 }
 0xced   : > { %v3705_v21 = vadd.f32 %v7073_v12, %v6699_v2  ;;  %v7080_v58 = vpop.permute.xlu0 %3513 }
 0xcee   : > { %v3524_v57 = vadd.f32 %v7080_v58, %v3500_v63  ;;  %v3857_v63 = vsel %vm2773_vm10, %v6862_v14, %v6817_v32 }
 0xcf0   : > { %v3548_v41 = vadd.f32 %v3538_v38, %v3524_v57  ;;  %v7105_v57 = vpop.permute.xlu2 %3744 }
 0xcf2   : > { %3163 = vrot.lane.b32.xlu1 %v3155_v62, %s4806_s10  ;;  %v3838_v62 = vadd.f32 %v3833_v60, %v3814_v46  ;;  %v3312_v60 = vmul.f32 %v6470_v51, %v6709_v53  ;;  %v3815_v51 = vmul.f32 %v6830_v50, %v6611_v61 }
 0xcf4   : > { %v7088_v56 = vpop.permute.xlu1 %3718 }
 0xcf5   : > { %7843 = vst [vmem:[#allocation29_spill] sm:$0xff] %v7088_v56  ;;  %v3729_v28 = vadd.f32 %v7088_v56, %v3705_v21  ;;  %v7092_v2 = vpop.permute.xlu0 %3561  ;;  %v3862_v21 = vadd.f32 %v3857_v63, %v3838_v62 }
 0xcf6   : > { %v3572_v9 = vadd.f32 %v7092_v2, %v3548_v41 }
 0xcf8   : > { %v3596_v38 = vadd.f32 %v3586_v6, %v3572_v9  ;;  %v7117_v46 = vpop.permute.xlu2 %3901 }
 0xcfa   : > { %3185 = vrot.lane.b32.xlu1 %v3178_v43, %s4809_s16  ;;  %3614 = vrot.lane.b32.xlu2 %v3596_v38, %s4855_s17 }
 0xcfc   : > { %v3876_v35 = vpop.permute.xlu1 %3875 }
 0xcfd   : > { %v3886_v56 = vadd.f32 %v3876_v35, %v3862_v21  ;;  %v2772_v41 = vpop.permute.xlu0 %2771 }
 0xd00   : > { %v7126_v38 = vpop.permute.xlu2 %3768 }
 0xd02   : > { %3233 = vrot.lane.b32.xlu1 %v3226_v48, %s4811_s19 }
 0xd04   : > { %v7110_v26 = vpop.permute.xlu1 %3742 }
 0xd05   : > { %v7113_v14 = vadd.f32 %v7110_v26, %v3729_v28  ;;  %v7115_v6 = vpop.permute.xlu0 %3674 }
 0xd0a   : > { %3320 = vrot.lane.b32.xlu1 %v3312_v60, %s4803_s29  ;;  %v3354_v60 = vmul.f32 %v6575_v11, %v6709_v53  ;;  %v3402_v11 = vmul.f32 %v6582_v18, %v6709_v53  ;;  %v2730_v18 = vmul.f32 %v7824_v20, %v6611_v61 }
 0xd0c   : > { %v3900_v9 = vpop.permute.xlu1 %3899 }
 0xd0d   : > { %v3910_v43 = vadd.f32 %v3900_v9, %v3886_v56  ;;  %v7122_v63 = vpop.permute.xlu0 %3831  ;;  %v3905_v50 = vsel %vm2826_vm12, %v3900_v9, %v7117_v46 }
 0xd0e   : > { %7844 = vst [vmem:[#allocation26_spill] sm:$0xff] %v7122_v63  ;;  %v3834_v28 = vsel %vm2748_vm9, %v6804_v5, %v7122_v63  ;;  %v3881_v5 = vsel %vm2798_vm13, %v3876_v35, %v7085_v7  ;;  %v7145_v63 = vpop.permute.xlu2 %3925 }
 0xd0f   : > { %v3839_v21 = vadd.f32 %v3834_v28, %v3815_v51 }
 0xd12   : > { %3340 = vrot.lane.b32.xlu1 %v3335_v31, %s4806_s10 }
 0xd14   : > { %v7134_v62 = vpop.permute.xlu1 %3766 }
 0xd15   : > { %v7136_v56 = vpop.permute.xlu0 %3855 }
 0xd16   : > { %v3858_v15 = vsel %vm2773_vm10, %v6817_v32, %v7136_v56  ;;  %v7155_v35 = vpop.permute.xlu2 %3949 }
 0xd17   : > { %v3863_v48 = vadd.f32 %v3858_v15, %v3839_v21 }
 0xd19   : > { %v3887_v31 = vadd.f32 %v3881_v5, %v3863_v48 }
 0xd1a   : > { %3361 = vrot.lane.b32.xlu1 %v3354_v60, %s4809_s16  ;;  %v3485_v60 = vmul.f32 %v6505_v29, %v6709_v53 }
 0xd1b   : > { %v3911_v28 = vadd.f32 %v3905_v50, %v3887_v31 }
 0xd1c   : > { %v3924_v51 = vpop.permute.xlu1 %3923 }
 0xd1d   : > { %v3929_v32 = vsel %vm2851_vm11, %v3924_v51, %v7145_v63  ;;  %v3934_v21 = vadd.f32 %v3924_v51, %v3910_v43  ;;  %v2775_v51 = vsel %vm2773_vm10, %v6674_v19, %v2772_v41 }
 0xd1e   : > { %v3935_v15 = vadd.f32 %v3929_v32, %v3911_v28  ;;  %v3508_v32 = vmul.f32 %v6593_v13, %v6709_v53 }
 0xd22   : > { %3409 = vrot.lane.b32.xlu1 %v3402_v11, %s4811_s19  ;;  %v2731_v11 = vmul.f32 %v7824_v20, %v6709_v53  ;;  %v3642_v20 = vmul.f32 %v6525_v42, %v6709_v53 }
 0xd24   : > { %v3948_v48 = vpop.permute.xlu1 %3947 }
 0xd25   : > { %v3953_v9 = vsel %vm2876_vm14, %v3948_v48, %v7155_v35  ;;  %v7159_v5 = vadd.f32 %v3948_v48, %v3934_v21 }
 0xd26   : > { %v7161_v50 = vadd.f32 %v3953_v9, %v3935_v15 }
 0xd2a   : > { %3493 = vrot.lane.b32.xlu1 %v3485_v60, %s4803_s29  ;;  %s4857_s29 = smov 45  }
 0xd2c   : > { %v2747_v43 = vpop.permute.xlu1 %2746 }
 0xd2d   : > { %v2750_v31 = vsel %vm2748_vm9, %v6668_v39, %v2747_v43  ;;  %v3556_v39 = vmul.f32 %v6600_v3, %v6709_v53  ;;  %v2756_v9 = vadd.f32 %v2747_v43, %v2731_v11  ;;  %v7846_v3 = vld [vmem:[#allocation5_spill] sm:$0xff]  ;;  %v7847_v43 = vld [vmem:[#allocation74_spill] sm:$0xff]  ;;  %v7848_v11 = vld [vmem:[#allocation23_spill] sm:$0xff] }
 0xd2e   : > { %v2755_v28 = vadd.f32 %v2750_v31, %v2730_v18  ;;  %v7845_v18 = vld [vmem:[#allocation4_spill] sm:$0xff] }
 0xd2f   : > { %v2781_v19 = vadd.f32 %v2772_v41, %v2756_v9  ;;  %v2853_v41 = vsel %vm2851_vm11, %v7847_v43, %v7846_v3  ;;  %v2918_v9 = vmul.f32 %v7829_v40, %v6611_v61  ;;  %v7853_v3 = vld [vmem:[#allocation57_spill] sm:$0xff] }
 0xd30   : > { %v2780_v21 = vadd.f32 %v2775_v51, %v2755_v28 }
 0xd32   : > { %3515 = vrot.lane.b32.xlu1 %v3508_v32, %s4806_s10 }
 0xd34   : > { %v2797_v29 = vpop.permute.xlu1 %2796 }
 0xd35   : > { %v2800_v15 = vsel %vm2798_vm13, %v6928_v24, %v2797_v29  ;;  %v2806_v28 = vadd.f32 %v2797_v29, %v2781_v19 }
 0xd36   : > { %v2805_v48 = vadd.f32 %v2800_v15, %v2780_v21 }
 0xd3a   : > { %3563 = vrot.lane.b32.xlu1 %v3556_v39, %s4805_s30  ;;  %v2919_v39 = vmul.f32 %v7829_v40, %v6709_v53 }
 0xd3c   : > { %v2823_v60 = vpop.permute.xlu1 %2822 }
 0xd3d   : > { %v2827_v13 = vsel %vm2826_vm12, %v6952_v27, %v2823_v60  ;;  %v2828_v31 = vsel %vm2826_vm12, %v2823_v60, %v7845_v18  ;;  %v7850_v60 = vld [vmem:[#allocation64_spill] sm:$0xff] }
 0xd3e   : > { %v2833_v24 = vadd.f32 %v2827_v13, %v2805_v48  ;;  %v2834_v51 = vadd.f32 %v2828_v31, %v2806_v28  ;;  %v2942_v13 = vadd.f32 %v7850_v60, %v2918_v9  ;;  %v7851_v31 = vld [vmem:[#allocation52_spill] sm:$0xff]  ;;  %v7859_v60 = vld [vmem:[#allocation58_spill] sm:$0xff] }
 0xd40   : > { %v2858_v32 = vadd.f32 %v6877_v22, %v2833_v24  ;;  %v2859_v21 = vadd.f32 %v2853_v41, %v2834_v51  ;;  %v3777_v22 = vadd.f32 %v7134_v62, %v7113_v14  ;;  %v7854_v41 = vld [vmem:[#allocation40_spill] sm:$0xff] }
 0xd42   : > { %3650 = vrot.lane.b32.xlu1 %v3642_v20, %s4800_s28  ;;  %s4856_s28 = smov 46   ;;  %v7852_v20 = vld [vmem:[#allocation70_spill] sm:$0xff] }
 0xd43   : > { %v2985_v51 = vsel %vm2798_vm13, %v6909_v54, %v7852_v20  ;;  %v7857_v54 = vld [vmem:[#allocation41_spill] sm:$0xff] }
 0xd44   : > { %v2873_v15 = vpop.permute.xlu1 %2872 }
 0xd45   : > { %v2877_v27 = vsel %vm2876_vm14, %v6966_v52, %v2873_v15  ;;  %v2878_v29 = vsel %vm2876_vm14, %v2873_v15, %v7848_v11  ;;  %v7849_v52 = vld [vmem:[#allocation68_spill] sm:$0xff] }
 0xd46   : > { %v7197_v48 = vadd.f32 %v2877_v27, %v2858_v32  ;;  %v2884_v42 = vadd.f32 %v2878_v29, %v2859_v21  ;;  %v2943_v19 = vadd.f32 %v7849_v52, %v2919_v39  ;;  %v7855_v21 = vld [vmem:[#allocation65_spill] sm:$0xff]  ;;  %v7858_v52 = vld [vmem:[#allocation63_spill] sm:$0xff] }
 0xd47   : > { %v3009_v15 = vsel %vm2826_vm12, %v7855_v21, %v7854_v41 }
 0xd48   : > { %2904 = vrot.lane.b32.xlu2 %v2884_v42, %s4852_s27  ;;  %v7856_v42 = vld [vmem:[#allocation24_spill] sm:$0xff] }
 0xd4a   : > { %3795 = vrot.lane.b32.xlu1 %v3777_v22, %s4856_s28 }
 0xd4c   : > { %v2959_v18 = vpop.permute.xlu1 %2958 }
 0xd4d   : > { %v2961_v28 = vsel %vm2773_vm10, %v7851_v31, %v2959_v18  ;;  %v2967_v14 = vadd.f32 %v2959_v18, %v2943_v19  ;;  %v3057_v19 = vsel %vm2876_vm14, %v7858_v52, %v7857_v54  ;;  %v3099_v31 = vmul.f32 %v7835_v34, %v6611_v61 }
 0xd4e   : > { %v2966_v24 = vadd.f32 %v2961_v28, %v2942_v13 }
 0xd4f   : > { %v2991_v40 = vadd.f32 %v7852_v20, %v2967_v14 }
 0xd50   : > { %v2990_v32 = vadd.f32 %v2985_v51, %v2966_v24  ;;  %v7860_v24 = vld [vmem:[#allocation62_spill] sm:$0xff] }
 0xd51   : > { %v3015_v27 = vadd.f32 %v3009_v15, %v2991_v40  ;;  %v3142_v20 = vsel %vm2773_vm10, %v6964_v23, %v7860_v24 }
 0xd52   : > { %v3014_v43 = vadd.f32 %v7853_v3, %v2990_v32  ;;  %v3100_v3 = vmul.f32 %v7835_v34, %v6709_v53 }
 0xd54   : > { %v3029_v11 = vpop.permute.xlu1 %3028 }
 0xd55   : > { %v3032_v29 = vsel %vm2851_vm11, %v6988_v55, %v3029_v11  ;;  %v3033_v22 = vsel %vm2851_vm11, %v3029_v11, %v7856_v42 }
 0xd56   : > { %v3038_v39 = vadd.f32 %v3032_v29, %v3014_v43  ;;  %v3039_v9 = vadd.f32 %v3033_v22, %v3015_v27  ;;  %v7861_v27 = vld [vmem:[#allocation28_spill] sm:$0xff] }
 0xd57   : > { %v7862_v22 = vld [vmem:[#allocation56_spill] sm:$0xff] }
 0xd58   : > { %v7227_v13 = vadd.f32 %v7859_v60, %v3038_v39  ;;  %v3063_v18 = vadd.f32 %v3057_v19, %v3039_v9  ;;  %v7864_v9 = vld [vmem:[#allocation60_spill] sm:$0xff]  ;;  %v7865_v60 = vld [vmem:[#allocation54_spill] sm:$0xff] }
 0xd5a   : > { %3083 = vrot.lane.b32.xlu1 %v3063_v18, %s4853_s13 }
 0xd5c   : > { %v3116_v28 = vpop.permute.xlu1 %3115 }
 0xd5d   : > { %v3118_v55 = vsel %vm2748_vm9, %v6681_v44, %v3116_v28  ;;  %v3124_v41 = vadd.f32 %v3116_v28, %v3100_v3  ;;  %v3280_v28 = vmul.f32 %v6457_v45, %v6611_v61 }
 0xd5e   : > { %v3123_v14 = vadd.f32 %v3118_v55, %v3099_v31 }
 0xd5f   : > { %v3148_v21 = vadd.f32 %v7860_v24, %v3124_v41  ;;  %v3304_v55 = vadd.f32 %v7006_v49, %v3280_v28  ;;  %v7872_v28 = vld [vmem:[#allocation47_spill] sm:$0xff] }
 0xd60   : > { %v3147_v51 = vadd.f32 %v3142_v20, %v3123_v14 }
 0xd64   : > { %v3164_v32 = vpop.permute.xlu1 %3163 }
 0xd65   : > { %v3166_v40 = vsel %vm2798_vm13, %v6683_v36, %v3164_v32  ;;  %v3172_v23 = vadd.f32 %v3164_v32, %v3148_v21  ;;  %v7863_v36 = vld [vmem:[#allocation46_spill] sm:$0xff] }
 0xd66   : > { %v3171_v43 = vadd.f32 %v3166_v40, %v3147_v51  ;;  %v3214_v34 = vsel %vm2851_vm11, %v7864_v9, %v7863_v36  ;;  %v7866_v21 = vld [vmem:[#allocation42_spill] sm:$0xff]  ;;  %v3453_v36 = vmul.f32 %v6496_v37, %v6611_v61  ;;  %v3454_v9 = vmul.f32 %v6496_v37, %v6709_v53 }
 0xd6c   : > { %v3186_v15 = vpop.permute.xlu1 %3185 }
 0xd6d   : > { %v3189_v44 = vsel %vm2826_vm12, %v7008_v4, %v3186_v15  ;;  %v3190_v11 = vsel %vm2826_vm12, %v3186_v15, %v7861_v27 }
 0xd6e   : > { %v3195_v29 = vadd.f32 %v3189_v44, %v3171_v43  ;;  %v3196_v42 = vadd.f32 %v3190_v11, %v3172_v23  ;;  %v7868_v23 = vld [vmem:[#allocation55_spill] sm:$0xff] }
 0xd70   : > { %v3219_v39 = vadd.f32 %v7862_v22, %v3195_v29  ;;  %v3220_v54 = vadd.f32 %v3214_v34, %v3196_v42  ;;  %v7869_v42 = vld [vmem:[#allocation43_spill] sm:$0xff]  ;;  %v7870_v34 = vld [vmem:[#allocation18_spill] sm:$0xff] }
 0xd74   : > { %v3234_v52 = vpop.permute.xlu1 %3233 }
 0xd75   : > { %v3237_v19 = vsel %vm2876_vm14, %v7020_v25, %v3234_v52  ;;  %v3238_v4 = vsel %vm2876_vm14, %v3234_v52, %v7865_v60  ;;  %v3281_v25 = vmul.f32 %v6457_v45, %v6709_v53  ;;  %v7867_v45 = vld [vmem:[#allocation49_spill] sm:$0xff]  ;;  %v7871_v52 = vld [vmem:[#allocation35_spill] sm:$0xff] }
 0xd76   : > { %v7254_v18 = vadd.f32 %v3237_v19, %v3219_v39  ;;  %v3244_v31 = vadd.f32 %v3238_v4, %v3220_v54  ;;  %v3477_v54 = vadd.f32 %v7870_v34, %v3453_v36  ;;  %v3478_v19 = vadd.f32 %v7871_v52, %v3454_v9  ;;  %v7882_v9 = vld [vmem:[#allocation11_spill] sm:$0xff] }
 0xd77   : > { %v3305_v40 = vadd.f32 %v6946_v30, %v3281_v25 }
 0xd78   : > { %3264 = vrot.lane.b32.xlu2 %v3244_v31, %s4854_s14 }
 0xd7c   : > { %v3321_v14 = vpop.permute.xlu1 %3320 }
 0xd7d   : > { %v3323_v24 = vsel %vm2773_vm10, %v6685_v17, %v3321_v14  ;;  %v3329_v3 = vadd.f32 %v3321_v14, %v3305_v40 }
 0xd7e   : > { %v3328_v20 = vadd.f32 %v3323_v24, %v3304_v55 }
 0xd84   : > { %v3341_v51 = vpop.permute.xlu1 %3340 }
 0xd85   : > { %v3342_v32 = vsel %vm2798_vm13, %v7035_v47, %v3341_v51  ;;  %v3348_v17 = vadd.f32 %v3341_v51, %v3329_v3  ;;  %v3390_v47 = vsel %vm2851_vm11, %v7868_v23, %v7867_v45  ;;  %v7873_v51 = vld [vmem:[#allocation50_spill] sm:$0xff]  ;;  %v7874_v3 = vld [vmem:[#allocation48_spill] sm:$0xff] }
 0xd86   : > { %v3347_v43 = vadd.f32 %v3342_v32, %v3328_v20  ;;  %v3544_v37 = vsel %vm2826_vm12, %v7013_v0, %v7873_v51  ;;  %v7876_v0 = vld [vmem:[#allocation51_spill] sm:$0xff]  ;;  %v7887_v51 = vld [vmem:[#allocation26_spill] sm:$0xff] }
 0xd8c   : > { %v3362_v41 = vpop.permute.xlu1 %3361 }
 0xd8d   : > { %v3365_v49 = vsel %vm2826_vm12, %v7048_v8, %v3362_v41  ;;  %v3366_v15 = vsel %vm2826_vm12, %v3362_v41, %v7866_v21 }
 0xd8e   : > { %v3371_v44 = vadd.f32 %v3365_v49, %v3347_v43  ;;  %v3372_v27 = vadd.f32 %v3366_v15, %v3348_v17  ;;  %v7875_v49 = vld [vmem:[#allocation53_spill] sm:$0xff]  ;;  %v3635_v17 = vmul.f32 %v7876_v0, %v6709_v53 }
 0xd8f   : > { %v3592_v21 = vsel %vm2876_vm14, %v7027_v1, %v7875_v49 }
 0xd90   : > { %v7272_v11 = vadd.f32 %v7018_v59, %v3371_v44  ;;  %v3396_v30 = vadd.f32 %v3390_v47, %v3372_v27  ;;  %v7877_v27 = vld [vmem:[#allocation30_spill] sm:$0xff] }
 0xd94   : > { %v3410_v29 = vpop.permute.xlu1 %3409 }
 0xd95   : > { %v3414_v22 = vsel %vm2876_vm14, %v3410_v29, %v7869_v42  ;;  %v7879_v42 = vld [vmem:[#allocation75_spill] sm:$0xff] }
 0xd96   : > { %v3420_v39 = vadd.f32 %v3414_v22, %v3396_v30  ;;  %v7878_v30 = vld [vmem:[#allocation27_spill] sm:$0xff]  ;;  %v7880_v22 = vld [vmem:[#allocation9_spill] sm:$0xff] }
 0xd97   : > { %v3677_v1 = vsel %vm2773_vm10, %v7878_v30, %v7115_v6 }
 0xd98   : > { %3438 = vrot.lane.b32.xlu2 %v3420_v39, %s4805_s30  ;;  %v3701_v39 = vsel %vm2798_vm13, %v7880_v22, %v7879_v42 }
 0xd9c   : > { %v3494_v8 = vpop.permute.xlu1 %3493 }
 0xd9d   : > { %v3496_v59 = vsel %vm2773_vm10, %v6687_v10, %v3494_v8  ;;  %v3502_v14 = vadd.f32 %v3494_v8, %v3478_v19 }
 0xd9e   : > { %v3501_v60 = vadd.f32 %v3496_v59, %v3477_v54  ;;  %v7881_v59 = vld [vmem:[#allocation71_spill] sm:$0xff] }
 0xd9f   : > { %v3725_v34 = vsel %vm2826_vm12, %v7882_v9, %v7881_v59 }
 0xda4   : > { %v3516_v4 = vpop.permute.xlu1 %3515 }
 0xda5   : > { %v3519_v31 = vsel %vm2798_vm13, %v7080_v58, %v3516_v4  ;;  %v3520_v55 = vsel %vm2798_vm13, %v3516_v4, %v7872_v28 }
 0xda6   : > { %v3525_v24 = vadd.f32 %v3519_v31, %v3501_v60  ;;  %v3526_v20 = vadd.f32 %v3520_v55, %v3502_v14  ;;  %v7884_v60 = vld [vmem:[#allocation67_spill] sm:$0xff]  ;;  %v7885_v55 = vld [vmem:[#allocation66_spill] sm:$0xff] }
 0xda7   : > { %v3749_v4 = vsel %vm2851_vm11, %v7105_v57, %v7884_v60  ;;  %v3773_v14 = vsel %vm2876_vm14, %v7126_v38, %v7885_v55 }
 0xda8   : > { %v3549_v10 = vadd.f32 %v7046_v33, %v3525_v24  ;;  %v3550_v25 = vadd.f32 %v3544_v37, %v3526_v20  ;;  %v3772_v24 = vsel %vm2876_vm14, %v7134_v62, %v7126_v38  ;;  %v7889_v62 = vld [vmem:[#allocation72_spill] sm:$0xff] }
 0xdac   : > { %v3564_v32 = vpop.permute.xlu1 %3563 }
 0xdad   : > { %v3567_v40 = vsel %vm2851_vm11, %v7092_v2, %v3564_v32  ;;  %v3568_v58 = vsel %vm2851_vm11, %v3564_v32, %v7874_v3  ;;  %v3634_v2 = vmul.f32 %v7876_v0, %v6611_v61  ;;  %v3700_v61 = vsel %vm2798_vm13, %v7073_v12, %v7880_v22  ;;  %v7890_v3 = vld [vmem:[#allocation69_spill] sm:$0xff] }
 0xdae   : > { %v3573_v43 = vadd.f32 %v3567_v40, %v3549_v10  ;;  %v3574_v41 = vadd.f32 %v3568_v58, %v3550_v25  ;;  %v3748_v12 = vsel %vm2851_vm11, %v7110_v26, %v7105_v57  ;;  %v7886_v26 = vld [vmem:[#allocation73_spill] sm:$0xff]  ;;  %v7892_v58 = vld [vmem:[#allocation59_spill] sm:$0xff] }
 0xdaf   : > { %v3816_v57 = vmul.f32 %v7886_v26, %v6709_v53  ;;  %v7888_v25 = vld [vmem:[#allocation13_spill] sm:$0xff] }
 0xdb0   : > { %v3597_v33 = vadd.f32 %v7059_v16, %v3573_v43  ;;  %v3598_v15 = vadd.f32 %v3592_v21, %v3574_v41  ;;  %v3413_v32 = vsel %vm2876_vm14, %v7888_v25, %v3410_v29  ;;  %v3906_v29 = vsel %vm2826_vm12, %v7117_v46, %v7890_v3  ;;  %v3080_v41 = vpop.permute.xlu2 %3079  ;;  %v2901_v46 = vpop.permute.xlu0 %2900 }
 0xdb1   : > { %v3840_v37 = vadd.f32 %v7887_v51, %v3816_v57  ;;  %v3419_v38 = vadd.f32 %v3413_v32, %v7272_v11  ;;  %v7891_v11 = vld [vmem:[#allocation61_spill] sm:$0xff]  ;;  %v3954_v43 = vsel %vm2876_vm14, %v7155_v35, %v7892_v58  ;;  %vm3982_vm14 = vcmask 367616  }
 0xdb2   : > { %3618 = vrot.lane.b32.xlu1 %v3598_v15, %s4855_s17 }
 0xdb3   : > { %v3864_v40 = vadd.f32 %v7136_v56, %v3840_v37 }
 0xdb4   : > { %v3651_v44 = vpop.permute.xlu1 %3650 }
 0xdb5   : > { %v3653_v45 = vsel %vm2748_vm9, %v7877_v27, %v3651_v44  ;;  %v3659_v23 = vadd.f32 %v3651_v44, %v3635_v17  ;;  %vm3620_vm9 = vcmask 384000  }
 0xdb6   : > { %v3658_v47 = vadd.f32 %v3653_v45, %v3634_v2 }
 0xdb7   : > { %v3683_v16 = vadd.f32 %v7115_v6, %v3659_v23  ;;  %v7883_v6 = vld [vmem:[#allocation29_spill] sm:$0xff] }
 0xdb8   : > { %v3682_v8 = vadd.f32 %v3677_v1, %v3658_v47  ;;  %v3724_v52 = vsel %vm2826_vm12, %v7883_v6, %v7882_v9  ;;  %v7372_v21 = vpop.permute.xlu2 %3614  ;;  %v3261_v15 = vpop.permute.xlu0 %3260 }
 0xdb9   : > { %v3707_v36 = vadd.f32 %v3701_v39, %v3683_v16 }
 0xdba   : > { %v3706_v54 = vadd.f32 %v3700_v61, %v3682_v8  ;;  %2902 = vrot.lane.b32.xlu1 %v7197_v48, %s4852_s27 }
 0xdbb   : > { %v3731_v19 = vadd.f32 %v3725_v34, %v3707_v36 }
 0xdbc   : > { %v3730_v31 = vadd.f32 %v3724_v52, %v3706_v54  ;;  %v7370_v49 = vpop.permute.xlu1 %3795 }
 0xdbd   : > { %v3755_v28 = vadd.f32 %v3749_v4, %v3731_v19 }
 0xdbe   : > { %v3754_v48 = vadd.f32 %v3748_v12, %v3730_v31 }
 0xdbf   : > { %v3779_v20 = vadd.f32 %v3773_v14, %v3755_v28 }
 0xdc0   : > { %v3778_v10 = vadd.f32 %v3772_v24, %v3754_v48  ;;  %v2905_v0 = vpop.permute.xlu2 %2904 }
 0xdc1   : > { %3799 = vrot.lane.b32.xlu0 %v3779_v20, %s4856_s28 }
 0xdc2   : > { %3262 = vrot.lane.b32.xlu1 %v7254_v18, %s4854_s14  ;;  %3797 = vrot.lane.b32.xlu2 %v3778_v10, %s4856_s28  ;;  %v3882_v18 = vsel %vm2798_vm13, %v7085_v7, %v7889_v62 }
 0xdc3   : > { %v3888_v53 = vadd.f32 %v3882_v18, %v3864_v40 }
 0xdc5   : > { %v3912_v56 = vadd.f32 %v3906_v29, %v3888_v53 }
 0xdc9   : > { %3081 = vrot.lane.b32.xlu0 %v7227_v13, %s4853_s13  ;;  %v3930_v13 = vsel %vm2851_vm11, %v7145_v63, %v7891_v11  ;;  %v2693_v63 = vlaneseq }
 0xdca   : > { %3436 = vrot.lane.b32.xlu1 %v3419_v38, %s4805_s30  ;;  %3978 = vrot.lane.b32.xlu2 %v7161_v50, %s4857_s29  ;;  %v3936_v7 = vadd.f32 %v3930_v13, %v3912_v56  ;;  %s4003_s30 = sld [smem:[#allocation3]] }
 0xdcb   : > { %v2694_v44 = vand.u32 127, %v2693_v63 }
 0xdcc   : > { %v3960_v50 = vadd.f32 %v3954_v43, %v3936_v7 }
 0xdcd   : > { %v2695_v45 = vadd.s32 128, %v2694_v44  ;;  %v2700_v47 = vand.u32 15, %v2694_v44 }
 0xdcf   : > { %v7376_v35 = vand.u32 15, %v2695_v45  ;;  %v2885_v16 = vadd.s32 4294967293, %v2700_v47  ;;  %v3064_v22 = vadd.s32 4294967294, %v2700_v47  ;;  %v3245_v8 = vadd.s32 4294967295, %v2700_v47 }
 0xdd0   : > { %v3599_v60 = vadd.s32 1, %v2700_v47  ;;  %v3780_v20 = vadd.s32 2, %v2700_v47  ;;  %v3961_v51 = vadd.s32 3, %v2700_v47 }
 0xdd1   : > { %3616 = vrot.lane.b32.xlu0 %v3597_v33, %s4855_s17  ;;  %v3084_v33 = vpop.permute.xlu1 %3083  ;;  %v2886_v42 = vadd.s32 4294967293, %v7376_v35  ;;  %v3065_v39 = vadd.s32 4294967294, %v7376_v35  ;;  %v3246_v61 = vadd.s32 4294967295, %v7376_v35  ;;  %vm2887_vm0 = vcmp.ge.s32.totalorder %v2885_v16, 0 }
 0xdd2   : > { %3976 = vrot.lane.b32.xlu1 %v7159_v5, %s4857_s29  ;;  %v3435_v5 = vpop.permute.xlu0 %3434  ;;  %v3265_v2 = vpop.permute.xlu2 %3264  ;;  %vm3066_vm4 = vcmp.ge.s32.totalorder %v3064_v22, 0  ;;  %vm3247_vm6 = vcmp.ge.s32.totalorder %v3245_v8, 0  ;;  %v3600_v24 = vadd.s32 1, %v7376_v35  ;;  %vm3603_vm10 = vcmp.lt.s32.totalorder %v3599_v60, 16 }
 0xdd3   : > { %vm2888_vm1 = vcmp.ge.s32.totalorder %v2886_v42, 0  ;;  %vm3067_vm5 = vcmp.ge.s32.totalorder %v3065_v39, 0  ;;  %vm3248_vm7 = vcmp.ge.s32.totalorder %v3246_v61, 0  ;;  %vm3784_vm13 = vcmp.lt.s32.totalorder %v3780_v20, 16 }
 0xdd4   : > { %vm3604_vm12 = vcmp.lt.s32.totalorder %v3600_v24, 16  ;;  %v3781_v25 = vadd.s32 2, %v7376_v35  ;;  %v4004_v42 = vstv %s4003_s30 }
 0xdd9   : > { %3980 = vrot.lane.b32.xlu0 %v3960_v50, %s4857_s29  ;;  %v3962_v50 = vadd.s32 3, %v7376_v35 }
 0xdf2   : > { %v3439_v23 = vpop.permute.xlu2 %3438 }
 0xe1c   : > { %v3798_v9 = vpop.permute.xlu2 %3797 }
 0xe1d   : > { %v3802_v38 = vsel %vm3801_vm8, %v7370_v49, %v3798_v9 }
 0xe24   : > { %v7374_v17 = vpop.permute.xlu1 %3618  ;;  %v3979_v29 = vpop.permute.xlu2 %3978 }
 0xe2c   : > { %v2903_v27 = vpop.permute.xlu1 %2902 }
 0xe2d   : > { %v2907_v36 = vsel %vm2906_vm15, %v2901_v46, %v2903_v27  ;;  %v2908_v59 = vsel %vm2906_vm15, %v2903_v27, %v2905_v0  ;;  %vm3965_vm15 = vcmp.lt.s32.totalorder %v3961_v51, 16 }
 0xe2e   : > { %v2911_v4 = vsel %vm2887_vm0, %v2907_v36, 0.0  ;;  %v2912_v31 = vsel %vm2888_vm1, %v2908_v59, 0.0  ;;  %vm3785_vm0 = vcmp.lt.s32.totalorder %v3781_v25, 16 }
 0xe33   : > { %v7378_v30 = vpop.permute.xlu0 %3799 }
 0xe34   : > { %v3263_v1 = vpop.permute.xlu1 %3262  ;;  %v3803_v49 = vsel %vm3801_vm8, %v3798_v9, %v7378_v30 }
 0xe35   : > { %v3267_v54 = vsel %vm3266_vm2, %v3261_v15, %v3263_v1  ;;  %v3268_v55 = vsel %vm3266_vm2, %v3263_v1, %v3265_v2  ;;  %v3807_v0 = vsel %vm3785_vm0, %v3803_v49, 0.0 }
 0xe36   : > { %v3271_v10 = vsel %vm3247_vm6, %v3267_v54, 0.0  ;;  %v3272_v57 = vsel %vm3248_vm7, %v3268_v55, 0.0 }
 0xe3b   : > { %v3082_v34 = vpop.permute.xlu0 %3081 }
 0xe3c   : > { %v3086_v6 = vsel %vm3085_vm3, %v3080_v41, %v3082_v34  ;;  %v3087_v52 = vsel %vm3085_vm3, %v3082_v34, %v3084_v33  ;;  %v3437_v19 = vpop.permute.xlu1 %3436  ;;  %v3806_v41 = vsel %vm3784_vm13, %v3802_v38, 0.0 }
 0xe3d   : > { %v3090_v12 = vsel %vm3066_vm4, %v3086_v6, 0.0  ;;  %v3091_v28 = vsel %vm3067_vm5, %v3087_v52, 0.0  ;;  %v3440_v32 = vsel %vm2851_vm11, %v3435_v5, %v3437_v19  ;;  %v3441_v56 = vsel %vm2851_vm11, %v3437_v19, %v3439_v23 }
 0xe3e   : > { %v3092_v14 = vadd.f32 %v3090_v12, %v2911_v4  ;;  %v3093_v48 = vadd.f32 %v3091_v28, %v2912_v31  ;;  %vm3966_vm11 = vcmp.lt.s32.totalorder %v3962_v50, 16 }
 0xe40   : > { %v3273_v26 = vadd.f32 %v3271_v10, %v3092_v14  ;;  %v3274_v37 = vadd.f32 %v3272_v57, %v3093_v48 }
 0xe42   : > { %v3446_v62 = vadd.f32 %v3440_v32, %v3273_v26  ;;  %v3447_v7 = vadd.f32 %v3441_v56, %v3274_v37  ;;  %v7893_v32 = vld [vmem:[#allocation20_spill] sm:$0xff] }
 0xe43   : > { %v3617_v40 = vpop.permute.xlu0 %3616 }
 0xe44   : > { %v3621_v18 = vsel %vm3620_vm9, %v7372_v21, %v3617_v40  ;;  %v3622_v53 = vsel %vm3620_vm9, %v3617_v40, %v7374_v17  ;;  %v3977_v3 = vpop.permute.xlu1 %3976 }
 0xe45   : > { %v3625_v11 = vsel %vm3603_vm10, %v3621_v18, 0.0  ;;  %v3626_v13 = vsel %vm3604_vm12, %v3622_v53, 0.0  ;;  %v3983_v43 = vsel %vm3982_vm14, %v3977_v3, %v3979_v29  ;;  %v7894_v3 = vld [vmem:[#allocation15_spill] sm:$0xff] }
 0xe46   : > { %v3627_v58 = vadd.f32 %v3625_v11, %v3446_v62  ;;  %v3628_v46 = vadd.f32 %v3626_v13, %v3447_v7  ;;  %v3987_v33 = vsel %vm3965_vm15, %v3983_v43, 0.0 }
 0xe48   : > { %v3808_v21 = vadd.f32 %v3806_v41, %v3627_v58  ;;  %v3809_v5 = vadd.f32 %v3807_v0, %v3628_v46 }
 0xe4a   : > { %v3989_v15 = vadd.f32 %v3987_v33, %v3808_v21 }
 0xe4b   : > { %v3981_v17 = vpop.permute.xlu0 %3980 }
 0xe4c   : > { %v3991_v63 = vrot.slane %v3989_v15, 4  ;;  %v3984_v2 = vsel %vm3982_vm14, %v3979_v29, %v3981_v17 }
 0xe4d   : > { %v3988_v44 = vsel %vm3966_vm11, %v3984_v2, 0.0 }
 0xe4e   : > { %v3992_v27 = vadd.f32 %v3991_v63, %v3989_v15  ;;  %v3990_v45 = vadd.f32 %v3988_v44, %v3809_v5 }
 0xe50   : > { %v3993_v35 = vrot.slane %v3992_v27, 2  ;;  %v3997_v23 = vrot.slane %v3990_v45, 4 }
 0xe52   : > { %v3994_v47 = vadd.f32 %v3993_v35, %v3992_v27  ;;  %v3998_v1 = vadd.f32 %v3997_v23, %v3990_v45 }
 0xe54   : > { %v3995_v30 = vrot.slane %v3994_v47, 1  ;;  %v3999_v16 = vrot.slane %v3998_v1, 2 }
 0xe56   : > { %v3996_v22 = vadd.f32 %v3995_v30, %v3994_v47  ;;  %v4000_v39 = vadd.f32 %v3999_v16, %v3998_v1 }
 0xe58   : > { %v4005_v8 = vadd.f32 %v4004_v42, %v3996_v22  ;;  %v4001_v61 = vrot.slane %v4000_v39, 1 }
 0xe5a   : > { %v4259_v36 = vmul.f32 -1.442695, %v4005_v8  ;;  %v4002_v59 = vadd.f32 %v4001_v61, %v4000_v39 }
 0xe5c   : > { %4778 = vpow2.f32 %v4259_v36  ;;  %v4006_v9 = vadd.f32 %v4004_v42, %v4002_v59 }
 0xe5e   : > { %v4260_v34 = vmul.f32 -1.442695, %v4006_v9 }
 0xe60   : > { %4780 = vpow2.f32 %v4260_v34 }
 0xe62   : > { %v4779_v54 = vpop.eup %4778 }
 0xe63   : > { %v4013_v6 = vadd.f32 1.0, %v4779_v54 }
 0xe65   : > { %4782 = vrcp.f32 %v4013_v6  ;;  %v4024_v28 = vand.u32 2147483647, %v4013_v6  ;;  %v4026_v55 = vand.u32 2147483648, %v4013_v6  ;;  %vm4020_vm2 = vweird.f32 %v4013_v6 }
 0xe66   : > { %v4781_v52 = vpop.eup %4780 }
 0xe67   : > { %v4014_v19 = vadd.f32 1.0, %v4781_v52  ;;  %vm4025_vm4 = vcmp.eq.f32.partialorder %v4024_v28, 8.507059e+37  ;;  %v4027_v10 = vor.u32 1.1754944e-38, %v4026_v55 }
 0xe69   : > { %4784 = vrcp.f32 %v4014_v19  ;;  %v4041_v26 = vand.u32 2147483648, %v4014_v19  ;;  %v4039_v37 = vand.u32 2147483647, %v4014_v19  ;;  %vm4035_vm6 = vweird.f32 %v4014_v19 }
 0xe6b   : > { %v4783_v60 = vpop.eup %4782  ;;  %v4042_v62 = vor.u32 1.1754944e-38, %v4041_v26  ;;  %vm4040_vm8 = vcmp.eq.f32.partialorder %v4039_v37, 8.507059e+37 }
 0xe6c   : > { %v4016_v4 = vmul.f32 %v4783_v60, %v4013_v6  ;;  %vm4021_vm1 = vweird.f32 %v4783_v60 }
 0xe6d   : > { %vm4022_vm3 = vmor %vm4020_vm2, %vm4021_vm1 }
 0xe6e   : > { %v4017_v31 = vsub.f32 1.0, %v4016_v4 }
 0xe6f   : > { %v4785_v12 = vpop.eup %4784 }
 0xe70   : > { %v4018_v14 = vmul.f32 %v4783_v60, %v4017_v31  ;;  %v4031_v48 = vmul.f32 %v4785_v12, %v4014_v19  ;;  %vm4036_vm5 = vweird.f32 %v4785_v12 }
 0xe71   : > { %vm4037_vm7 = vmor %vm4035_vm6, %vm4036_vm5 }
 0xe72   : > { %v4019_v24 = vadd.f32 %v4783_v60, %v4018_v14  ;;  %v4032_v20 = vsub.f32 1.0, %v4031_v48 }
 0xe74   : > { %v4023_v57 = vsel %vm4022_vm3, %v4783_v60, %v4019_v24  ;;  %v4033_v51 = vmul.f32 %v4785_v12, %v4032_v20 }
 0xe75   : > { %v4028_v25 = vsel %vm4025_vm4, %v4027_v10, %v4023_v57 }
 0xe76   : > { %v4045_v40 = vmul.f32 %v4028_v25, %v7893_v32  ;;  %v4034_v38 = vadd.f32 %v4785_v12, %v4033_v51 }
 0xe78   : > { %4047 = vst [vmem:[%s333_s18] sm:$0xff] %v4045_v40  ;;  %v4038_v18 = vsel %vm4037_vm7, %v4785_v12, %v4034_v38 }
 0xe79   : > { %v4043_v53 = vsel %vm4040_vm8, %v4042_v62, %v4038_v18 }
 0xe7a   : > { %v4046_v29 = vmul.f32 %v4043_v53, %v7894_v3 }
 0xe7c   : > { %4048 = vst [vmem:[%s333_s18 + $0x8] sm:$0xff] %v4046_v29 }
 0xe7d PF: > { %s20_s11 = sadd.s32 1, %s4795_s11  }
 0xe7e   : > { %p17_p4 = scmp.ge.s32.totalorder %s20_s11, 4  }
 0xe80   :  { %19 = sbr.rel (!%p17_p4) target bundleno = 2 (0x2), region = 86 }

</bundles_post_ra>
